<compile_context>
chip_gen: v7x
topology: tpu7x:2x2x1
jax: 0.10.0
libtpu: 0.0.40
codegen_flags: <defaults>
</compile_context>

<pallas_src>
import functools

import jax
import jax.numpy as jnp
import numpy as np
from jax import lax
from jax.experimental import pallas as pl
from jax.experimental.pallas import tpu as pltpu


# ----------------------------------------------------------------------------
# Fused Pallas kernel: 2-layer bidirectional LSTM + FC head, single invocation
# ----------------------------------------------------------------------------
def _fused_bilstm_kernel(
    x_ref,                                    # (T*B, F) time-major, flattened
    w0cat_ref, b0cat_ref,                     # (F, 8H), (1, 8H)  layer-0 fwd|bwd fused
    whh0f_ref, whh0b_ref,                     # (H, 4H) each       layer-0 recurrent
    wih1ff_ref, wih1fb_ref, whh1f_ref, b1f_ref,   # layer-1 forward
    wih1bf_ref, wih1bb_ref, b1b_ref,              # layer-1 backward (only t = T-1 needed)
    fcwf_ref, fcwb_ref, fcb_ref,              # FC head, split per direction
    out_ref,                                  # (B, C)
    proj0_ref,                                # scratch (T*B, 8H)
    seq0f_ref, seq0b_ref,                     # scratch (T*B, H) each
    proj1_ref,                                # scratch (T*B, 4H)
    *, hidden, seq_len, batch,
):
    H, T, B = hidden, seq_len, batch
    f32 = jnp.float32

    def cell(gates, c):
        # gates: (B, 4H) pre-activations, PyTorch order [i, f, g, o]
        i_g = jax.nn.sigmoid(gates[:, 0 * H:1 * H])
        f_g = jax.nn.sigmoid(gates[:, 1 * H:2 * H])
        g_g = jnp.tanh(gates[:, 2 * H:3 * H])
        o_g = jax.nn.sigmoid(gates[:, 3 * H:4 * H])
        c_new = f_g * c + i_g * g_g
        return o_g * jnp.tanh(c_new), c_new

    # ---- Phase 1: layer-0 input projections, BOTH directions, ALL timesteps,
    # hoisted into one big MXU matmul (removed from the serial recurrence).
    proj0_ref[...] = (
        jnp.dot(x_ref[...], w0cat_ref[...], preferred_element_type=f32)
        + b0cat_ref[...]
    )

    # Hoist recurrent-weight loads out of the loops (loaded once).
    whh0f = whh0f_ref[...]
    whh0b = whh0b_ref[...]
    zeros = jnp.zeros((B, H), f32)

    # ---- Phase 2: layer-0 recurrence, both directions per step; only the
    # h @ W_hh matmul + gate math remains inside the serial chain.
    def l0_body(t, carry):
        hf, cf, hb, cb = carry
        r = T - 1 - t                          # backward reads reversed time
        gf = (proj0_ref[pl.ds(t * B, B), 0:4 * H]
              + jnp.dot(hf, whh0f, preferred_element_type=f32))
        hf, cf = cell(gf, cf)
        gb = (proj0_ref[pl.ds(r * B, B), 4 * H:8 * H]
              + jnp.dot(hb, whh0b, preferred_element_type=f32))
        hb, cb = cell(gb, cb)
        seq0f_ref[pl.ds(t * B, B), :] = hf     # stored in original time order
        seq0b_ref[pl.ds(r * B, B), :] = hb
        return hf, cf, hb, cb

    lax.fori_loop(0, T, l0_body, (zeros, zeros, zeros, zeros), unroll=True)

    # ---- Phase 3: layer-1 forward input projection over the whole layer-0
    # hidden sequence (two big matmuls instead of 2 per timestep).
    proj1_ref[...] = (
        jnp.dot(seq0f_ref[...], wih1ff_ref[...], preferred_element_type=f32)
        + jnp.dot(seq0b_ref[...], wih1fb_ref[...], preferred_element_type=f32)
        + b1f_ref[...]
    )

    whh1f = whh1f_ref[...]

    # ---- Phase 4: layer-1 forward recurrence; only the final hidden state is
    # consumed by the FC head.
    def l1_body(t, carry):
        h1, c1 = carry
        g = (proj1_ref[pl.ds(t * B, B), :]
             + jnp.dot(h1, whh1f, preferred_element_type=f32))
        return cell(g, c1)

    h1f, _ = lax.fori_loop(0, T, l1_body, (zeros, zeros), unroll=True)

    # ---- Phase 5: layer-1 backward output at the LAST time index (the only
    # one used): with zero initial (h, c) it is exactly one cell step on the
    # layer-0 output at t = T-1, and the h @ W_hh term is identically zero.
    last = (T - 1) * B
    g_b = (
        jnp.dot(seq0f_ref[last:last + B, :], wih1bf_ref[...], preferred_element_type=f32)
        + jnp.dot(seq0b_ref[last:last + B, :], wih1bb_ref[...], preferred_element_type=f32)
        + b1b_ref[...]
    )
    h1b, _ = cell(g_b, zeros)

    # ---- Phase 6: FC head fused in (nn.Dropout(0.5) is identity in eval mode).
    out_ref[...] = (
        jnp.dot(h1f, fcwf_ref[...], preferred_element_type=f32)
        + jnp.dot(h1b, fcwb_ref[...], preferred_element_type=f32)
        + fcb_ref[...]
    )


# ----------------------------------------------------------------------------
# myBiLSTM forward (single fused pallas_call)
# ----------------------------------------------------------------------------
def my_bilstm_forward(x, params, hidden):
    """x: (B, T, input_size) float32 -> (B, num_classes)."""
    B, T, _F = x.shape
    H = hidden
    # Time-major, flattened so every in-kernel access is a plain 2-D slice.
    x_flat = jnp.transpose(x, (1, 0, 2)).reshape(T * B, _F)

    wih0f, whh0f, b0f = params["l0_fwd"]
    wih0b, whh0b, b0b = params["l0_bwd"]
    wih1f, whh1f, b1f = params["l1_fwd"]
    wih1b, _whh1b, b1b = params["l1_bwd"]          # W_hh of l1-bwd unused (h0 = 0)
    fcw = params["fc_w_t"]                          # (2H, C)
    fcb = params["fc_b"].reshape(1, -1)
    C = fcw.shape[1]

    # Fuse layer-0 fwd/bwd input-projection weights along the gate axis and
    # split the per-direction halves of the layer-1 / FC weights (free in XLA).
    w0_cat = jnp.concatenate([wih0f, wih0b], axis=1)    # (F, 8H)
    b0_cat = jnp.concatenate([b0f, b0b], axis=1)        # (1, 8H)
    wih1f_f, wih1f_b = wih1f[:H], wih1f[H:]
    wih1b_f, wih1b_b = wih1b[:H], wih1b[H:]
    fcw_f, fcw_b = fcw[:H], fcw[H:]

    kernel = functools.partial(_fused_bilstm_kernel, hidden=H, seq_len=T, batch=B)
    # TODO(synk): nn.Dropout(0.5) is identity in eval mode; training-mode dropout not applied.
    return pl.pallas_call(
        kernel,
        out_shape=jax.ShapeDtypeStruct((B, C), jnp.float32),
        scratch_shapes=[
            pltpu.VMEM((T * B, 8 * H), jnp.float32),    # layer-0 input projections (f|b)
            pltpu.VMEM((T * B, H), jnp.float32),        # layer-0 fwd hidden sequence
            pltpu.VMEM((T * B, H), jnp.float32),        # layer-0 bwd hidden sequence
            pltpu.VMEM((T * B, 4 * H), jnp.float32),    # layer-1 fwd input projections
        ],
    )(x_flat,
      w0_cat, b0_cat, whh0f, whh0b,
      wih1f_f, wih1f_b, whh1f, b1f,
      wih1b_f, wih1b_b, b1b,
      fcw_f, fcw_b, fcb)


# ----------------------------------------------------------------------------
# Pure-JAX reference (full computation, for correctness check)
# ----------------------------------------------------------------------------
def lstm_direction_ref(x_tbf, wih_t, whh_t, bias, hidden):
    B = x_tbf.shape[1]

    def step(carry, x_t):
        h, c = carry
        gates = x_t @ wih_t + h @ whh_t + bias
        i_g = jax.nn.sigmoid(gates[:, 0 * hidden:1 * hidden])
        f_g = jax.nn.sigmoid(gates[:, 1 * hidden:2 * hidden])
        g_g = jnp.tanh(gates[:, 2 * hidden:3 * hidden])
        o_g = jax.nn.sigmoid(gates[:, 3 * hidden:4 * hidden])
        c_n = f_g * c + i_g * g_g
        h_n = o_g * jnp.tanh(c_n)
        return (h_n, c_n), h_n

    init = (jnp.zeros((B, hidden), jnp.float32), jnp.zeros((B, hidden), jnp.float32))
    _, out = lax.scan(step, init, x_tbf)
    return out


def my_bilstm_forward_ref(x, params, hidden):
    def layer(x_btf, pf, pb):
        x_tbf = jnp.transpose(x_btf, (1, 0, 2))
        of = lstm_direction_ref(x_tbf, *pf, hidden)
        ob = lstm_direction_ref(x_tbf[::-1], *pb, hidden)[::-1]
        return jnp.transpose(jnp.concatenate([of, ob], axis=-1), (1, 0, 2))

    h1 = layer(x, params["l0_fwd"], params["l0_bwd"])
    h2 = layer(h1, params["l1_fwd"], params["l1_bwd"])
    last = h2[:, -1, :]
    return last @ params["fc_w_t"] + params["fc_b"]


# ----------------------------------------------------------------------------
# Deterministic parameter init (PyTorch-style uniform(-1/sqrt(H), 1/sqrt(H)))
# ----------------------------------------------------------------------------
def init_params(key, input_size, hidden, num_classes):
    k = 1.0 / np.sqrt(hidden)

    def uni(key, shape):
        return jax.random.uniform(key, shape, jnp.float32, -k, k)

    keys = iter(jax.random.split(key, 32))

    def lstm_dir(in_feats):
        wih = uni(next(keys), (4 * hidden, in_feats))
        whh = uni(next(keys), (4 * hidden, hidden))
        bih = uni(next(keys), (4 * hidden,))
        bhh = uni(next(keys), (4 * hidden,))
        # Pre-transpose weights and fuse biases for the kernel.
        return (wih.T, whh.T, (bih + bhh).reshape(1, 4 * hidden))

    params = {
        "l0_fwd": lstm_dir(input_size),
        "l0_bwd": lstm_dir(input_size),
        "l1_fwd": lstm_dir(2 * hidden),
        "l1_bwd": lstm_dir(2 * hidden),
    }
    fc_w = uni(next(keys), (num_classes, 2 * hidden))
    fc_b = uni(next(keys), (num_classes,))
    params["fc_w_t"] = fc_w.T
    params["fc_b"] = fc_b
    return params


# ----------------------------------------------------------------------------
if __name__ == "__main__":
    # Small shapes consistent with the module: batch=2, seq=8, input_size=18,
    # hidden=32, num_layers=2 (bidirectional), num_classes=4.
    batch, seq, input_size, hidden, num_classes = 2, 8, 18, 32, 4

    key = jax.random.PRNGKey(0)
    kx, kp = jax.random.split(key)
    x = jax.random.normal(kx, (batch, seq, input_size), jnp.float32)
    params = init_params(kp, input_size, hidden, num_classes)

    fwd = jax.jit(functools.partial(my_bilstm_forward, hidden=hidden))
    out = jax.block_until_ready(fwd(x, params))

    ref = my_bilstm_forward_ref(x, params, hidden)
    np.testing.assert_allclose(np.asarray(out), np.asarray(ref), rtol=1e-4, atol=1e-4)
    assert out.shape == (batch, num_classes)

    print("KERNEL_OK")
</pallas_src>

<mosaic_0001>
module attributes {stable_mosaic.version = 11 : i64} {
  func.func @_fused_bilstm_kernel(%arg0: memref<16x18xf32, #tpu.memory_space<vmem>>, %arg1: memref<18x256xf32, #tpu.memory_space<vmem>>, %arg2: memref<1x256xf32, #tpu.memory_space<vmem>>, %arg3: memref<32x128xf32, #tpu.memory_space<vmem>>, %arg4: memref<32x128xf32, #tpu.memory_space<vmem>>, %arg5: memref<32x128xf32, #tpu.memory_space<vmem>>, %arg6: memref<32x128xf32, #tpu.memory_space<vmem>>, %arg7: memref<32x128xf32, #tpu.memory_space<vmem>>, %arg8: memref<1x128xf32, #tpu.memory_space<vmem>>, %arg9: memref<32x128xf32, #tpu.memory_space<vmem>>, %arg10: memref<32x128xf32, #tpu.memory_space<vmem>>, %arg11: memref<1x128xf32, #tpu.memory_space<vmem>>, %arg12: memref<32x4xf32, #tpu.memory_space<vmem>>, %arg13: memref<32x4xf32, #tpu.memory_space<vmem>>, %arg14: memref<1x4xf32, #tpu.memory_space<vmem>>, %arg15: memref<2x4xf32, #tpu.memory_space<vmem>>, %arg16: memref<16x256xf32, #tpu.memory_space<vmem>>, %arg17: memref<16x32xf32, #tpu.memory_space<vmem>>, %arg18: memref<16x32xf32, #tpu.memory_space<vmem>>, %arg19: memref<16x128xf32, #tpu.memory_space<vmem>>) attributes {dimension_semantics = [], scalar_prefetch = 0 : i64, scratch_operands = 4 : i64, tpu.core_type = #tpu.core_type<tc>} {
    %c0 = arith.constant 0 : index
    %c0_0 = arith.constant 0 : index
    %0 = vector.load %arg0[%c0, %c0_0] : memref<16x18xf32, #tpu.memory_space<vmem>>, vector<16x18xf32>
    %c0_1 = arith.constant 0 : index
    %c0_2 = arith.constant 0 : index
    %1 = vector.load %arg1[%c0_1, %c0_2] : memref<18x256xf32, #tpu.memory_space<vmem>>, vector<18x256xf32>
    %cst = arith.constant dense<0.000000e+00> : vector<16x256xf32>
    %2 = tpu.matmul %0, %1, %cst {dimension_numbers = #tpu.dot_dimension_numbers<[1], [0], [0], [1], [0, 0, 1, 1], [], []>} : vector<16x18xf32>, vector<18x256xf32>, vector<16x256xf32> -> vector<16x256xf32>
    %c0_3 = arith.constant 0 : index
    %c0_4 = arith.constant 0 : index
    %3 = vector.load %arg2[%c0_3, %c0_4] : memref<1x256xf32, #tpu.memory_space<vmem>>, vector<1x256xf32>
    %4 = vector.broadcast %3 : vector<1x256xf32> to vector<16x256xf32>
    %5 = arith.addf %2, %4 : vector<16x256xf32>
    %c0_5 = arith.constant 0 : index
    %c0_6 = arith.constant 0 : index
    %6 = vector.load %arg16[%c0_5, %c0_6] : memref<16x256xf32, #tpu.memory_space<vmem>>, vector<16x256xf32>
    tpu.vector_store %arg16[%c0_5, %c0_6], %5 {strides = array<i32>} : memref<16x256xf32, #tpu.memory_space<vmem>>, vector<16x256xf32>,
    %c0_7 = arith.constant 0 : index
    %c0_8 = arith.constant 0 : index
    %7 = vector.load %arg3[%c0_7, %c0_8] : memref<32x128xf32, #tpu.memory_space<vmem>>, vector<32x128xf32>
    %c0_9 = arith.constant 0 : index
    %c0_10 = arith.constant 0 : index
    %8 = vector.load %arg4[%c0_9, %c0_10] : memref<32x128xf32, #tpu.memory_space<vmem>>, vector<32x128xf32>
    %cst_11 = arith.constant 0.000000e+00 : f32
    %9 = vector.broadcast %cst_11 : f32 to vector<2x32xf32>
    %c0_i32 = arith.constant 0 : i32
    %c7_i32 = arith.constant 7 : i32
    %10 = arith.subi %c7_i32, %c0_i32 : i32
    %c2_i32 = arith.constant 2 : i32
    %11 = arith.muli %c0_i32, %c2_i32 : i32
    %12 = arith.index_cast %11 : i32 to index
    %c0_12 = arith.constant 0 : index
    %13 = vector.load %arg16[%12, %c0_12] : memref<16x256xf32, #tpu.memory_space<vmem>>, vector<2x128xf32>
    %cst_13 = arith.constant dense<0.000000e+00> : vector<2x128xf32>
    %14 = tpu.matmul %9, %7, %cst_13 {dimension_numbers = #tpu.dot_dimension_numbers<[1], [0], [0], [1], [0, 0, 1, 1], [], []>} : vector<2x32xf32>, vector<32x128xf32>, vector<2x128xf32> -> vector<2x128xf32>
    %15 = arith.addf %13, %14 : vector<2x128xf32>
    %16 = vector.extract_strided_slice %15 {offsets = [0, 0], sizes = [2, 32], strides = [1, 1]} : vector<2x128xf32> to vector<2x32xf32>
    %17 = arith.negf %16 : vector<2x32xf32>
    %18 = math.exp %17 : vector<2x32xf32>
    %cst_14 = arith.constant 1.000000e+00 : f32
    %19 = vector.broadcast %cst_14 : f32 to vector<2x32xf32>
    %20 = arith.addf %19, %18 : vector<2x32xf32>
    %21 = arith.divf %19, %20 : vector<2x32xf32>
    %22 = vector.extract_strided_slice %15 {offsets = [0, 32], sizes = [2, 32], strides = [1, 1]} : vector<2x128xf32> to vector<2x32xf32>
    %23 = arith.negf %22 : vector<2x32xf32>
    %24 = math.exp %23 : vector<2x32xf32>
    %cst_15 = arith.constant 1.000000e+00 : f32
    %25 = vector.broadcast %cst_15 : f32 to vector<2x32xf32>
    %26 = arith.addf %25, %24 : vector<2x32xf32>
    %27 = arith.divf %25, %26 : vector<2x32xf32>
    %28 = vector.extract_strided_slice %15 {offsets = [0, 64], sizes = [2, 32], strides = [1, 1]} : vector<2x128xf32> to vector<2x32xf32>
    %29 = math.tanh %28 : vector<2x32xf32>
    %30 = vector.extract_strided_slice %15 {offsets = [0, 96], sizes = [2, 32], strides = [1, 1]} : vector<2x128xf32> to vector<2x32xf32>
    %31 = arith.negf %30 : vector<2x32xf32>
    %32 = math.exp %31 : vector<2x32xf32>
    %cst_16 = arith.constant 1.000000e+00 : f32
    %33 = vector.broadcast %cst_16 : f32 to vector<2x32xf32>
    %34 = arith.addf %33, %32 : vector<2x32xf32>
    %35 = arith.divf %33, %34 : vector<2x32xf32>
    %36 = arith.mulf %27, %9 : vector<2x32xf32>
    %37 = arith.mulf %21, %29 : vector<2x32xf32>
    %38 = arith.addf %36, %37 : vector<2x32xf32>
    %39 = math.tanh %38 : vector<2x32xf32>
    %40 = arith.mulf %35, %39 : vector<2x32xf32>
    %c2_i32_17 = arith.constant 2 : i32
    %41 = arith.muli %10, %c2_i32_17 : i32
    %42 = arith.index_cast %41 : i32 to index
    %c128 = arith.constant 128 : index
    %43 = vector.load %arg16[%42, %c128] : memref<16x256xf32, #tpu.memory_space<vmem>>, vector<2x128xf32>
    %cst_18 = arith.constant dense<0.000000e+00> : vector<2x128xf32>
    %44 = tpu.matmul %9, %8, %cst_18 {dimension_numbers = #tpu.dot_dimension_numbers<[1], [0], [0], [1], [0, 0, 1, 1], [], []>} : vector<2x32xf32>, vector<32x128xf32>, vector<2x128xf32> -> vector<2x128xf32>
    %45 = arith.addf %43, %44 : vector<2x128xf32>
    %46 = vector.extract_strided_slice %45 {offsets = [0, 0], sizes = [2, 32], strides = [1, 1]} : vector<2x128xf32> to vector<2x32xf32>
    %47 = arith.negf %46 : vector<2x32xf32>
    %48 = math.exp %47 : vector<2x32xf32>
    %cst_19 = arith.constant 1.000000e+00 : f32
    %49 = vector.broadcast %cst_19 : f32 to vector<2x32xf32>
    %50 = arith.addf %49, %48 : vector<2x32xf32>
    %51 = arith.divf %49, %50 : vector<2x32xf32>
    %52 = vector.extract_strided_slice %45 {offsets = [0, 32], sizes = [2, 32], strides = [1, 1]} : vector<2x128xf32> to vector<2x32xf32>
    %53 = arith.negf %52 : vector<2x32xf32>
    %54 = math.exp %53 : vector<2x32xf32>
    %cst_20 = arith.constant 1.000000e+00 : f32
    %55 = vector.broadcast %cst_20 : f32 to vector<2x32xf32>
    %56 = arith.addf %55, %54 : vector<2x32xf32>
    %57 = arith.divf %55, %56 : vector<2x32xf32>
    %58 = vector.extract_strided_slice %45 {offsets = [0, 64], sizes = [2, 32], strides = [1, 1]} : vector<2x128xf32> to vector<2x32xf32>
    %59 = math.tanh %58 : vector<2x32xf32>
    %60 = vector.extract_strided_slice %45 {offsets = [0, 96], sizes = [2, 32], strides = [1, 1]} : vector<2x128xf32> to vector<2x32xf32>
    %61 = arith.negf %60 : vector<2x32xf32>
    %62 = math.exp %61 : vector<2x32xf32>
    %cst_21 = arith.constant 1.000000e+00 : f32
    %63 = vector.broadcast %cst_21 : f32 to vector<2x32xf32>
    %64 = arith.addf %63, %62 : vector<2x32xf32>
    %65 = arith.divf %63, %64 : vector<2x32xf32>
    %66 = arith.mulf %57, %9 : vector<2x32xf32>
    %67 = arith.mulf %51, %59 : vector<2x32xf32>
    %68 = arith.addf %66, %67 : vector<2x32xf32>
    %69 = math.tanh %68 : vector<2x32xf32>
    %70 = arith.mulf %65, %69 : vector<2x32xf32>
    %c2_i32_22 = arith.constant 2 : i32
    %71 = arith.muli %c0_i32, %c2_i32_22 : i32
    %72 = arith.index_cast %71 : i32 to index
    %c0_23 = arith.constant 0 : index
    %73 = vector.load %arg17[%72, %c0_23] : memref<16x32xf32, #tpu.memory_space<vmem>>, vector<2x32xf32>
    tpu.vector_store %arg17[%72, %c0_23], %40 {strides = array<i32>} : memref<16x32xf32, #tpu.memory_space<vmem>>, vector<2x32xf32>,
    %c2_i32_24 = arith.constant 2 : i32
    %74 = arith.muli %10, %c2_i32_24 : i32
    %75 = arith.index_cast %74 : i32 to index
    %c0_25 = arith.constant 0 : index
    %76 = vector.load %arg18[%75, %c0_25] : memref<16x32xf32, #tpu.memory_space<vmem>>, vector<2x32xf32>
    tpu.vector_store %arg18[%75, %c0_25], %70 {strides = array<i32>} : memref<16x32xf32, #tpu.memory_space<vmem>>, vector<2x32xf32>,
    %c1_i32 = arith.constant 1 : i32
    %c7_i32_26 = arith.constant 7 : i32
    %77 = arith.subi %c7_i32_26, %c1_i32 : i32
    %c2_i32_27 = arith.constant 2 : i32
    %78 = arith.muli %c1_i32, %c2_i32_27 : i32
    %79 = arith.index_cast %78 : i32 to index
    %c0_28 = arith.constant 0 : index
    %80 = vector.load %arg16[%79, %c0_28] : memref<16x256xf32, #tpu.memory_space<vmem>>, vector<2x128xf32>
    %cst_29 = arith.constant dense<0.000000e+00> : vector<2x128xf32>
    %81 = tpu.matmul %40, %7, %cst_29 {dimension_numbers = #tpu.dot_dimension_numbers<[1], [0], [0], [1], [0, 0, 1, 1], [], []>} : vector<2x32xf32>, vector<32x128xf32>, vector<2x128xf32> -> vector<2x128xf32>
    %82 = arith.addf %80, %81 : vector<2x128xf32>
    %83 = vector.extract_strided_slice %82 {offsets = [0, 0], sizes = [2, 32], strides = [1, 1]} : vector<2x128xf32> to vector<2x32xf32>
    %84 = arith.negf %83 : vector<2x32xf32>
    %85 = math.exp %84 : vector<2x32xf32>
    %cst_30 = arith.constant 1.000000e+00 : f32
    %86 = vector.broadcast %cst_30 : f32 to vector<2x32xf32>
    %87 = arith.addf %86, %85 : vector<2x32xf32>
    %88 = arith.divf %86, %87 : vector<2x32xf32>
    %89 = vector.extract_strided_slice %82 {offsets = [0, 32], sizes = [2, 32], strides = [1, 1]} : vector<2x128xf32> to vector<2x32xf32>
    %90 = arith.negf %89 : vector<2x32xf32>
    %91 = math.exp %90 : vector<2x32xf32>
    %cst_31 = arith.constant 1.000000e+00 : f32
    %92 = vector.broadcast %cst_31 : f32 to vector<2x32xf32>
    %93 = arith.addf %92, %91 : vector<2x32xf32>
    %94 = arith.divf %92, %93 : vector<2x32xf32>
    %95 = vector.extract_strided_slice %82 {offsets = [0, 64], sizes = [2, 32], strides = [1, 1]} : vector<2x128xf32> to vector<2x32xf32>
    %96 = math.tanh %95 : vector<2x32xf32>
    %97 = vector.extract_strided_slice %82 {offsets = [0, 96], sizes = [2, 32], strides = [1, 1]} : vector<2x128xf32> to vector<2x32xf32>
    %98 = arith.negf %97 : vector<2x32xf32>
    %99 = math.exp %98 : vector<2x32xf32>
    %cst_32 = arith.constant 1.000000e+00 : f32
    %100 = vector.broadcast %cst_32 : f32 to vector<2x32xf32>
    %101 = arith.addf %100, %99 : vector<2x32xf32>
    %102 = arith.divf %100, %101 : vector<2x32xf32>
    %103 = arith.mulf %94, %38 : vector<2x32xf32>
    %104 = arith.mulf %88, %96 : vector<2x32xf32>
    %105 = arith.addf %103, %104 : vector<2x32xf32>
    %106 = math.tanh %105 : vector<2x32xf32>
    %107 = arith.mulf %102, %106 : vector<2x32xf32>
    %c2_i32_33 = arith.constant 2 : i32
    %108 = arith.muli %77, %c2_i32_33 : i32
    %109 = arith.index_cast %108 : i32 to index
    %c128_34 = arith.constant 128 : index
    %110 = vector.load %arg16[%109, %c128_34] : memref<16x256xf32, #tpu.memory_space<vmem>>, vector<2x128xf32>
    %cst_35 = arith.constant dense<0.000000e+00> : vector<2x128xf32>
    %111 = tpu.matmul %70, %8, %cst_35 {dimension_numbers = #tpu.dot_dimension_numbers<[1], [0], [0], [1], [0, 0, 1, 1], [], []>} : vector<2x32xf32>, vector<32x128xf32>, vector<2x128xf32> -> vector<2x128xf32>
    %112 = arith.addf %110, %111 : vector<2x128xf32>
    %113 = vector.extract_strided_slice %112 {offsets = [0, 0], sizes = [2, 32], strides = [1, 1]} : vector<2x128xf32> to vector<2x32xf32>
    %114 = arith.negf %113 : vector<2x32xf32>
    %115 = math.exp %114 : vector<2x32xf32>
    %cst_36 = arith.constant 1.000000e+00 : f32
    %116 = vector.broadcast %cst_36 : f32 to vector<2x32xf32>
    %117 = arith.addf %116, %115 : vector<2x32xf32>
    %118 = arith.divf %116, %117 : vector<2x32xf32>
    %119 = vector.extract_strided_slice %112 {offsets = [0, 32], sizes = [2, 32], strides = [1, 1]} : vector<2x128xf32> to vector<2x32xf32>
    %120 = arith.negf %119 : vector<2x32xf32>
    %121 = math.exp %120 : vector<2x32xf32>
    %cst_37 = arith.constant 1.000000e+00 : f32
    %122 = vector.broadcast %cst_37 : f32 to vector<2x32xf32>
    %123 = arith.addf %122, %121 : vector<2x32xf32>
    %124 = arith.divf %122, %123 : vector<2x32xf32>
    %125 = vector.extract_strided_slice %112 {offsets = [0, 64], sizes = [2, 32], strides = [1, 1]} : vector<2x128xf32> to vector<2x32xf32>
    %126 = math.tanh %125 : vector<2x32xf32>
    %127 = vector.extract_strided_slice %112 {offsets = [0, 96], sizes = [2, 32], strides = [1, 1]} : vector<2x128xf32> to vector<2x32xf32>
    %128 = arith.negf %127 : vector<2x32xf32>
    %129 = math.exp %128 : vector<2x32xf32>
    %cst_38 = arith.constant 1.000000e+00 : f32
    %130 = vector.broadcast %cst_38 : f32 to vector<2x32xf32>
    %131 = arith.addf %130, %129 : vector<2x32xf32>
    %132 = arith.divf %130, %131 : vector<2x32xf32>
    %133 = arith.mulf %124, %68 : vector<2x32xf32>
    %134 = arith.mulf %118, %126 : vector<2x32xf32>
    %135 = arith.addf %133, %134 : vector<2x32xf32>
    %136 = math.tanh %135 : vector<2x32xf32>
    %137 = arith.mulf %132, %136 : vector<2x32xf32>
    %c2_i32_39 = arith.constant 2 : i32
    %138 = arith.muli %c1_i32, %c2_i32_39 : i32
    %139 = arith.index_cast %138 : i32 to index
    %c0_40 = arith.constant 0 : index
    %140 = vector.load %arg17[%139, %c0_40] : memref<16x32xf32, #tpu.memory_space<vmem>>, vector<2x32xf32>
    tpu.vector_store %arg17[%139, %c0_40], %107 {strides = array<i32>} : memref<16x32xf32, #tpu.memory_space<vmem>>, vector<2x32xf32>,
    %c2_i32_41 = arith.constant 2 : i32
    %141 = arith.muli %77, %c2_i32_41 : i32
    %142 = arith.index_cast %141 : i32 to index
    %c0_42 = arith.constant 0 : index
    %143 = vector.load %arg18[%142, %c0_42] : memref<16x32xf32, #tpu.memory_space<vmem>>, vector<2x32xf32>
    tpu.vector_store %arg18[%142, %c0_42], %137 {strides = array<i32>} : memref<16x32xf32, #tpu.memory_space<vmem>>, vector<2x32xf32>,
    %c2_i32_43 = arith.constant 2 : i32
    %c7_i32_44 = arith.constant 7 : i32
    %144 = arith.subi %c7_i32_44, %c2_i32_43 : i32
    %c2_i32_45 = arith.constant 2 : i32
    %145 = arith.muli %c2_i32_43, %c2_i32_45 : i32
    %146 = arith.index_cast %145 : i32 to index
    %c0_46 = arith.constant 0 : index
    %147 = vector.load %arg16[%146, %c0_46] : memref<16x256xf32, #tpu.memory_space<vmem>>, vector<2x128xf32>
    %cst_47 = arith.constant dense<0.000000e+00> : vector<2x128xf32>
    %148 = tpu.matmul %107, %7, %cst_47 {dimension_numbers = #tpu.dot_dimension_numbers<[1], [0], [0], [1], [0, 0, 1, 1], [], []>} : vector<2x32xf32>, vector<32x128xf32>, vector<2x128xf32> -> vector<2x128xf32>
    %149 = arith.addf %147, %148 : vector<2x128xf32>
    %150 = vector.extract_strided_slice %149 {offsets = [0, 0], sizes = [2, 32], strides = [1, 1]} : vector<2x128xf32> to vector<2x32xf32>
    %151 = arith.negf %150 : vector<2x32xf32>
    %152 = math.exp %151 : vector<2x32xf32>
    %cst_48 = arith.constant 1.000000e+00 : f32
    %153 = vector.broadcast %cst_48 : f32 to vector<2x32xf32>
    %154 = arith.addf %153, %152 : vector<2x32xf32>
    %155 = arith.divf %153, %154 : vector<2x32xf32>
    %156 = vector.extract_strided_slice %149 {offsets = [0, 32], sizes = [2, 32], strides = [1, 1]} : vector<2x128xf32> to vector<2x32xf32>
    %157 = arith.negf %156 : vector<2x32xf32>
    %158 = math.exp %157 : vector<2x32xf32>
    %cst_49 = arith.constant 1.000000e+00 : f32
    %159 = vector.broadcast %cst_49 : f32 to vector<2x32xf32>
    %160 = arith.addf %159, %158 : vector<2x32xf32>
    %161 = arith.divf %159, %160 : vector<2x32xf32>
    %162 = vector.extract_strided_slice %149 {offsets = [0, 64], sizes = [2, 32], strides = [1, 1]} : vector<2x128xf32> to vector<2x32xf32>
    %163 = math.tanh %162 : vector<2x32xf32>
    %164 = vector.extract_strided_slice %149 {offsets = [0, 96], sizes = [2, 32], strides = [1, 1]} : vector<2x128xf32> to vector<2x32xf32>
    %165 = arith.negf %164 : vector<2x32xf32>
    %166 = math.exp %165 : vector<2x32xf32>
    %cst_50 = arith.constant 1.000000e+00 : f32
    %167 = vector.broadcast %cst_50 : f32 to vector<2x32xf32>
    %168 = arith.addf %167, %166 : vector<2x32xf32>
    %169 = arith.divf %167, %168 : vector<2x32xf32>
    %170 = arith.mulf %161, %105 : vector<2x32xf32>
    %171 = arith.mulf %155, %163 : vector<2x32xf32>
    %172 = arith.addf %170, %171 : vector<2x32xf32>
    %173 = math.tanh %172 : vector<2x32xf32>
    %174 = arith.mulf %169, %173 : vector<2x32xf32>
    %c2_i32_51 = arith.constant 2 : i32
    %175 = arith.muli %144, %c2_i32_51 : i32
    %176 = arith.index_cast %175 : i32 to index
    %c128_52 = arith.constant 128 : index
    %177 = vector.load %arg16[%176, %c128_52] : memref<16x256xf32, #tpu.memory_space<vmem>>, vector<2x128xf32>
    %cst_53 = arith.constant dense<0.000000e+00> : vector<2x128xf32>
    %178 = tpu.matmul %137, %8, %cst_53 {dimension_numbers = #tpu.dot_dimension_numbers<[1], [0], [0], [1], [0, 0, 1, 1], [], []>} : vector<2x32xf32>, vector<32x128xf32>, vector<2x128xf32> -> vector<2x128xf32>
    %179 = arith.addf %177, %178 : vector<2x128xf32>
    %180 = vector.extract_strided_slice %179 {offsets = [0, 0], sizes = [2, 32], strides = [1, 1]} : vector<2x128xf32> to vector<2x32xf32>
    %181 = arith.negf %180 : vector<2x32xf32>
    %182 = math.exp %181 : vector<2x32xf32>
    %cst_54 = arith.constant 1.000000e+00 : f32
    %183 = vector.broadcast %cst_54 : f32 to vector<2x32xf32>
    %184 = arith.addf %183, %182 : vector<2x32xf32>
    %185 = arith.divf %183, %184 : vector<2x32xf32>
    %186 = vector.extract_strided_slice %179 {offsets = [0, 32], sizes = [2, 32], strides = [1, 1]} : vector<2x128xf32> to vector<2x32xf32>
    %187 = arith.negf %186 : vector<2x32xf32>
    %188 = math.exp %187 : vector<2x32xf32>
    %cst_55 = arith.constant 1.000000e+00 : f32
    %189 = vector.broadcast %cst_55 : f32 to vector<2x32xf32>
    %190 = arith.addf %189, %188 : vector<2x32xf32>
    %191 = arith.divf %189, %190 : vector<2x32xf32>
    %192 = vector.extract_strided_slice %179 {offsets = [0, 64], sizes = [2, 32], strides = [1, 1]} : vector<2x128xf32> to vector<2x32xf32>
    %193 = math.tanh %192 : vector<2x32xf32>
    %194 = vector.extract_strided_slice %179 {offsets = [0, 96], sizes = [2, 32], strides = [1, 1]} : vector<2x128xf32> to vector<2x32xf32>
    %195 = arith.negf %194 : vector<2x32xf32>
    %196 = math.exp %195 : vector<2x32xf32>
    %cst_56 = arith.constant 1.000000e+00 : f32
    %197 = vector.broadcast %cst_56 : f32 to vector<2x32xf32>
    %198 = arith.addf %197, %196 : vector<2x32xf32>
    %199 = arith.divf %197, %198 : vector<2x32xf32>
    %200 = arith.mulf %191, %135 : vector<2x32xf32>
    %201 = arith.mulf %185, %193 : vector<2x32xf32>
    %202 = arith.addf %200, %201 : vector<2x32xf32>
    %203 = math.tanh %202 : vector<2x32xf32>
    %204 = arith.mulf %199, %203 : vector<2x32xf32>
    %c2_i32_57 = arith.constant 2 : i32
    %205 = arith.muli %c2_i32_43, %c2_i32_57 : i32
    %206 = arith.index_cast %205 : i32 to index
    %c0_58 = arith.constant 0 : index
    %207 = vector.load %arg17[%206, %c0_58] : memref<16x32xf32, #tpu.memory_space<vmem>>, vector<2x32xf32>
    tpu.vector_store %arg17[%206, %c0_58], %174 {strides = array<i32>} : memref<16x32xf32, #tpu.memory_space<vmem>>, vector<2x32xf32>,
    %c2_i32_59 = arith.constant 2 : i32
    %208 = arith.muli %144, %c2_i32_59 : i32
    %209 = arith.index_cast %208 : i32 to index
    %c0_60 = arith.constant 0 : index
    %210 = vector.load %arg18[%209, %c0_60] : memref<16x32xf32, #tpu.memory_space<vmem>>, vector<2x32xf32>
    tpu.vector_store %arg18[%209, %c0_60], %204 {strides = array<i32>} : memref<16x32xf32, #tpu.memory_space<vmem>>, vector<2x32xf32>,
    %c3_i32 = arith.constant 3 : i32
    %c7_i32_61 = arith.constant 7 : i32
    %211 = arith.subi %c7_i32_61, %c3_i32 : i32
    %c2_i32_62 = arith.constant 2 : i32
    %212 = arith.muli %c3_i32, %c2_i32_62 : i32
    %213 = arith.index_cast %212 : i32 to index
    %c0_63 = arith.constant 0 : index
    %214 = vector.load %arg16[%213, %c0_63] : memref<16x256xf32, #tpu.memory_space<vmem>>, vector<2x128xf32>
    %cst_64 = arith.constant dense<0.000000e+00> : vector<2x128xf32>
    %215 = tpu.matmul %174, %7, %cst_64 {dimension_numbers = #tpu.dot_dimension_numbers<[1], [0], [0], [1], [0, 0, 1, 1], [], []>} : vector<2x32xf32>, vector<32x128xf32>, vector<2x128xf32> -> vector<2x128xf32>
    %216 = arith.addf %214, %215 : vector<2x128xf32>
    %217 = vector.extract_strided_slice %216 {offsets = [0, 0], sizes = [2, 32], strides = [1, 1]} : vector<2x128xf32> to vector<2x32xf32>
    %218 = arith.negf %217 : vector<2x32xf32>
    %219 = math.exp %218 : vector<2x32xf32>
    %cst_65 = arith.constant 1.000000e+00 : f32
    %220 = vector.broadcast %cst_65 : f32 to vector<2x32xf32>
    %221 = arith.addf %220, %219 : vector<2x32xf32>
    %222 = arith.divf %220, %221 : vector<2x32xf32>
    %223 = vector.extract_strided_slice %216 {offsets = [0, 32], sizes = [2, 32], strides = [1, 1]} : vector<2x128xf32> to vector<2x32xf32>
    %224 = arith.negf %223 : vector<2x32xf32>
    %225 = math.exp %224 : vector<2x32xf32>
    %cst_66 = arith.constant 1.000000e+00 : f32
    %226 = vector.broadcast %cst_66 : f32 to vector<2x32xf32>
    %227 = arith.addf %226, %225 : vector<2x32xf32>
    %228 = arith.divf %226, %227 : vector<2x32xf32>
    %229 = vector.extract_strided_slice %216 {offsets = [0, 64], sizes = [2, 32], strides = [1, 1]} : vector<2x128xf32> to vector<2x32xf32>
    %230 = math.tanh %229 : vector<2x32xf32>
    %231 = vector.extract_strided_slice %216 {offsets = [0, 96], sizes = [2, 32], strides = [1, 1]} : vector<2x128xf32> to vector<2x32xf32>
    %232 = arith.negf %231 : vector<2x32xf32>
    %233 = math.exp %232 : vector<2x32xf32>
    %cst_67 = arith.constant 1.000000e+00 : f32
    %234 = vector.broadcast %cst_67 : f32 to vector<2x32xf32>
    %235 = arith.addf %234, %233 : vector<2x32xf32>
    %236 = arith.divf %234, %235 : vector<2x32xf32>
    %237 = arith.mulf %228, %172 : vector<2x32xf32>
    %238 = arith.mulf %222, %230 : vector<2x32xf32>
    %239 = arith.addf %237, %238 : vector<2x32xf32>
    %240 = math.tanh %239 : vector<2x32xf32>
    %241 = arith.mulf %236, %240 : vector<2x32xf32>
    %c2_i32_68 = arith.constant 2 : i32
    %242 = arith.muli %211, %c2_i32_68 : i32
    %243 = arith.index_cast %242 : i32 to index
    %c128_69 = arith.constant 128 : index
    %244 = vector.load %arg16[%243, %c128_69] : memref<16x256xf32, #tpu.memory_space<vmem>>, vector<2x128xf32>
    %cst_70 = arith.constant dense<0.000000e+00> : vector<2x128xf32>
    %245 = tpu.matmul %204, %8, %cst_70 {dimension_numbers = #tpu.dot_dimension_numbers<[1], [0], [0], [1], [0, 0, 1, 1], [], []>} : vector<2x32xf32>, vector<32x128xf32>, vector<2x128xf32> -> vector<2x128xf32>
    %246 = arith.addf %244, %245 : vector<2x128xf32>
    %247 = vector.extract_strided_slice %246 {offsets = [0, 0], sizes = [2, 32], strides = [1, 1]} : vector<2x128xf32> to vector<2x32xf32>
    %248 = arith.negf %247 : vector<2x32xf32>
    %249 = math.exp %248 : vector<2x32xf32>
    %cst_71 = arith.constant 1.000000e+00 : f32
    %250 = vector.broadcast %cst_71 : f32 to vector<2x32xf32>
    %251 = arith.addf %250, %249 : vector<2x32xf32>
    %252 = arith.divf %250, %251 : vector<2x32xf32>
    %253 = vector.extract_strided_slice %246 {offsets = [0, 32], sizes = [2, 32], strides = [1, 1]} : vector<2x128xf32> to vector<2x32xf32>
    %254 = arith.negf %253 : vector<2x32xf32>
    %255 = math.exp %254 : vector<2x32xf32>
    %cst_72 = arith.constant 1.000000e+00 : f32
    %256 = vector.broadcast %cst_72 : f32 to vector<2x32xf32>
    %257 = arith.addf %256, %255 : vector<2x32xf32>
    %258 = arith.divf %256, %257 : vector<2x32xf32>
    %259 = vector.extract_strided_slice %246 {offsets = [0, 64], sizes = [2, 32], strides = [1, 1]} : vector<2x128xf32> to vector<2x32xf32>
    %260 = math.tanh %259 : vector<2x32xf32>
    %261 = vector.extract_strided_slice %246 {offsets = [0, 96], sizes = [2, 32], strides = [1, 1]} : vector<2x128xf32> to vector<2x32xf32>
    %262 = arith.negf %261 : vector<2x32xf32>
    %263 = math.exp %262 : vector<2x32xf32>
    %cst_73 = arith.constant 1.000000e+00 : f32
    %264 = vector.broadcast %cst_73 : f32 to vector<2x32xf32>
    %265 = arith.addf %264, %263 : vector<2x32xf32>
    %266 = arith.divf %264, %265 : vector<2x32xf32>
    %267 = arith.mulf %258, %202 : vector<2x32xf32>
    %268 = arith.mulf %252, %260 : vector<2x32xf32>
    %269 = arith.addf %267, %268 : vector<2x32xf32>
    %270 = math.tanh %269 : vector<2x32xf32>
    %271 = arith.mulf %266, %270 : vector<2x32xf32>
    %c2_i32_74 = arith.constant 2 : i32
    %272 = arith.muli %c3_i32, %c2_i32_74 : i32
    %273 = arith.index_cast %272 : i32 to index
    %c0_75 = arith.constant 0 : index
    %274 = vector.load %arg17[%273, %c0_75] : memref<16x32xf32, #tpu.memory_space<vmem>>, vector<2x32xf32>
    tpu.vector_store %arg17[%273, %c0_75], %241 {strides = array<i32>} : memref<16x32xf32, #tpu.memory_space<vmem>>, vector<2x32xf32>,
    %c2_i32_76 = arith.constant 2 : i32
    %275 = arith.muli %211, %c2_i32_76 : i32
    %276 = arith.index_cast %275 : i32 to index
    %c0_77 = arith.constant 0 : index
    %277 = vector.load %arg18[%276, %c0_77] : memref<16x32xf32, #tpu.memory_space<vmem>>, vector<2x32xf32>
    tpu.vector_store %arg18[%276, %c0_77], %271 {strides = array<i32>} : memref<16x32xf32, #tpu.memory_space<vmem>>, vector<2x32xf32>,
    %c4_i32 = arith.constant 4 : i32
    %c7_i32_78 = arith.constant 7 : i32
    %278 = arith.subi %c7_i32_78, %c4_i32 : i32
    %c2_i32_79 = arith.constant 2 : i32
    %279 = arith.muli %c4_i32, %c2_i32_79 : i32
    %280 = arith.index_cast %279 : i32 to index
    %c0_80 = arith.constant 0 : index
    %281 = vector.load %arg16[%280, %c0_80] : memref<16x256xf32, #tpu.memory_space<vmem>>, vector<2x128xf32>
    %cst_81 = arith.constant dense<0.000000e+00> : vector<2x128xf32>
    %282 = tpu.matmul %241, %7, %cst_81 {dimension_numbers = #tpu.dot_dimension_numbers<[1], [0], [0], [1], [0, 0, 1, 1], [], []>} : vector<2x32xf32>, vector<32x128xf32>, vector<2x128xf32> -> vector<2x128xf32>
    %283 = arith.addf %281, %282 : vector<2x128xf32>
    %284 = vector.extract_strided_slice %283 {offsets = [0, 0], sizes = [2, 32], strides = [1, 1]} : vector<2x128xf32> to vector<2x32xf32>
    %285 = arith.negf %284 : vector<2x32xf32>
    %286 = math.exp %285 : vector<2x32xf32>
    %cst_82 = arith.constant 1.000000e+00 : f32
    %287 = vector.broadcast %cst_82 : f32 to vector<2x32xf32>
    %288 = arith.addf %287, %286 : vector<2x32xf32>
    %289 = arith.divf %287, %288 : vector<2x32xf32>
    %290 = vector.extract_strided_slice %283 {offsets = [0, 32], sizes = [2, 32], strides = [1, 1]} : vector<2x128xf32> to vector<2x32xf32>
    %291 = arith.negf %290 : vector<2x32xf32>
    %292 = math.exp %291 : vector<2x32xf32>
    %cst_83 = arith.constant 1.000000e+00 : f32
    %293 = vector.broadcast %cst_83 : f32 to vector<2x32xf32>
    %294 = arith.addf %293, %292 : vector<2x32xf32>
    %295 = arith.divf %293, %294 : vector<2x32xf32>
    %296 = vector.extract_strided_slice %283 {offsets = [0, 64], sizes = [2, 32], strides = [1, 1]} : vector<2x128xf32> to vector<2x32xf32>
    %297 = math.tanh %296 : vector<2x32xf32>
    %298 = vector.extract_strided_slice %283 {offsets = [0, 96], sizes = [2, 32], strides = [1, 1]} : vector<2x128xf32> to vector<2x32xf32>
    %299 = arith.negf %298 : vector<2x32xf32>
    %300 = math.exp %299 : vector<2x32xf32>
    %cst_84 = arith.constant 1.000000e+00 : f32
    %301 = vector.broadcast %cst_84 : f32 to vector<2x32xf32>
    %302 = arith.addf %301, %300 : vector<2x32xf32>
    %303 = arith.divf %301, %302 : vector<2x32xf32>
    %304 = arith.mulf %295, %239 : vector<2x32xf32>
    %305 = arith.mulf %289, %297 : vector<2x32xf32>
    %306 = arith.addf %304, %305 : vector<2x32xf32>
    %307 = math.tanh %306 : vector<2x32xf32>
    %308 = arith.mulf %303, %307 : vector<2x32xf32>
    %c2_i32_85 = arith.constant 2 : i32
    %309 = arith.muli %278, %c2_i32_85 : i32
    %310 = arith.index_cast %309 : i32 to index
    %c128_86 = arith.constant 128 : index
    %311 = vector.load %arg16[%310, %c128_86] : memref<16x256xf32, #tpu.memory_space<vmem>>, vector<2x128xf32>
    %cst_87 = arith.constant dense<0.000000e+00> : vector<2x128xf32>
    %312 = tpu.matmul %271, %8, %cst_87 {dimension_numbers = #tpu.dot_dimension_numbers<[1], [0], [0], [1], [0, 0, 1, 1], [], []>} : vector<2x32xf32>, vector<32x128xf32>, vector<2x128xf32> -> vector<2x128xf32>
    %313 = arith.addf %311, %312 : vector<2x128xf32>
    %314 = vector.extract_strided_slice %313 {offsets = [0, 0], sizes = [2, 32], strides = [1, 1]} : vector<2x128xf32> to vector<2x32xf32>
    %315 = arith.negf %314 : vector<2x32xf32>
    %316 = math.exp %315 : vector<2x32xf32>
    %cst_88 = arith.constant 1.000000e+00 : f32
    %317 = vector.broadcast %cst_88 : f32 to vector<2x32xf32>
    %318 = arith.addf %317, %316 : vector<2x32xf32>
    %319 = arith.divf %317, %318 : vector<2x32xf32>
    %320 = vector.extract_strided_slice %313 {offsets = [0, 32], sizes = [2, 32], strides = [1, 1]} : vector<2x128xf32> to vector<2x32xf32>
    %321 = arith.negf %320 : vector<2x32xf32>
    %322 = math.exp %321 : vector<2x32xf32>
    %cst_89 = arith.constant 1.000000e+00 : f32
    %323 = vector.broadcast %cst_89 : f32 to vector<2x32xf32>
    %324 = arith.addf %323, %322 : vector<2x32xf32>
    %325 = arith.divf %323, %324 : vector<2x32xf32>
    %326 = vector.extract_strided_slice %313 {offsets = [0, 64], sizes = [2, 32], strides = [1, 1]} : vector<2x128xf32> to vector<2x32xf32>
    %327 = math.tanh %326 : vector<2x32xf32>
    %328 = vector.extract_strided_slice %313 {offsets = [0, 96], sizes = [2, 32], strides = [1, 1]} : vector<2x128xf32> to vector<2x32xf32>
    %329 = arith.negf %328 : vector<2x32xf32>
    %330 = math.exp %329 : vector<2x32xf32>
    %cst_90 = arith.constant 1.000000e+00 : f32
    %331 = vector.broadcast %cst_90 : f32 to vector<2x32xf32>
    %332 = arith.addf %331, %330 : vector<2x32xf32>
    %333 = arith.divf %331, %332 : vector<2x32xf32>
    %334 = arith.mulf %325, %269 : vector<2x32xf32>
    %335 = arith.mulf %319, %327 : vector<2x32xf32>
    %336 = arith.addf %334, %335 : vector<2x32xf32>
    %337 = math.tanh %336 : vector<2x32xf32>
    %338 = arith.mulf %333, %337 : vector<2x32xf32>
    %c2_i32_91 = arith.constant 2 : i32
    %339 = arith.muli %c4_i32, %c2_i32_91 : i32
    %340 = arith.index_cast %339 : i32 to index
    %c0_92 = arith.constant 0 : index
    %341 = vector.load %arg17[%340, %c0_92] : memref<16x32xf32, #tpu.memory_space<vmem>>, vector<2x32xf32>
    tpu.vector_store %arg17[%340, %c0_92], %308 {strides = array<i32>} : memref<16x32xf32, #tpu.memory_space<vmem>>, vector<2x32xf32>,
    %c2_i32_93 = arith.constant 2 : i32
    %342 = arith.muli %278, %c2_i32_93 : i32
    %343 = arith.index_cast %342 : i32 to index
    %c0_94 = arith.constant 0 : index
    %344 = vector.load %arg18[%343, %c0_94] : memref<16x32xf32, #tpu.memory_space<vmem>>, vector<2x32xf32>
    tpu.vector_store %arg18[%343, %c0_94], %338 {strides = array<i32>} : memref<16x32xf32, #tpu.memory_space<vmem>>, vector<2x32xf32>,
    %c5_i32 = arith.constant 5 : i32
    %c7_i32_95 = arith.constant 7 : i32
    %345 = arith.subi %c7_i32_95, %c5_i32 : i32
    %c2_i32_96 = arith.constant 2 : i32
    %346 = arith.muli %c5_i32, %c2_i32_96 : i32
    %347 = arith.index_cast %346 : i32 to index
    %c0_97 = arith.constant 0 : index
    %348 = vector.load %arg16[%347, %c0_97] : memref<16x256xf32, #tpu.memory_space<vmem>>, vector<2x128xf32>
    %cst_98 = arith.constant dense<0.000000e+00> : vector<2x128xf32>
    %349 = tpu.matmul %308, %7, %cst_98 {dimension_numbers = #tpu.dot_dimension_numbers<[1], [0], [0], [1], [0, 0, 1, 1], [], []>} : vector<2x32xf32>, vector<32x128xf32>, vector<2x128xf32> -> vector<2x128xf32>
    %350 = arith.addf %348, %349 : vector<2x128xf32>
    %351 = vector.extract_strided_slice %350 {offsets = [0, 0], sizes = [2, 32], strides = [1, 1]} : vector<2x128xf32> to vector<2x32xf32>
    %352 = arith.negf %351 : vector<2x32xf32>
    %353 = math.exp %352 : vector<2x32xf32>
    %cst_99 = arith.constant 1.000000e+00 : f32
    %354 = vector.broadcast %cst_99 : f32 to vector<2x32xf32>
    %355 = arith.addf %354, %353 : vector<2x32xf32>
    %356 = arith.divf %354, %355 : vector<2x32xf32>
    %357 = vector.extract_strided_slice %350 {offsets = [0, 32], sizes = [2, 32], strides = [1, 1]} : vector<2x128xf32> to vector<2x32xf32>
    %358 = arith.negf %357 : vector<2x32xf32>
    %359 = math.exp %358 : vector<2x32xf32>
    %cst_100 = arith.constant 1.000000e+00 : f32
    %360 = vector.broadcast %cst_100 : f32 to vector<2x32xf32>
    %361 = arith.addf %360, %359 : vector<2x32xf32>
    %362 = arith.divf %360, %361 : vector<2x32xf32>
    %363 = vector.extract_strided_slice %350 {offsets = [0, 64], sizes = [2, 32], strides = [1, 1]} : vector<2x128xf32> to vector<2x32xf32>
    %364 = math.tanh %363 : vector<2x32xf32>
    %365 = vector.extract_strided_slice %350 {offsets = [0, 96], sizes = [2, 32], strides = [1, 1]} : vector<2x128xf32> to vector<2x32xf32>
    %366 = arith.negf %365 : vector<2x32xf32>
    %367 = math.exp %366 : vector<2x32xf32>
    %cst_101 = arith.constant 1.000000e+00 : f32
    %368 = vector.broadcast %cst_101 : f32 to vector<2x32xf32>
    %369 = arith.addf %368, %367 : vector<2x32xf32>
    %370 = arith.divf %368, %369 : vector<2x32xf32>
    %371 = arith.mulf %362, %306 : vector<2x32xf32>
    %372 = arith.mulf %356, %364 : vector<2x32xf32>
    %373 = arith.addf %371, %372 : vector<2x32xf32>
    %374 = math.tanh %373 : vector<2x32xf32>
    %375 = arith.mulf %370, %374 : vector<2x32xf32>
    %c2_i32_102 = arith.constant 2 : i32
    %376 = arith.muli %345, %c2_i32_102 : i32
    %377 = arith.index_cast %376 : i32 to index
    %c128_103 = arith.constant 128 : index
    %378 = vector.load %arg16[%377, %c128_103] : memref<16x256xf32, #tpu.memory_space<vmem>>, vector<2x128xf32>
    %cst_104 = arith.constant dense<0.000000e+00> : vector<2x128xf32>
    %379 = tpu.matmul %338, %8, %cst_104 {dimension_numbers = #tpu.dot_dimension_numbers<[1], [0], [0], [1], [0, 0, 1, 1], [], []>} : vector<2x32xf32>, vector<32x128xf32>, vector<2x128xf32> -> vector<2x128xf32>
    %380 = arith.addf %378, %379 : vector<2x128xf32>
    %381 = vector.extract_strided_slice %380 {offsets = [0, 0], sizes = [2, 32], strides = [1, 1]} : vector<2x128xf32> to vector<2x32xf32>
    %382 = arith.negf %381 : vector<2x32xf32>
    %383 = math.exp %382 : vector<2x32xf32>
    %cst_105 = arith.constant 1.000000e+00 : f32
    %384 = vector.broadcast %cst_105 : f32 to vector<2x32xf32>
    %385 = arith.addf %384, %383 : vector<2x32xf32>
    %386 = arith.divf %384, %385 : vector<2x32xf32>
    %387 = vector.extract_strided_slice %380 {offsets = [0, 32], sizes = [2, 32], strides = [1, 1]} : vector<2x128xf32> to vector<2x32xf32>
    %388 = arith.negf %387 : vector<2x32xf32>
    %389 = math.exp %388 : vector<2x32xf32>
    %cst_106 = arith.constant 1.000000e+00 : f32
    %390 = vector.broadcast %cst_106 : f32 to vector<2x32xf32>
    %391 = arith.addf %390, %389 : vector<2x32xf32>
    %392 = arith.divf %390, %391 : vector<2x32xf32>
    %393 = vector.extract_strided_slice %380 {offsets = [0, 64], sizes = [2, 32], strides = [1, 1]} : vector<2x128xf32> to vector<2x32xf32>
    %394 = math.tanh %393 : vector<2x32xf32>
    %395 = vector.extract_strided_slice %380 {offsets = [0, 96], sizes = [2, 32], strides = [1, 1]} : vector<2x128xf32> to vector<2x32xf32>
    %396 = arith.negf %395 : vector<2x32xf32>
    %397 = math.exp %396 : vector<2x32xf32>
    %cst_107 = arith.constant 1.000000e+00 : f32
    %398 = vector.broadcast %cst_107 : f32 to vector<2x32xf32>
    %399 = arith.addf %398, %397 : vector<2x32xf32>
    %400 = arith.divf %398, %399 : vector<2x32xf32>
    %401 = arith.mulf %392, %336 : vector<2x32xf32>
    %402 = arith.mulf %386, %394 : vector<2x32xf32>
    %403 = arith.addf %401, %402 : vector<2x32xf32>
    %404 = math.tanh %403 : vector<2x32xf32>
    %405 = arith.mulf %400, %404 : vector<2x32xf32>
    %c2_i32_108 = arith.constant 2 : i32
    %406 = arith.muli %c5_i32, %c2_i32_108 : i32
    %407 = arith.index_cast %406 : i32 to index
    %c0_109 = arith.constant 0 : index
    %408 = vector.load %arg17[%407, %c0_109] : memref<16x32xf32, #tpu.memory_space<vmem>>, vector<2x32xf32>
    tpu.vector_store %arg17[%407, %c0_109], %375 {strides = array<i32>} : memref<16x32xf32, #tpu.memory_space<vmem>>, vector<2x32xf32>,
    %c2_i32_110 = arith.constant 2 : i32
    %409 = arith.muli %345, %c2_i32_110 : i32
    %410 = arith.index_cast %409 : i32 to index
    %c0_111 = arith.constant 0 : index
    %411 = vector.load %arg18[%410, %c0_111] : memref<16x32xf32, #tpu.memory_space<vmem>>, vector<2x32xf32>
    tpu.vector_store %arg18[%410, %c0_111], %405 {strides = array<i32>} : memref<16x32xf32, #tpu.memory_space<vmem>>, vector<2x32xf32>,
    %c6_i32 = arith.constant 6 : i32
    %c7_i32_112 = arith.constant 7 : i32
    %412 = arith.subi %c7_i32_112, %c6_i32 : i32
    %c2_i32_113 = arith.constant 2 : i32
    %413 = arith.muli %c6_i32, %c2_i32_113 : i32
    %414 = arith.index_cast %413 : i32 to index
    %c0_114 = arith.constant 0 : index
    %415 = vector.load %arg16[%414, %c0_114] : memref<16x256xf32, #tpu.memory_space<vmem>>, vector<2x128xf32>
    %cst_115 = arith.constant dense<0.000000e+00> : vector<2x128xf32>
    %416 = tpu.matmul %375, %7, %cst_115 {dimension_numbers = #tpu.dot_dimension_numbers<[1], [0], [0], [1], [0, 0, 1, 1], [], []>} : vector<2x32xf32>, vector<32x128xf32>, vector<2x128xf32> -> vector<2x128xf32>
    %417 = arith.addf %415, %416 : vector<2x128xf32>
    %418 = vector.extract_strided_slice %417 {offsets = [0, 0], sizes = [2, 32], strides = [1, 1]} : vector<2x128xf32> to vector<2x32xf32>
    %419 = arith.negf %418 : vector<2x32xf32>
    %420 = math.exp %419 : vector<2x32xf32>
    %cst_116 = arith.constant 1.000000e+00 : f32
    %421 = vector.broadcast %cst_116 : f32 to vector<2x32xf32>
    %422 = arith.addf %421, %420 : vector<2x32xf32>
    %423 = arith.divf %421, %422 : vector<2x32xf32>
    %424 = vector.extract_strided_slice %417 {offsets = [0, 32], sizes = [2, 32], strides = [1, 1]} : vector<2x128xf32> to vector<2x32xf32>
    %425 = arith.negf %424 : vector<2x32xf32>
    %426 = math.exp %425 : vector<2x32xf32>
    %cst_117 = arith.constant 1.000000e+00 : f32
    %427 = vector.broadcast %cst_117 : f32 to vector<2x32xf32>
    %428 = arith.addf %427, %426 : vector<2x32xf32>
    %429 = arith.divf %427, %428 : vector<2x32xf32>
    %430 = vector.extract_strided_slice %417 {offsets = [0, 64], sizes = [2, 32], strides = [1, 1]} : vector<2x128xf32> to vector<2x32xf32>
    %431 = math.tanh %430 : vector<2x32xf32>
    %432 = vector.extract_strided_slice %417 {offsets = [0, 96], sizes = [2, 32], strides = [1, 1]} : vector<2x128xf32> to vector<2x32xf32>
    %433 = arith.negf %432 : vector<2x32xf32>
    %434 = math.exp %433 : vector<2x32xf32>
    %cst_118 = arith.constant 1.000000e+00 : f32
    %435 = vector.broadcast %cst_118 : f32 to vector<2x32xf32>
    %436 = arith.addf %435, %434 : vector<2x32xf32>
    %437 = arith.divf %435, %436 : vector<2x32xf32>
    %438 = arith.mulf %429, %373 : vector<2x32xf32>
    %439 = arith.mulf %423, %431 : vector<2x32xf32>
    %440 = arith.addf %438, %439 : vector<2x32xf32>
    %441 = math.tanh %440 : vector<2x32xf32>
    %442 = arith.mulf %437, %441 : vector<2x32xf32>
    %c2_i32_119 = arith.constant 2 : i32
    %443 = arith.muli %412, %c2_i32_119 : i32
    %444 = arith.index_cast %443 : i32 to index
    %c128_120 = arith.constant 128 : index
    %445 = vector.load %arg16[%444, %c128_120] : memref<16x256xf32, #tpu.memory_space<vmem>>, vector<2x128xf32>
    %cst_121 = arith.constant dense<0.000000e+00> : vector<2x128xf32>
    %446 = tpu.matmul %405, %8, %cst_121 {dimension_numbers = #tpu.dot_dimension_numbers<[1], [0], [0], [1], [0, 0, 1, 1], [], []>} : vector<2x32xf32>, vector<32x128xf32>, vector<2x128xf32> -> vector<2x128xf32>
    %447 = arith.addf %445, %446 : vector<2x128xf32>
    %448 = vector.extract_strided_slice %447 {offsets = [0, 0], sizes = [2, 32], strides = [1, 1]} : vector<2x128xf32> to vector<2x32xf32>
    %449 = arith.negf %448 : vector<2x32xf32>
    %450 = math.exp %449 : vector<2x32xf32>
    %cst_122 = arith.constant 1.000000e+00 : f32
    %451 = vector.broadcast %cst_122 : f32 to vector<2x32xf32>
    %452 = arith.addf %451, %450 : vector<2x32xf32>
    %453 = arith.divf %451, %452 : vector<2x32xf32>
    %454 = vector.extract_strided_slice %447 {offsets = [0, 32], sizes = [2, 32], strides = [1, 1]} : vector<2x128xf32> to vector<2x32xf32>
    %455 = arith.negf %454 : vector<2x32xf32>
    %456 = math.exp %455 : vector<2x32xf32>
    %cst_123 = arith.constant 1.000000e+00 : f32
    %457 = vector.broadcast %cst_123 : f32 to vector<2x32xf32>
    %458 = arith.addf %457, %456 : vector<2x32xf32>
    %459 = arith.divf %457, %458 : vector<2x32xf32>
    %460 = vector.extract_strided_slice %447 {offsets = [0, 64], sizes = [2, 32], strides = [1, 1]} : vector<2x128xf32> to vector<2x32xf32>
    %461 = math.tanh %460 : vector<2x32xf32>
    %462 = vector.extract_strided_slice %447 {offsets = [0, 96], sizes = [2, 32], strides = [1, 1]} : vector<2x128xf32> to vector<2x32xf32>
    %463 = arith.negf %462 : vector<2x32xf32>
    %464 = math.exp %463 : vector<2x32xf32>
    %cst_124 = arith.constant 1.000000e+00 : f32
    %465 = vector.broadcast %cst_124 : f32 to vector<2x32xf32>
    %466 = arith.addf %465, %464 : vector<2x32xf32>
    %467 = arith.divf %465, %466 : vector<2x32xf32>
    %468 = arith.mulf %459, %403 : vector<2x32xf32>
    %469 = arith.mulf %453, %461 : vector<2x32xf32>
    %470 = arith.addf %468, %469 : vector<2x32xf32>
    %471 = math.tanh %470 : vector<2x32xf32>
    %472 = arith.mulf %467, %471 : vector<2x32xf32>
    %c2_i32_125 = arith.constant 2 : i32
    %473 = arith.muli %c6_i32, %c2_i32_125 : i32
    %474 = arith.index_cast %473 : i32 to index
    %c0_126 = arith.constant 0 : index
    %475 = vector.load %arg17[%474, %c0_126] : memref<16x32xf32, #tpu.memory_space<vmem>>, vector<2x32xf32>
    tpu.vector_store %arg17[%474, %c0_126], %442 {strides = array<i32>} : memref<16x32xf32, #tpu.memory_space<vmem>>, vector<2x32xf32>,
    %c2_i32_127 = arith.constant 2 : i32
    %476 = arith.muli %412, %c2_i32_127 : i32
    %477 = arith.index_cast %476 : i32 to index
    %c0_128 = arith.constant 0 : index
    %478 = vector.load %arg18[%477, %c0_128] : memref<16x32xf32, #tpu.memory_space<vmem>>, vector<2x32xf32>
    tpu.vector_store %arg18[%477, %c0_128], %472 {strides = array<i32>} : memref<16x32xf32, #tpu.memory_space<vmem>>, vector<2x32xf32>,
    %c7_i32_129 = arith.constant 7 : i32
    %c7_i32_130 = arith.constant 7 : i32
    %479 = arith.subi %c7_i32_130, %c7_i32_129 : i32
    %c2_i32_131 = arith.constant 2 : i32
    %480 = arith.muli %c7_i32_129, %c2_i32_131 : i32
    %481 = arith.index_cast %480 : i32 to index
    %c0_132 = arith.constant 0 : index
    %482 = vector.load %arg16[%481, %c0_132] : memref<16x256xf32, #tpu.memory_space<vmem>>, vector<2x128xf32>
    %cst_133 = arith.constant dense<0.000000e+00> : vector<2x128xf32>
    %483 = tpu.matmul %442, %7, %cst_133 {dimension_numbers = #tpu.dot_dimension_numbers<[1], [0], [0], [1], [0, 0, 1, 1], [], []>} : vector<2x32xf32>, vector<32x128xf32>, vector<2x128xf32> -> vector<2x128xf32>
    %484 = arith.addf %482, %483 : vector<2x128xf32>
    %485 = vector.extract_strided_slice %484 {offsets = [0, 0], sizes = [2, 32], strides = [1, 1]} : vector<2x128xf32> to vector<2x32xf32>
    %486 = arith.negf %485 : vector<2x32xf32>
    %487 = math.exp %486 : vector<2x32xf32>
    %cst_134 = arith.constant 1.000000e+00 : f32
    %488 = vector.broadcast %cst_134 : f32 to vector<2x32xf32>
    %489 = arith.addf %488, %487 : vector<2x32xf32>
    %490 = arith.divf %488, %489 : vector<2x32xf32>
    %491 = vector.extract_strided_slice %484 {offsets = [0, 32], sizes = [2, 32], strides = [1, 1]} : vector<2x128xf32> to vector<2x32xf32>
    %492 = arith.negf %491 : vector<2x32xf32>
    %493 = math.exp %492 : vector<2x32xf32>
    %cst_135 = arith.constant 1.000000e+00 : f32
    %494 = vector.broadcast %cst_135 : f32 to vector<2x32xf32>
    %495 = arith.addf %494, %493 : vector<2x32xf32>
    %496 = arith.divf %494, %495 : vector<2x32xf32>
    %497 = vector.extract_strided_slice %484 {offsets = [0, 64], sizes = [2, 32], strides = [1, 1]} : vector<2x128xf32> to vector<2x32xf32>
    %498 = math.tanh %497 : vector<2x32xf32>
    %499 = vector.extract_strided_slice %484 {offsets = [0, 96], sizes = [2, 32], strides = [1, 1]} : vector<2x128xf32> to vector<2x32xf32>
    %500 = arith.negf %499 : vector<2x32xf32>
    %501 = math.exp %500 : vector<2x32xf32>
    %cst_136 = arith.constant 1.000000e+00 : f32
    %502 = vector.broadcast %cst_136 : f32 to vector<2x32xf32>
    %503 = arith.addf %502, %501 : vector<2x32xf32>
    %504 = arith.divf %502, %503 : vector<2x32xf32>
    %505 = arith.mulf %496, %440 : vector<2x32xf32>
    %506 = arith.mulf %490, %498 : vector<2x32xf32>
    %507 = arith.addf %505, %506 : vector<2x32xf32>
    %508 = math.tanh %507 : vector<2x32xf32>
    %509 = arith.mulf %504, %508 : vector<2x32xf32>
    %c2_i32_137 = arith.constant 2 : i32
    %510 = arith.muli %479, %c2_i32_137 : i32
    %511 = arith.index_cast %510 : i32 to index
    %c128_138 = arith.constant 128 : index
    %512 = vector.load %arg16[%511, %c128_138] : memref<16x256xf32, #tpu.memory_space<vmem>>, vector<2x128xf32>
    %cst_139 = arith.constant dense<0.000000e+00> : vector<2x128xf32>
    %513 = tpu.matmul %472, %8, %cst_139 {dimension_numbers = #tpu.dot_dimension_numbers<[1], [0], [0], [1], [0, 0, 1, 1], [], []>} : vector<2x32xf32>, vector<32x128xf32>, vector<2x128xf32> -> vector<2x128xf32>
    %514 = arith.addf %512, %513 : vector<2x128xf32>
    %515 = vector.extract_strided_slice %514 {offsets = [0, 0], sizes = [2, 32], strides = [1, 1]} : vector<2x128xf32> to vector<2x32xf32>
    %516 = arith.negf %515 : vector<2x32xf32>
    %517 = math.exp %516 : vector<2x32xf32>
    %cst_140 = arith.constant 1.000000e+00 : f32
    %518 = vector.broadcast %cst_140 : f32 to vector<2x32xf32>
    %519 = arith.addf %518, %517 : vector<2x32xf32>
    %520 = arith.divf %518, %519 : vector<2x32xf32>
    %521 = vector.extract_strided_slice %514 {offsets = [0, 32], sizes = [2, 32], strides = [1, 1]} : vector<2x128xf32> to vector<2x32xf32>
    %522 = arith.negf %521 : vector<2x32xf32>
    %523 = math.exp %522 : vector<2x32xf32>
    %cst_141 = arith.constant 1.000000e+00 : f32
    %524 = vector.broadcast %cst_141 : f32 to vector<2x32xf32>
    %525 = arith.addf %524, %523 : vector<2x32xf32>
    %526 = arith.divf %524, %525 : vector<2x32xf32>
    %527 = vector.extract_strided_slice %514 {offsets = [0, 64], sizes = [2, 32], strides = [1, 1]} : vector<2x128xf32> to vector<2x32xf32>
    %528 = math.tanh %527 : vector<2x32xf32>
    %529 = vector.extract_strided_slice %514 {offsets = [0, 96], sizes = [2, 32], strides = [1, 1]} : vector<2x128xf32> to vector<2x32xf32>
    %530 = arith.negf %529 : vector<2x32xf32>
    %531 = math.exp %530 : vector<2x32xf32>
    %cst_142 = arith.constant 1.000000e+00 : f32
    %532 = vector.broadcast %cst_142 : f32 to vector<2x32xf32>
    %533 = arith.addf %532, %531 : vector<2x32xf32>
    %534 = arith.divf %532, %533 : vector<2x32xf32>
    %535 = arith.mulf %526, %470 : vector<2x32xf32>
    %536 = arith.mulf %520, %528 : vector<2x32xf32>
    %537 = arith.addf %535, %536 : vector<2x32xf32>
    %538 = math.tanh %537 : vector<2x32xf32>
    %539 = arith.mulf %534, %538 : vector<2x32xf32>
    %c2_i32_143 = arith.constant 2 : i32
    %540 = arith.muli %c7_i32_129, %c2_i32_143 : i32
    %541 = arith.index_cast %540 : i32 to index
    %c0_144 = arith.constant 0 : index
    %542 = vector.load %arg17[%541, %c0_144] : memref<16x32xf32, #tpu.memory_space<vmem>>, vector<2x32xf32>
    tpu.vector_store %arg17[%541, %c0_144], %509 {strides = array<i32>} : memref<16x32xf32, #tpu.memory_space<vmem>>, vector<2x32xf32>,
    %c2_i32_145 = arith.constant 2 : i32
    %543 = arith.muli %479, %c2_i32_145 : i32
    %544 = arith.index_cast %543 : i32 to index
    %c0_146 = arith.constant 0 : index
    %545 = vector.load %arg18[%544, %c0_146] : memref<16x32xf32, #tpu.memory_space<vmem>>, vector<2x32xf32>
    tpu.vector_store %arg18[%544, %c0_146], %539 {strides = array<i32>} : memref<16x32xf32, #tpu.memory_space<vmem>>, vector<2x32xf32>,
    %c8_i32 = arith.constant 8 : i32
    %c0_147 = arith.constant 0 : index
    %c0_148 = arith.constant 0 : index
    %546 = vector.load %arg17[%c0_147, %c0_148] : memref<16x32xf32, #tpu.memory_space<vmem>>, vector<16x32xf32>
    %c0_149 = arith.constant 0 : index
    %c0_150 = arith.constant 0 : index
    %547 = vector.load %arg5[%c0_149, %c0_150] : memref<32x128xf32, #tpu.memory_space<vmem>>, vector<32x128xf32>
    %cst_151 = arith.constant dense<0.000000e+00> : vector<16x128xf32>
    %548 = tpu.matmul %546, %547, %cst_151 {dimension_numbers = #tpu.dot_dimension_numbers<[1], [0], [0], [1], [0, 0, 1, 1], [], []>} : vector<16x32xf32>, vector<32x128xf32>, vector<16x128xf32> -> vector<16x128xf32>
    %c0_152 = arith.constant 0 : index
    %c0_153 = arith.constant 0 : index
    %549 = vector.load %arg18[%c0_152, %c0_153] : memref<16x32xf32, #tpu.memory_space<vmem>>, vector<16x32xf32>
    %c0_154 = arith.constant 0 : index
    %c0_155 = arith.constant 0 : index
    %550 = vector.load %arg6[%c0_154, %c0_155] : memref<32x128xf32, #tpu.memory_space<vmem>>, vector<32x128xf32>
    %cst_156 = arith.constant dense<0.000000e+00> : vector<16x128xf32>
    %551 = tpu.matmul %549, %550, %cst_156 {dimension_numbers = #tpu.dot_dimension_numbers<[1], [0], [0], [1], [0, 0, 1, 1], [], []>} : vector<16x32xf32>, vector<32x128xf32>, vector<16x128xf32> -> vector<16x128xf32>
    %552 = arith.addf %548, %551 : vector<16x128xf32>
    %c0_157 = arith.constant 0 : index
    %c0_158 = arith.constant 0 : index
    %553 = vector.load %arg8[%c0_157, %c0_158] : memref<1x128xf32, #tpu.memory_space<vmem>>, vector<1x128xf32>
    %554 = vector.broadcast %553 : vector<1x128xf32> to vector<16x128xf32>
    %555 = arith.addf %552, %554 : vector<16x128xf32>
    %c0_159 = arith.constant 0 : index
    %c0_160 = arith.constant 0 : index
    %556 = vector.load %arg19[%c0_159, %c0_160] : memref<16x128xf32, #tpu.memory_space<vmem>>, vector<16x128xf32>
    tpu.vector_store %arg19[%c0_159, %c0_160], %555 {strides = array<i32>} : memref<16x128xf32, #tpu.memory_space<vmem>>, vector<16x128xf32>,
    %c0_161 = arith.constant 0 : index
    %c0_162 = arith.constant 0 : index
    %557 = vector.load %arg7[%c0_161, %c0_162] : memref<32x128xf32, #tpu.memory_space<vmem>>, vector<32x128xf32>
    %c0_i32_163 = arith.constant 0 : i32
    %c2_i32_164 = arith.constant 2 : i32
    %558 = arith.muli %c0_i32_163, %c2_i32_164 : i32
    %559 = arith.index_cast %558 : i32 to index
    %c0_165 = arith.constant 0 : index
    %560 = vector.load %arg19[%559, %c0_165] : memref<16x128xf32, #tpu.memory_space<vmem>>, vector<2x128xf32>
    %cst_166 = arith.constant dense<0.000000e+00> : vector<2x128xf32>
    %561 = tpu.matmul %9, %557, %cst_166 {dimension_numbers = #tpu.dot_dimension_numbers<[1], [0], [0], [1], [0, 0, 1, 1], [], []>} : vector<2x32xf32>, vector<32x128xf32>, vector<2x128xf32> -> vector<2x128xf32>
    %562 = arith.addf %560, %561 : vector<2x128xf32>
    %563 = vector.extract_strided_slice %562 {offsets = [0, 0], sizes = [2, 32], strides = [1, 1]} : vector<2x128xf32> to vector<2x32xf32>
    %564 = arith.negf %563 : vector<2x32xf32>
    %565 = math.exp %564 : vector<2x32xf32>
    %cst_167 = arith.constant 1.000000e+00 : f32
    %566 = vector.broadcast %cst_167 : f32 to vector<2x32xf32>
    %567 = arith.addf %566, %565 : vector<2x32xf32>
    %568 = arith.divf %566, %567 : vector<2x32xf32>
    %569 = vector.extract_strided_slice %562 {offsets = [0, 32], sizes = [2, 32], strides = [1, 1]} : vector<2x128xf32> to vector<2x32xf32>
    %570 = arith.negf %569 : vector<2x32xf32>
    %571 = math.exp %570 : vector<2x32xf32>
    %cst_168 = arith.constant 1.000000e+00 : f32
    %572 = vector.broadcast %cst_168 : f32 to vector<2x32xf32>
    %573 = arith.addf %572, %571 : vector<2x32xf32>
    %574 = arith.divf %572, %573 : vector<2x32xf32>
    %575 = vector.extract_strided_slice %562 {offsets = [0, 64], sizes = [2, 32], strides = [1, 1]} : vector<2x128xf32> to vector<2x32xf32>
    %576 = math.tanh %575 : vector<2x32xf32>
    %577 = vector.extract_strided_slice %562 {offsets = [0, 96], sizes = [2, 32], strides = [1, 1]} : vector<2x128xf32> to vector<2x32xf32>
    %578 = arith.negf %577 : vector<2x32xf32>
    %579 = math.exp %578 : vector<2x32xf32>
    %cst_169 = arith.constant 1.000000e+00 : f32
    %580 = vector.broadcast %cst_169 : f32 to vector<2x32xf32>
    %581 = arith.addf %580, %579 : vector<2x32xf32>
    %582 = arith.divf %580, %581 : vector<2x32xf32>
    %583 = arith.mulf %574, %9 : vector<2x32xf32>
    %584 = arith.mulf %568, %576 : vector<2x32xf32>
    %585 = arith.addf %583, %584 : vector<2x32xf32>
    %586 = math.tanh %585 : vector<2x32xf32>
    %587 = arith.mulf %582, %586 : vector<2x32xf32>
    %c1_i32_170 = arith.constant 1 : i32
    %c2_i32_171 = arith.constant 2 : i32
    %588 = arith.muli %c1_i32_170, %c2_i32_171 : i32
    %589 = arith.index_cast %588 : i32 to index
    %c0_172 = arith.constant 0 : index
    %590 = vector.load %arg19[%589, %c0_172] : memref<16x128xf32, #tpu.memory_space<vmem>>, vector<2x128xf32>
    %cst_173 = arith.constant dense<0.000000e+00> : vector<2x128xf32>
    %591 = tpu.matmul %587, %557, %cst_173 {dimension_numbers = #tpu.dot_dimension_numbers<[1], [0], [0], [1], [0, 0, 1, 1], [], []>} : vector<2x32xf32>, vector<32x128xf32>, vector<2x128xf32> -> vector<2x128xf32>
    %592 = arith.addf %590, %591 : vector<2x128xf32>
    %593 = vector.extract_strided_slice %592 {offsets = [0, 0], sizes = [2, 32], strides = [1, 1]} : vector<2x128xf32> to vector<2x32xf32>
    %594 = arith.negf %593 : vector<2x32xf32>
    %595 = math.exp %594 : vector<2x32xf32>
    %cst_174 = arith.constant 1.000000e+00 : f32
    %596 = vector.broadcast %cst_174 : f32 to vector<2x32xf32>
    %597 = arith.addf %596, %595 : vector<2x32xf32>
    %598 = arith.divf %596, %597 : vector<2x32xf32>
    %599 = vector.extract_strided_slice %592 {offsets = [0, 32], sizes = [2, 32], strides = [1, 1]} : vector<2x128xf32> to vector<2x32xf32>
    %600 = arith.negf %599 : vector<2x32xf32>
    %601 = math.exp %600 : vector<2x32xf32>
    %cst_175 = arith.constant 1.000000e+00 : f32
    %602 = vector.broadcast %cst_175 : f32 to vector<2x32xf32>
    %603 = arith.addf %602, %601 : vector<2x32xf32>
    %604 = arith.divf %602, %603 : vector<2x32xf32>
    %605 = vector.extract_strided_slice %592 {offsets = [0, 64], sizes = [2, 32], strides = [1, 1]} : vector<2x128xf32> to vector<2x32xf32>
    %606 = math.tanh %605 : vector<2x32xf32>
    %607 = vector.extract_strided_slice %592 {offsets = [0, 96], sizes = [2, 32], strides = [1, 1]} : vector<2x128xf32> to vector<2x32xf32>
    %608 = arith.negf %607 : vector<2x32xf32>
    %609 = math.exp %608 : vector<2x32xf32>
    %cst_176 = arith.constant 1.000000e+00 : f32
    %610 = vector.broadcast %cst_176 : f32 to vector<2x32xf32>
    %611 = arith.addf %610, %609 : vector<2x32xf32>
    %612 = arith.divf %610, %611 : vector<2x32xf32>
    %613 = arith.mulf %604, %585 : vector<2x32xf32>
    %614 = arith.mulf %598, %606 : vector<2x32xf32>
    %615 = arith.addf %613, %614 : vector<2x32xf32>
    %616 = math.tanh %615 : vector<2x32xf32>
    %617 = arith.mulf %612, %616 : vector<2x32xf32>
    %c2_i32_177 = arith.constant 2 : i32
    %c2_i32_178 = arith.constant 2 : i32
    %618 = arith.muli %c2_i32_177, %c2_i32_178 : i32
    %619 = arith.index_cast %618 : i32 to index
    %c0_179 = arith.constant 0 : index
    %620 = vector.load %arg19[%619, %c0_179] : memref<16x128xf32, #tpu.memory_space<vmem>>, vector<2x128xf32>
    %cst_180 = arith.constant dense<0.000000e+00> : vector<2x128xf32>
    %621 = tpu.matmul %617, %557, %cst_180 {dimension_numbers = #tpu.dot_dimension_numbers<[1], [0], [0], [1], [0, 0, 1, 1], [], []>} : vector<2x32xf32>, vector<32x128xf32>, vector<2x128xf32> -> vector<2x128xf32>
    %622 = arith.addf %620, %621 : vector<2x128xf32>
    %623 = vector.extract_strided_slice %622 {offsets = [0, 0], sizes = [2, 32], strides = [1, 1]} : vector<2x128xf32> to vector<2x32xf32>
    %624 = arith.negf %623 : vector<2x32xf32>
    %625 = math.exp %624 : vector<2x32xf32>
    %cst_181 = arith.constant 1.000000e+00 : f32
    %626 = vector.broadcast %cst_181 : f32 to vector<2x32xf32>
    %627 = arith.addf %626, %625 : vector<2x32xf32>
    %628 = arith.divf %626, %627 : vector<2x32xf32>
    %629 = vector.extract_strided_slice %622 {offsets = [0, 32], sizes = [2, 32], strides = [1, 1]} : vector<2x128xf32> to vector<2x32xf32>
    %630 = arith.negf %629 : vector<2x32xf32>
    %631 = math.exp %630 : vector<2x32xf32>
    %cst_182 = arith.constant 1.000000e+00 : f32
    %632 = vector.broadcast %cst_182 : f32 to vector<2x32xf32>
    %633 = arith.addf %632, %631 : vector<2x32xf32>
    %634 = arith.divf %632, %633 : vector<2x32xf32>
    %635 = vector.extract_strided_slice %622 {offsets = [0, 64], sizes = [2, 32], strides = [1, 1]} : vector<2x128xf32> to vector<2x32xf32>
    %636 = math.tanh %635 : vector<2x32xf32>
    %637 = vector.extract_strided_slice %622 {offsets = [0, 96], sizes = [2, 32], strides = [1, 1]} : vector<2x128xf32> to vector<2x32xf32>
    %638 = arith.negf %637 : vector<2x32xf32>
    %639 = math.exp %638 : vector<2x32xf32>
    %cst_183 = arith.constant 1.000000e+00 : f32
    %640 = vector.broadcast %cst_183 : f32 to vector<2x32xf32>
    %641 = arith.addf %640, %639 : vector<2x32xf32>
    %642 = arith.divf %640, %641 : vector<2x32xf32>
    %643 = arith.mulf %634, %615 : vector<2x32xf32>
    %644 = arith.mulf %628, %636 : vector<2x32xf32>
    %645 = arith.addf %643, %644 : vector<2x32xf32>
    %646 = math.tanh %645 : vector<2x32xf32>
    %647 = arith.mulf %642, %646 : vector<2x32xf32>
    %c3_i32_184 = arith.constant 3 : i32
    %c2_i32_185 = arith.constant 2 : i32
    %648 = arith.muli %c3_i32_184, %c2_i32_185 : i32
    %649 = arith.index_cast %648 : i32 to index
    %c0_186 = arith.constant 0 : index
    %650 = vector.load %arg19[%649, %c0_186] : memref<16x128xf32, #tpu.memory_space<vmem>>, vector<2x128xf32>
    %cst_187 = arith.constant dense<0.000000e+00> : vector<2x128xf32>
    %651 = tpu.matmul %647, %557, %cst_187 {dimension_numbers = #tpu.dot_dimension_numbers<[1], [0], [0], [1], [0, 0, 1, 1], [], []>} : vector<2x32xf32>, vector<32x128xf32>, vector<2x128xf32> -> vector<2x128xf32>
    %652 = arith.addf %650, %651 : vector<2x128xf32>
    %653 = vector.extract_strided_slice %652 {offsets = [0, 0], sizes = [2, 32], strides = [1, 1]} : vector<2x128xf32> to vector<2x32xf32>
    %654 = arith.negf %653 : vector<2x32xf32>
    %655 = math.exp %654 : vector<2x32xf32>
    %cst_188 = arith.constant 1.000000e+00 : f32
    %656 = vector.broadcast %cst_188 : f32 to vector<2x32xf32>
    %657 = arith.addf %656, %655 : vector<2x32xf32>
    %658 = arith.divf %656, %657 : vector<2x32xf32>
    %659 = vector.extract_strided_slice %652 {offsets = [0, 32], sizes = [2, 32], strides = [1, 1]} : vector<2x128xf32> to vector<2x32xf32>
    %660 = arith.negf %659 : vector<2x32xf32>
    %661 = math.exp %660 : vector<2x32xf32>
    %cst_189 = arith.constant 1.000000e+00 : f32
    %662 = vector.broadcast %cst_189 : f32 to vector<2x32xf32>
    %663 = arith.addf %662, %661 : vector<2x32xf32>
    %664 = arith.divf %662, %663 : vector<2x32xf32>
    %665 = vector.extract_strided_slice %652 {offsets = [0, 64], sizes = [2, 32], strides = [1, 1]} : vector<2x128xf32> to vector<2x32xf32>
    %666 = math.tanh %665 : vector<2x32xf32>
    %667 = vector.extract_strided_slice %652 {offsets = [0, 96], sizes = [2, 32], strides = [1, 1]} : vector<2x128xf32> to vector<2x32xf32>
    %668 = arith.negf %667 : vector<2x32xf32>
    %669 = math.exp %668 : vector<2x32xf32>
    %cst_190 = arith.constant 1.000000e+00 : f32
    %670 = vector.broadcast %cst_190 : f32 to vector<2x32xf32>
    %671 = arith.addf %670, %669 : vector<2x32xf32>
    %672 = arith.divf %670, %671 : vector<2x32xf32>
    %673 = arith.mulf %664, %645 : vector<2x32xf32>
    %674 = arith.mulf %658, %666 : vector<2x32xf32>
    %675 = arith.addf %673, %674 : vector<2x32xf32>
    %676 = math.tanh %675 : vector<2x32xf32>
    %677 = arith.mulf %672, %676 : vector<2x32xf32>
    %c4_i32_191 = arith.constant 4 : i32
    %c2_i32_192 = arith.constant 2 : i32
    %678 = arith.muli %c4_i32_191, %c2_i32_192 : i32
    %679 = arith.index_cast %678 : i32 to index
    %c0_193 = arith.constant 0 : index
    %680 = vector.load %arg19[%679, %c0_193] : memref<16x128xf32, #tpu.memory_space<vmem>>, vector<2x128xf32>
    %cst_194 = arith.constant dense<0.000000e+00> : vector<2x128xf32>
    %681 = tpu.matmul %677, %557, %cst_194 {dimension_numbers = #tpu.dot_dimension_numbers<[1], [0], [0], [1], [0, 0, 1, 1], [], []>} : vector<2x32xf32>, vector<32x128xf32>, vector<2x128xf32> -> vector<2x128xf32>
    %682 = arith.addf %680, %681 : vector<2x128xf32>
    %683 = vector.extract_strided_slice %682 {offsets = [0, 0], sizes = [2, 32], strides = [1, 1]} : vector<2x128xf32> to vector<2x32xf32>
    %684 = arith.negf %683 : vector<2x32xf32>
    %685 = math.exp %684 : vector<2x32xf32>
    %cst_195 = arith.constant 1.000000e+00 : f32
    %686 = vector.broadcast %cst_195 : f32 to vector<2x32xf32>
    %687 = arith.addf %686, %685 : vector<2x32xf32>
    %688 = arith.divf %686, %687 : vector<2x32xf32>
    %689 = vector.extract_strided_slice %682 {offsets = [0, 32], sizes = [2, 32], strides = [1, 1]} : vector<2x128xf32> to vector<2x32xf32>
    %690 = arith.negf %689 : vector<2x32xf32>
    %691 = math.exp %690 : vector<2x32xf32>
    %cst_196 = arith.constant 1.000000e+00 : f32
    %692 = vector.broadcast %cst_196 : f32 to vector<2x32xf32>
    %693 = arith.addf %692, %691 : vector<2x32xf32>
    %694 = arith.divf %692, %693 : vector<2x32xf32>
    %695 = vector.extract_strided_slice %682 {offsets = [0, 64], sizes = [2, 32], strides = [1, 1]} : vector<2x128xf32> to vector<2x32xf32>
    %696 = math.tanh %695 : vector<2x32xf32>
    %697 = vector.extract_strided_slice %682 {offsets = [0, 96], sizes = [2, 32], strides = [1, 1]} : vector<2x128xf32> to vector<2x32xf32>
    %698 = arith.negf %697 : vector<2x32xf32>
    %699 = math.exp %698 : vector<2x32xf32>
    %cst_197 = arith.constant 1.000000e+00 : f32
    %700 = vector.broadcast %cst_197 : f32 to vector<2x32xf32>
    %701 = arith.addf %700, %699 : vector<2x32xf32>
    %702 = arith.divf %700, %701 : vector<2x32xf32>
    %703 = arith.mulf %694, %675 : vector<2x32xf32>
    %704 = arith.mulf %688, %696 : vector<2x32xf32>
    %705 = arith.addf %703, %704 : vector<2x32xf32>
    %706 = math.tanh %705 : vector<2x32xf32>
    %707 = arith.mulf %702, %706 : vector<2x32xf32>
    %c5_i32_198 = arith.constant 5 : i32
    %c2_i32_199 = arith.constant 2 : i32
    %708 = arith.muli %c5_i32_198, %c2_i32_199 : i32
    %709 = arith.index_cast %708 : i32 to index
    %c0_200 = arith.constant 0 : index
    %710 = vector.load %arg19[%709, %c0_200] : memref<16x128xf32, #tpu.memory_space<vmem>>, vector<2x128xf32>
    %cst_201 = arith.constant dense<0.000000e+00> : vector<2x128xf32>
    %711 = tpu.matmul %707, %557, %cst_201 {dimension_numbers = #tpu.dot_dimension_numbers<[1], [0], [0], [1], [0, 0, 1, 1], [], []>} : vector<2x32xf32>, vector<32x128xf32>, vector<2x128xf32> -> vector<2x128xf32>
    %712 = arith.addf %710, %711 : vector<2x128xf32>
    %713 = vector.extract_strided_slice %712 {offsets = [0, 0], sizes = [2, 32], strides = [1, 1]} : vector<2x128xf32> to vector<2x32xf32>
    %714 = arith.negf %713 : vector<2x32xf32>
    %715 = math.exp %714 : vector<2x32xf32>
    %cst_202 = arith.constant 1.000000e+00 : f32
    %716 = vector.broadcast %cst_202 : f32 to vector<2x32xf32>
    %717 = arith.addf %716, %715 : vector<2x32xf32>
    %718 = arith.divf %716, %717 : vector<2x32xf32>
    %719 = vector.extract_strided_slice %712 {offsets = [0, 32], sizes = [2, 32], strides = [1, 1]} : vector<2x128xf32> to vector<2x32xf32>
    %720 = arith.negf %719 : vector<2x32xf32>
    %721 = math.exp %720 : vector<2x32xf32>
    %cst_203 = arith.constant 1.000000e+00 : f32
    %722 = vector.broadcast %cst_203 : f32 to vector<2x32xf32>
    %723 = arith.addf %722, %721 : vector<2x32xf32>
    %724 = arith.divf %722, %723 : vector<2x32xf32>
    %725 = vector.extract_strided_slice %712 {offsets = [0, 64], sizes = [2, 32], strides = [1, 1]} : vector<2x128xf32> to vector<2x32xf32>
    %726 = math.tanh %725 : vector<2x32xf32>
    %727 = vector.extract_strided_slice %712 {offsets = [0, 96], sizes = [2, 32], strides = [1, 1]} : vector<2x128xf32> to vector<2x32xf32>
    %728 = arith.negf %727 : vector<2x32xf32>
    %729 = math.exp %728 : vector<2x32xf32>
    %cst_204 = arith.constant 1.000000e+00 : f32
    %730 = vector.broadcast %cst_204 : f32 to vector<2x32xf32>
    %731 = arith.addf %730, %729 : vector<2x32xf32>
    %732 = arith.divf %730, %731 : vector<2x32xf32>
    %733 = arith.mulf %724, %705 : vector<2x32xf32>
    %734 = arith.mulf %718, %726 : vector<2x32xf32>
    %735 = arith.addf %733, %734 : vector<2x32xf32>
    %736 = math.tanh %735 : vector<2x32xf32>
    %737 = arith.mulf %732, %736 : vector<2x32xf32>
    %c6_i32_205 = arith.constant 6 : i32
    %c2_i32_206 = arith.constant 2 : i32
    %738 = arith.muli %c6_i32_205, %c2_i32_206 : i32
    %739 = arith.index_cast %738 : i32 to index
    %c0_207 = arith.constant 0 : index
    %740 = vector.load %arg19[%739, %c0_207] : memref<16x128xf32, #tpu.memory_space<vmem>>, vector<2x128xf32>
    %cst_208 = arith.constant dense<0.000000e+00> : vector<2x128xf32>
    %741 = tpu.matmul %737, %557, %cst_208 {dimension_numbers = #tpu.dot_dimension_numbers<[1], [0], [0], [1], [0, 0, 1, 1], [], []>} : vector<2x32xf32>, vector<32x128xf32>, vector<2x128xf32> -> vector<2x128xf32>
    %742 = arith.addf %740, %741 : vector<2x128xf32>
    %743 = vector.extract_strided_slice %742 {offsets = [0, 0], sizes = [2, 32], strides = [1, 1]} : vector<2x128xf32> to vector<2x32xf32>
    %744 = arith.negf %743 : vector<2x32xf32>
    %745 = math.exp %744 : vector<2x32xf32>
    %cst_209 = arith.constant 1.000000e+00 : f32
    %746 = vector.broadcast %cst_209 : f32 to vector<2x32xf32>
    %747 = arith.addf %746, %745 : vector<2x32xf32>
    %748 = arith.divf %746, %747 : vector<2x32xf32>
    %749 = vector.extract_strided_slice %742 {offsets = [0, 32], sizes = [2, 32], strides = [1, 1]} : vector<2x128xf32> to vector<2x32xf32>
    %750 = arith.negf %749 : vector<2x32xf32>
    %751 = math.exp %750 : vector<2x32xf32>
    %cst_210 = arith.constant 1.000000e+00 : f32
    %752 = vector.broadcast %cst_210 : f32 to vector<2x32xf32>
    %753 = arith.addf %752, %751 : vector<2x32xf32>
    %754 = arith.divf %752, %753 : vector<2x32xf32>
    %755 = vector.extract_strided_slice %742 {offsets = [0, 64], sizes = [2, 32], strides = [1, 1]} : vector<2x128xf32> to vector<2x32xf32>
    %756 = math.tanh %755 : vector<2x32xf32>
    %757 = vector.extract_strided_slice %742 {offsets = [0, 96], sizes = [2, 32], strides = [1, 1]} : vector<2x128xf32> to vector<2x32xf32>
    %758 = arith.negf %757 : vector<2x32xf32>
    %759 = math.exp %758 : vector<2x32xf32>
    %cst_211 = arith.constant 1.000000e+00 : f32
    %760 = vector.broadcast %cst_211 : f32 to vector<2x32xf32>
    %761 = arith.addf %760, %759 : vector<2x32xf32>
    %762 = arith.divf %760, %761 : vector<2x32xf32>
    %763 = arith.mulf %754, %735 : vector<2x32xf32>
    %764 = arith.mulf %748, %756 : vector<2x32xf32>
    %765 = arith.addf %763, %764 : vector<2x32xf32>
    %766 = math.tanh %765 : vector<2x32xf32>
    %767 = arith.mulf %762, %766 : vector<2x32xf32>
    %c7_i32_212 = arith.constant 7 : i32
    %c2_i32_213 = arith.constant 2 : i32
    %768 = arith.muli %c7_i32_212, %c2_i32_213 : i32
    %769 = arith.index_cast %768 : i32 to index
    %c0_214 = arith.constant 0 : index
    %770 = vector.load %arg19[%769, %c0_214] : memref<16x128xf32, #tpu.memory_space<vmem>>, vector<2x128xf32>
    %cst_215 = arith.constant dense<0.000000e+00> : vector<2x128xf32>
    %771 = tpu.matmul %767, %557, %cst_215 {dimension_numbers = #tpu.dot_dimension_numbers<[1], [0], [0], [1], [0, 0, 1, 1], [], []>} : vector<2x32xf32>, vector<32x128xf32>, vector<2x128xf32> -> vector<2x128xf32>
    %772 = arith.addf %770, %771 : vector<2x128xf32>
    %773 = vector.extract_strided_slice %772 {offsets = [0, 0], sizes = [2, 32], strides = [1, 1]} : vector<2x128xf32> to vector<2x32xf32>
    %774 = arith.negf %773 : vector<2x32xf32>
    %775 = math.exp %774 : vector<2x32xf32>
    %cst_216 = arith.constant 1.000000e+00 : f32
    %776 = vector.broadcast %cst_216 : f32 to vector<2x32xf32>
    %777 = arith.addf %776, %775 : vector<2x32xf32>
    %778 = arith.divf %776, %777 : vector<2x32xf32>
    %779 = vector.extract_strided_slice %772 {offsets = [0, 32], sizes = [2, 32], strides = [1, 1]} : vector<2x128xf32> to vector<2x32xf32>
    %780 = arith.negf %779 : vector<2x32xf32>
    %781 = math.exp %780 : vector<2x32xf32>
    %cst_217 = arith.constant 1.000000e+00 : f32
    %782 = vector.broadcast %cst_217 : f32 to vector<2x32xf32>
    %783 = arith.addf %782, %781 : vector<2x32xf32>
    %784 = arith.divf %782, %783 : vector<2x32xf32>
    %785 = vector.extract_strided_slice %772 {offsets = [0, 64], sizes = [2, 32], strides = [1, 1]} : vector<2x128xf32> to vector<2x32xf32>
    %786 = math.tanh %785 : vector<2x32xf32>
    %787 = vector.extract_strided_slice %772 {offsets = [0, 96], sizes = [2, 32], strides = [1, 1]} : vector<2x128xf32> to vector<2x32xf32>
    %788 = arith.negf %787 : vector<2x32xf32>
    %789 = math.exp %788 : vector<2x32xf32>
    %cst_218 = arith.constant 1.000000e+00 : f32
    %790 = vector.broadcast %cst_218 : f32 to vector<2x32xf32>
    %791 = arith.addf %790, %789 : vector<2x32xf32>
    %792 = arith.divf %790, %791 : vector<2x32xf32>
    %793 = arith.mulf %784, %765 : vector<2x32xf32>
    %794 = arith.mulf %778, %786 : vector<2x32xf32>
    %795 = arith.addf %793, %794 : vector<2x32xf32>
    %796 = math.tanh %795 : vector<2x32xf32>
    %797 = arith.mulf %792, %796 : vector<2x32xf32>
    %c8_i32_219 = arith.constant 8 : i32
    %c14 = arith.constant 14 : index
    %c0_220 = arith.constant 0 : index
    %798 = vector.load %arg17[%c14, %c0_220] : memref<16x32xf32, #tpu.memory_space<vmem>>, vector<2x32xf32>
    %c0_221 = arith.constant 0 : index
    %c0_222 = arith.constant 0 : index
    %799 = vector.load %arg9[%c0_221, %c0_222] : memref<32x128xf32, #tpu.memory_space<vmem>>, vector<32x128xf32>
    %cst_223 = arith.constant dense<0.000000e+00> : vector<2x128xf32>
    %800 = tpu.matmul %798, %799, %cst_223 {dimension_numbers = #tpu.dot_dimension_numbers<[1], [0], [0], [1], [0, 0, 1, 1], [], []>} : vector<2x32xf32>, vector<32x128xf32>, vector<2x128xf32> -> vector<2x128xf32>
    %c14_224 = arith.constant 14 : index
    %c0_225 = arith.constant 0 : index
    %801 = vector.load %arg18[%c14_224, %c0_225] : memref<16x32xf32, #tpu.memory_space<vmem>>, vector<2x32xf32>
    %c0_226 = arith.constant 0 : index
    %c0_227 = arith.constant 0 : index
    %802 = vector.load %arg10[%c0_226, %c0_227] : memref<32x128xf32, #tpu.memory_space<vmem>>, vector<32x128xf32>
    %cst_228 = arith.constant dense<0.000000e+00> : vector<2x128xf32>
    %803 = tpu.matmul %801, %802, %cst_228 {dimension_numbers = #tpu.dot_dimension_numbers<[1], [0], [0], [1], [0, 0, 1, 1], [], []>} : vector<2x32xf32>, vector<32x128xf32>, vector<2x128xf32> -> vector<2x128xf32>
    %804 = arith.addf %800, %803 : vector<2x128xf32>
    %c0_229 = arith.constant 0 : index
    %c0_230 = arith.constant 0 : index
    %805 = vector.load %arg11[%c0_229, %c0_230] : memref<1x128xf32, #tpu.memory_space<vmem>>, vector<1x128xf32>
    %806 = vector.broadcast %805 : vector<1x128xf32> to vector<2x128xf32>
    %807 = arith.addf %804, %806 : vector<2x128xf32>
    %808 = vector.extract_strided_slice %807 {offsets = [0, 0], sizes = [2, 32], strides = [1, 1]} : vector<2x128xf32> to vector<2x32xf32>
    %809 = arith.negf %808 : vector<2x32xf32>
    %810 = math.exp %809 : vector<2x32xf32>
    %cst_231 = arith.constant 1.000000e+00 : f32
    %811 = vector.broadcast %cst_231 : f32 to vector<2x32xf32>
    %812 = arith.addf %811, %810 : vector<2x32xf32>
    %813 = arith.divf %811, %812 : vector<2x32xf32>
    %814 = vector.extract_strided_slice %807 {offsets = [0, 32], sizes = [2, 32], strides = [1, 1]} : vector<2x128xf32> to vector<2x32xf32>
    %815 = arith.negf %814 : vector<2x32xf32>
    %816 = math.exp %815 : vector<2x32xf32>
    %cst_232 = arith.constant 1.000000e+00 : f32
    %817 = vector.broadcast %cst_232 : f32 to vector<2x32xf32>
    %818 = arith.addf %817, %816 : vector<2x32xf32>
    %819 = arith.divf %817, %818 : vector<2x32xf32>
    %820 = vector.extract_strided_slice %807 {offsets = [0, 64], sizes = [2, 32], strides = [1, 1]} : vector<2x128xf32> to vector<2x32xf32>
    %821 = math.tanh %820 : vector<2x32xf32>
    %822 = vector.extract_strided_slice %807 {offsets = [0, 96], sizes = [2, 32], strides = [1, 1]} : vector<2x128xf32> to vector<2x32xf32>
    %823 = arith.negf %822 : vector<2x32xf32>
    %824 = math.exp %823 : vector<2x32xf32>
    %cst_233 = arith.constant 1.000000e+00 : f32
    %825 = vector.broadcast %cst_233 : f32 to vector<2x32xf32>
    %826 = arith.addf %825, %824 : vector<2x32xf32>
    %827 = arith.divf %825, %826 : vector<2x32xf32>
    %828 = arith.mulf %819, %9 : vector<2x32xf32>
    %829 = arith.mulf %813, %821 : vector<2x32xf32>
    %830 = arith.addf %828, %829 : vector<2x32xf32>
    %831 = math.tanh %830 : vector<2x32xf32>
    %832 = arith.mulf %827, %831 : vector<2x32xf32>
    %c0_234 = arith.constant 0 : index
    %c0_235 = arith.constant 0 : index
    %833 = vector.load %arg12[%c0_234, %c0_235] : memref<32x4xf32, #tpu.memory_space<vmem>>, vector<32x4xf32>
    %cst_236 = arith.constant dense<0.000000e+00> : vector<2x4xf32>
    %834 = tpu.matmul %797, %833, %cst_236 {dimension_numbers = #tpu.dot_dimension_numbers<[1], [0], [0], [1], [0, 0, 1, 1], [], []>} : vector<2x32xf32>, vector<32x4xf32>, vector<2x4xf32> -> vector<2x4xf32>
    %c0_237 = arith.constant 0 : index
    %c0_238 = arith.constant 0 : index
    %835 = vector.load %arg13[%c0_237, %c0_238] : memref<32x4xf32, #tpu.memory_space<vmem>>, vector<32x4xf32>
    %cst_239 = arith.constant dense<0.000000e+00> : vector<2x4xf32>
    %836 = tpu.matmul %832, %835, %cst_239 {dimension_numbers = #tpu.dot_dimension_numbers<[1], [0], [0], [1], [0, 0, 1, 1], [], []>} : vector<2x32xf32>, vector<32x4xf32>, vector<2x4xf32> -> vector<2x4xf32>
    %837 = arith.addf %834, %836 : vector<2x4xf32>
    %c0_240 = arith.constant 0 : index
    %c0_241 = arith.constant 0 : index
    %838 = vector.load %arg14[%c0_240, %c0_241] : memref<1x4xf32, #tpu.memory_space<vmem>>, vector<1x4xf32>
    %839 = vector.broadcast %838 : vector<1x4xf32> to vector<2x4xf32>
    %840 = arith.addf %837, %839 : vector<2x4xf32>
    %c0_242 = arith.constant 0 : index
    %c0_243 = arith.constant 0 : index
    %841 = vector.load %arg15[%c0_242, %c0_243] : memref<2x4xf32, #tpu.memory_space<vmem>>, vector<2x4xf32>
    tpu.vector_store %arg15[%c0_242, %c0_243], %840 {strides = array<i32>} : memref<2x4xf32, #tpu.memory_space<vmem>>, vector<2x4xf32>,
    return
  }
}

</mosaic_0001>

<bundles_post_ra>
// kernel: my_bilstm_forward.1
= control target key start
LH: loop header
LB: loop body
LE: loop exit
PB: predicated region body
PF: predicated region fallthrough
CT: control target
= control target key end

     0   :  { %v4262_v5 = vmov 0.0   ;;  %vm78_vm0 = vcmask 1041408   ;;  %v4263_v8 = vmov 0.0|0.0   ;;  %vm4264_vm1 = vmmov 0   ;;  %s4929_s0 = inlined_call_operand.vmem [shape: f32[16,18], index: 0, kind: input, shape index: {}]   ;;  %s4930_s1 = inlined_call_operand.vmem [shape: f32[18,256], index: 1, kind: input, shape index: {}]   ;;  %s4931_s2 = inlined_call_operand.vmem [shape: f32[1,256], index: 2, kind: input, shape index: {}]   ;;  %s4932_s3 = inlined_call_operand.vmem [shape: f32[32,128], index: 3, kind: input, shape index: {}]   ;;  %s4933_s4 = inlined_call_operand.vmem [shape: f32[32,128], index: 4, kind: input, shape index: {}]   ;;  %s4934_s5 = inlined_call_operand.vmem [shape: f32[32,128], index: 5, kind: input, shape index: {}]   ;;  %s4935_s6 = inlined_call_operand.vmem [shape: f32[32,128], index: 6, kind: input, shape index: {}]   ;;  %s4936_s7 = inlined_call_operand.vmem [shape: f32[32,128], index: 7, kind: input, shape index: {}]   ;;  %s4937_s8 = inlined_call_operand.vmem [shape: f32[1,128], index: 8, kind: input, shape index: {}]   ;;  %s4938_s9 = inlined_call_operand.vmem [shape: f32[32,128], index: 9, kind: input, shape index: {}]   ;;  %s4939_s10 = inlined_call_operand.vmem [shape: f32[32,128], index: 10, kind: input, shape index: {}]   ;;  %s4940_s11 = inlined_call_operand.vmem [shape: f32[1,128], index: 11, kind: input, shape index: {}]   ;;  %s4941_s12 = inlined_call_operand.vmem [shape: f32[32,4], index: 12, kind: input, shape index: {}]   ;;  %s4942_s13 = inlined_call_operand.vmem [shape: f32[32,4], index: 13, kind: input, shape index: {}]   ;;  %s4943_s14 = inlined_call_operand.vmem [shape: f32[1,4], index: 14, kind: input, shape index: {}]   ;;  %s4944_s15 = inlined_call_operand.hbm [shape: f32[2,4], index: 15, kind: output, shape index: {}]  }
   0x1   :  { %v54_v0 = vld [vmem:[%s4930_s1 + $0x8] sm:$0xff]  ;;  %v56_v1 = vld [vmem:[%s4930_s1 + $0x18] sm:$0xff]  ;;  %v53_v2 = vld [vmem:[%s4930_s1] sm:$0xff]  ;;  %149 = vmatprep.mubr.f32.mxu0 %v4262_v5  ;;  %3846 = vmatprep.subr.bf16.mxu1 %v4263_v8 }
   0x2   :  { %v3842_v3 = vpack.c.bf16 %v56_v1, %v54_v0  ;;  %v55_v4 = vld [vmem:[%s4930_s1 + $0x10] sm:$0xff]  ;;  %v58_v7 = vld [vmem:[%s4930_s1 + $0x28] sm:$0x3]  ;;  %v166_v9 = vld [vmem:[%s4932_s3] sm:$0xff]  ;;  %3520 = vmatprep.mubr.msk.f32.mxu1 %vm4264_vm1, %v4262_v5 }
   0x3   :  { %v3844_v6 = vpack.c.bf16 %v55_v4, %v53_v2  ;;  %v167_v10 = vld [vmem:[%s4932_s3 + $0x8] sm:$0xff]  ;;  %v170_v12 = vld [vmem:[%s4933_s4] sm:$0xff]  ;;  %v168_v14 = vld [vmem:[%s4932_s3 + $0x10] sm:$0xff] }
   0x4   :  { %3843 = vmatprep.subr.bf16.mxu0 %v3842_v3  ;;  %v4371_v11 = vpack.c.bf16 %v167_v10, %v166_v9  ;;  %v171_v13 = vld [vmem:[%s4933_s4 + $0x8] sm:$0xff]  ;;  %v169_v15 = vld [vmem:[%s4932_s3 + $0x18] sm:$0xff]  ;;  %v57_v16 = vld [vmem:[%s4930_s1 + $0x20] sm:$0x3] }
   0x5   :  { %3845 = vmatpush1.bf16.msra.mxu0 %v3844_v6 }
   0x6   :  { %3299 = vmatprep.subr.msk.mxu0 %vm78_vm0, %v58_v7  ;;  %3848 = vmatpush3.bf16.msra.mxu1 %v4371_v11 }
   0x7   :  { %20 = vsyncpa [#allocation7], 0  ;;  %v51_v17 = vld [vmem:[%s4929_s0] sm:$0xff]  ;;  %vm71_vm2 = vcmask 146432   ;;  %v4395_v18 = vpack.c.bf16 %v171_v13, %v170_v12  ;;  %3849 = vmatprep.subr.bf16.mxu1 %v4263_v8  ;;  %v4398_v19 = vpack.c.bf16 %v169_v15, %v168_v14  ;;  %v172_v20 = vld [vmem:[%s4933_s4 + $0x10] sm:$0xff]  ;;  %v61_v24 = vlaneseq  ;;  %s4266_s18 = smov 32  }
   0x8   :  { %v173_v21 = vld [vmem:[%s4933_s4 + $0x18] sm:$0xff]  ;;  %v52_v22 = vld [vmem:[%s4929_s0 + $0x8] sm:$0xff]  ;;  %v59_v27 = vld [vmem:[%s4931_s2] sm:$0x3]  ;;  %s4265_s2 = smov 64   ;;  %vm175_vm3 = vcmask 261120  }
   0x9   :  { %3300 = vmatpush1.msk.msra.mxu0 %vm78_vm0, %v57_v16  ;;  %v4414_v23 = vpack.c.bf16 %v173_v21, %v172_v20  ;;  %v62_v25 = vshrl.u32 %v61_v24, 7  ;;  %vm377_vm4 = vcmask 254976   ;;  %vm383_vm5 = vcmask 261126  }
   0xa   :  { %3301 = vmatmul.mubr.msk.f32.vlgmr.msra.gmra.mrb[0].mxu0 %vm71_vm2, %v51_v17  ;;  %3852 = vmatprep.subr.bf16.mxu0 %v4263_v8  ;;  %vm600_vm6 = vcmask 257026   ;;  %vm606_vm7 = vcmask 259076   ;;  %vm3283_vm8 = vcmask 25600  }
   0xb   :  { %155 = vmatprep.mubr.f32.mxu0 %v4262_v5  ;;  %3854 = vmatpush3.bf16.msra.mxu0 %v4395_v18  ;;  %v63_v26 = vsub.s32 0, %v62_v25  ;;  %v67_v28 = vsub.s32 1, %v62_v25 }
   0xc   :  { %3851 = vmatpush3.bf16.msra.mxu1 %v4398_v19  ;;  %3855 = vmatprep.subr.bf16.mxu0 %v4263_v8 }
   0xd   :  { %3858 = vmatprep.subr.bf16.mxu1 %v4263_v8  ;;  %v64_v29 = vrot.slane %v59_v27, %v63_v26  ;;  %v68_v30 = vrot.slane %v59_v27, %v67_v28 }
   0xe   :  { %3302 = vmatmul.mubr.msk.f32.gmra.mrb[2].mxu0 %vm71_vm2, %v52_v22 }
   0xf   :  { %3857 = vmatpush3.bf16.msra.mxu0 %v4414_v23  ;;  %3521 = vmatmul.mubr.f32.vlgmr.msra.gmra.mrb[0].mxu1 %v4262_v5 }
  0x10   :  { %3531 = vmatprep.mubr.msk.f32.mxu0 %vm4264_vm1, %v4262_v5  ;;  %3864 = vmatprep.subr.bf16.mxu0 %v4263_v8 }
  0x11   :  { %3860 = vmatpush3.bf16.msra.mxu1 %v4371_v11  ;;  %3542 = vmatprep.mubr.msk.f32.mxu1 %vm4264_vm1, %v4262_v5 }
  0x12   :  { %3532 = vmatmul.mubr.f32.vlgmr.msra.gmra.mrb[4].mxu0 %v4262_v5  ;;  %3861 = vmatprep.subr.bf16.mxu1 %v4263_v8 }
  0x13   :  { %3866 = vmatpush3.bf16.msra.mxu0 %v4395_v18  ;;  %3553 = vmatprep.mubr.msk.f32.mxu0 %vm4264_vm1, %v4262_v5 }
  0x14   :  { %3867 = vmatprep.subr.bf16.mxu0 %v4263_v8 }
  0x15   :  { %3863 = vmatpush3.bf16.msra.mxu1 %v4398_v19 }
  0x16   :  { %3870 = vmatprep.subr.bf16.mxu1 %v4263_v8 }
  0x17   :  { %3869 = vmatpush3.bf16.msra.mxu0 %v4414_v23 }
  0x18   :  { %3876 = vmatprep.subr.bf16.mxu0 %v4263_v8 }
  0xdd   :  { %v151_v31 = vpop.f32.mrb[0].mxu0 }
  0xde   :  { %v152_v32 = vadd.f32 %v151_v31, %v64_v29  ;;  %v153_v33 = vpop.f32.mrb[1].mxu0 }
  0xdf   :  { %v154_v34 = vadd.f32 %v153_v33, %v68_v30 }
  0xe0   :  { %162 = vst [vmem:[#allocation2] sm:$0xff] %v152_v32 }
  0xe1   :  { %163 = vst [vmem:[#allocation2 + $0x8] sm:$0xff] %v154_v34  ;;  %v157_v35 = vpop.f32.mrb[2].mxu0 }
  0xe2   :  { %v158_v36 = vadd.f32 %v157_v35, %v64_v29  ;;  %v159_v37 = vpop.f32.mrb[3].mxu0  ;;  %v245_v38 = vpop.f32.mrb[0].mxu1 }
  0xe3   :  { %v160_v39 = vadd.f32 %v159_v37, %v68_v30  ;;  %v3522_v40 = vpop.f32.mrb[1].mxu1 }
  0xe4   :  { %164 = vst [vmem:[#allocation2 + $0x10] sm:$0xff] %v158_v36 }
  0xe5   :  { %165 = vst [vmem:[#allocation2 + $0x18] sm:$0xff] %v160_v39  ;;  %v341_v41 = vpop.f32.mrb[4].mxu0 }
  0xe6   :  { %v3533_v42 = vpop.f32.mrb[5].mxu0  ;;  %v346_v43 = vrot.slane %v341_v41, 2 }
  0xe7   :  { %v174_v44 = vld [vmem:[#allocation2] sm:$0x3]  ;;  %v385_v27 = vld [vmem:[#allocation2] sm:$0xc] }
  0xe8   :  { %v249_v47 = vadd.f32 %v245_v38, %v174_v44 }
  0xea   :  { %v3303_v51 = vmul.f32 -1.442695, %v249_v47 }
  0xec   :  { %v274_v45 = vld [vmem:[#allocation2 + $0x18] sm:$0xc0]  ;;  %v489_v21 = vld [vmem:[#allocation2 + $0x18] sm:$0x30] }
  0xed   :  { %v348_v46 = vadd.f32 %v346_v43, %v274_v45 }
  0xef   :  { %4038 = vtanh.f32 %v348_v46  ;;  %v3304_v50 = vmul.f32 -1.442695, %v348_v46 }
  0xf0   :  { %4040 = vtanh.f32 %v249_v47 }
  0xf1   :  { %4042 = vpow2.f32 %v3304_v50 }
  0xf2   :  { %4044 = vpow2.f32 %v3303_v51 }
  0xf9   :  { %v4039_v48 = vpop.eup %4038 }
  0xfa   :  { %358 = vrot.lane.b32.xlu0 %v4039_v48, %s4265_s2  ;;  %v4041_v49 = vpop.eup %4040 }
  0xfb   :  { %v4043_v52 = vpop.eup %4042 }
  0xfc   :  { %v352_v53 = vadd.f32 1.0, %v4043_v52  ;;  %v4045_v54 = vpop.eup %4044 }
  0xfd   :  { %v253_v55 = vadd.f32 1.0, %v4045_v54 }
  0xfe   :  { %259 = vrot.lane.b32.xlu0 %v4041_v49, %s4265_s2  ;;  %4046 = vrcp.f32 %v352_v53 }
  0xff   :  { %4048 = vrcp.f32 %v253_v55 }
 0x108   :  { %v4047_v56 = vpop.eup %4046 }
 0x109   :  { %v4049_v59 = vpop.eup %4048  ;;  %v356_v62 = vmul.f32 0.0, %v4047_v56 }
 0x10a   :  { %v257_v1 = vmul.f32 0.0, %v4049_v59 }
 0x16c   :  { %v359_v57 = vpop.permute.xlu0 %358 }
 0x16d   :  { %v361_v58 = vmul.f32 %v4047_v56, %v359_v57 }
 0x16f   :  { %363 = vrot.lane.b32.xlu1 %v361_v58, %s4266_s18 }
 0x170   :  { %v260_v60 = vpop.permute.xlu0 %259 }
 0x171   :  { %v262_v61 = vmul.f32 %v4049_v59, %v260_v60 }
 0x173   :  { %264 = vrot.lane.b32.xlu1 %v262_v61, %s4266_s18 }
 0x1e1   :  { %v364_v63 = vpop.permute.xlu1 %363 }
 0x1e2   :  { %v4445_v0 = vadd.f32 %v364_v63, %v356_v62 }
 0x1e4   :  { %4050 = vtanh.f32 %v4445_v0  ;;  %v577_v43 = vrot.slane %v4445_v0, 2  ;;  %v715_v0 = vld [vmem:[#allocation2 + $0x18] sm:$0xc] }
 0x1e5   :  { %v265_v2 = vpop.permute.xlu1 %264 }
 0x1e6   :  { %v4448_v3 = vadd.f32 %v265_v2, %v257_v1 }
 0x1e8   :  { %4052 = vtanh.f32 %v4448_v3  ;;  %v470_v45 = vrot.slane %v4448_v3, 6 }
 0x1ee   :  { %v4051_v4 = vpop.eup %4050 }
 0x1ef   :  { %369 = vrot.lane.b32.xlu0 %v4051_v4, %s4265_s2 }
 0x1f2   :  { %v4053_v6 = vpop.eup %4052 }
 0x1f3   :  { %270 = vrot.lane.b32.xlu1 %v4053_v6, %s4265_s2  ;;  %v608_v6 = vld [vmem:[#allocation2] sm:$0x30] }
 0x261   :  { %v370_v7 = vpop.permute.xlu0 %369 }
 0x262   :  { %v4453_v9 = vmul.f32 %v4047_v56, %v370_v7 }
 0x264   :  { %v490_v10 = vrot.slane %v4453_v9, 6 }
 0x265   :  { %v271_v12 = vpop.permute.xlu1 %270 }
 0x266   :  { %v273_v13 = vmul.f32 %v4049_v59, %v271_v12  ;;  %491 = vrot.lane.b32.xlu0 %v490_v10, %s4266_s18 }
 0x268   :  { %374 = vrot.lane.b32.xlu1 %v273_v13, %s4266_s18 }
 0x2d8   :  { %v492_v14 = vpop.permute.xlu0 %491 }
 0x2d9   :  { %3554 = vmatmul.mubr.msk.f32.vlgmr.msra.gmra.mrb[6].mxu0 %vm175_vm3, %v492_v14 }
 0x2da   :  { %v375_v15 = vpop.permute.xlu1 %374  ;;  %3878 = vmatpush3.bf16.msra.mxu0 %v4395_v18  ;;  %3575 = vmatprep.mubr.msk.f32.mxu0 %vm4264_vm1, %v4262_v5 }
 0x2db   :  { %378 = vst.msk [vmem:[#allocation3] sm:$0x3] %vm377_vm4, %v375_v15  ;;  %3543 = vmatmul.mubr.msk.f32.vlgmr.msra.gmra.mrb[2].mxu1 %vm175_vm3, %v375_v15  ;;  %3879 = vmatprep.subr.bf16.mxu0 %v4263_v8 }
 0x2dc   :  { %3872 = vmatpush3.bf16.msra.mxu1 %v4371_v11  ;;  %3564 = vmatprep.mubr.msk.f32.mxu1 %vm4264_vm1, %v4262_v5 }
 0x2dd   :  { %3873 = vmatprep.subr.bf16.mxu1 %v4263_v8 }
 0x2de   :  { %3881 = vmatpush3.bf16.msra.mxu0 %v4414_v23 }
 0x2df   :  { %3888 = vmatprep.subr.bf16.mxu0 %v4263_v8 }
 0x2e0   :  { %3875 = vmatpush3.bf16.msra.mxu1 %v4398_v19 }
 0x2e1   :  { %3882 = vmatprep.subr.bf16.mxu1 %v4263_v8 }
 0x3ac   :  { %v561_v16 = vpop.f32.mrb[6].mxu0 }
 0x3ad   :  { %v566_v17 = vrot.slane %v561_v16, 4  ;;  %v3555_v20 = vpop.f32.mrb[7].mxu0 }
 0x3ae   :  { %v454_v22 = vpop.f32.mrb[2].mxu1 }
 0x3af   :  { %v568_v24 = vadd.f32 %v566_v17, %v489_v21  ;;  %v459_v25 = vrot.slane %v454_v22, 6  ;;  %v3544_v26 = vpop.f32.mrb[3].mxu1 }
 0x3b1   :  { %4054 = vtanh.f32 %v568_v24  ;;  %v461_v28 = vadd.f32 %v459_v25, %v385_v27  ;;  %v3308_v31 = vmul.f32 -1.442695, %v568_v24 }
 0x3b3   :  { %4056 = vtanh.f32 %v461_v28  ;;  %v3306_v32 = vmul.f32 -1.442695, %v461_v28 }
 0x3b4   :  { %4058 = vpow2.f32 %v3308_v31 }
 0x3b5   :  { %4060 = vpow2.f32 %v3306_v32 }
 0x3bb   :  { %v4055_v29 = vpop.eup %4054 }
 0x3bc   :  { %581 = vrot.lane.b32.xlu0 %v4055_v29, %s4265_s2 }
 0x3bd   :  { %v4057_v30 = vpop.eup %4056 }
 0x3be   :  { %474 = vrot.lane.b32.xlu1 %v4057_v30, %s4265_s2  ;;  %v4059_v33 = vpop.eup %4058 }
 0x3bf   :  { %v4061_v34 = vpop.eup %4060  ;;  %v572_v35 = vadd.f32 1.0, %v4059_v33 }
 0x3c0   :  { %v465_v36 = vadd.f32 1.0, %v4061_v34 }
 0x3c1   :  { %4062 = vrcp.f32 %v572_v35 }
 0x3c2   :  { %4064 = vrcp.f32 %v465_v36 }
 0x3cb   :  { %v4063_v37 = vpop.eup %4062 }
 0x3cc   :  { %v4065_v40 = vpop.eup %4064  ;;  %v579_v44 = vmul.f32 %v4063_v37, %v577_v43 }
 0x3cd   :  { %v472_v48 = vmul.f32 %v4065_v40, %v470_v45 }
 0x42e   :  { %v582_v38 = vpop.permute.xlu0 %581 }
 0x42f   :  { %v584_v39 = vmul.f32 %v4063_v37, %v582_v38 }
 0x430   :  { %v475_v41 = vpop.permute.xlu1 %474 }
 0x431   :  { %586 = vrot.lane.b32.xlu0 %v584_v39, %s4266_s18  ;;  %v477_v42 = vmul.f32 %v4065_v40, %v475_v41 }
 0x433   :  { %479 = vrot.lane.b32.xlu1 %v477_v42, %s4266_s18 }
 0x4a3   :  { %v587_v46 = vpop.permute.xlu0 %586 }
 0x4a4   :  { %v4479_v47 = vadd.f32 %v587_v46, %v579_v44  ;;  %v939_v46 = vld [vmem:[#allocation2 + $0x18] sm:$0x3] }
 0x4a5   :  { %v480_v49 = vpop.permute.xlu1 %479 }
 0x4a6   :  { %4066 = vtanh.f32 %v4479_v47  ;;  %v4482_v50 = vadd.f32 %v480_v49, %v472_v48  ;;  %v803_v28 = vrot.slane %v4479_v47, 2 }
 0x4a8   :  { %4068 = vtanh.f32 %v4482_v50  ;;  %v696_v30 = vrot.slane %v4482_v50, 6 }
 0x4b0   :  { %v4067_v51 = vpop.eup %4066 }
 0x4b1   :  { %592 = vrot.lane.b32.xlu0 %v4067_v51, %s4265_s2 }
 0x4b2   :  { %v4069_v52 = vpop.eup %4068 }
 0x4b3   :  { %485 = vrot.lane.b32.xlu1 %v4069_v52, %s4265_s2 }
 0x523   :  { %v593_v53 = vpop.permute.xlu0 %592 }
 0x524   :  { %v4487_v54 = vmul.f32 %v4063_v37, %v593_v53  ;;  %v832_v53 = vld [vmem:[#allocation2] sm:$0xc0] }
 0x525   :  { %v486_v56 = vpop.permute.xlu1 %485 }
 0x526   :  { %v716_v55 = vrot.slane %v4487_v54, 4  ;;  %v4490_v57 = vmul.f32 %v4065_v40, %v486_v56 }
 0x528   :  { %717 = vrot.lane.b32.xlu0 %v716_v55, %s4266_s18  ;;  %v609_v58 = vrot.slane %v4490_v57, 2 }
 0x52a   :  { %610 = vrot.lane.b32.xlu1 %v609_v58, %s4266_s18 }
 0x59a   :  { %v718_v59 = vpop.permute.xlu0 %717 }
 0x59b   :  { %3576 = vmatmul.mubr.msk.f32.vlgmr.msra.gmra.mrb[8].mxu0 %vm175_vm3, %v718_v59 }
 0x59c   :  { %3890 = vmatpush3.bf16.msra.mxu0 %v4395_v18  ;;  %3597 = vmatprep.mubr.msk.f32.mxu0 %vm4264_vm1, %v4262_v5  ;;  %v611_v60 = vpop.permute.xlu1 %610 }
 0x59d   :  { %3891 = vmatprep.subr.bf16.mxu0 %v4263_v8  ;;  %3565 = vmatmul.mubr.msk.f32.vlgmr.msra.gmra.mrb[4].mxu1 %vm175_vm3, %v611_v60 }
 0x59e   :  { %3884 = vmatpush3.bf16.msra.mxu1 %v4371_v11  ;;  %3586 = vmatprep.mubr.msk.f32.mxu1 %vm4264_vm1, %v4262_v5 }
 0x59f   :  { %3885 = vmatprep.subr.bf16.mxu1 %v4263_v8 }
 0x5a0   :  { %3893 = vmatpush3.bf16.msra.mxu0 %v4414_v23 }
 0x5a1   :  { %3900 = vmatprep.subr.bf16.mxu0 %v4263_v8 }
 0x5a2   :  { %3887 = vmatpush3.bf16.msra.mxu1 %v4398_v19 }
 0x5a3   :  { %3894 = vmatprep.subr.bf16.mxu1 %v4263_v8 }
 0x66e   :  { %v787_v61 = vpop.f32.mrb[8].mxu0 }
 0x66f   :  { %v792_v62 = vrot.slane %v787_v61, 6  ;;  %v3577_v63 = vpop.f32.mrb[9].mxu0 }
 0x670   :  { %v680_v2 = vpop.f32.mrb[4].mxu1 }
 0x671   :  { %v794_v1 = vadd.f32 %v792_v62, %v715_v0  ;;  %v685_v3 = vrot.slane %v680_v2, 4  ;;  %v3566_v4 = vpop.f32.mrb[5].mxu1 }
 0x673   :  { %4070 = vtanh.f32 %v794_v1  ;;  %v687_v7 = vadd.f32 %v685_v3, %v608_v6  ;;  %v3312_v13 = vmul.f32 -1.442695, %v794_v1 }
 0x675   :  { %4072 = vtanh.f32 %v687_v7  ;;  %v3310_v14 = vmul.f32 -1.442695, %v687_v7 }
 0x676   :  { %4074 = vpow2.f32 %v3312_v13 }
 0x677   :  { %4076 = vpow2.f32 %v3310_v14 }
 0x67d   :  { %v4071_v10 = vpop.eup %4070 }
 0x67e   :  { %807 = vrot.lane.b32.xlu0 %v4071_v10, %s4265_s2 }
 0x67f   :  { %v4073_v12 = vpop.eup %4072 }
 0x680   :  { %700 = vrot.lane.b32.xlu1 %v4073_v12, %s4265_s2  ;;  %v4075_v15 = vpop.eup %4074 }
 0x681   :  { %v4077_v16 = vpop.eup %4076  ;;  %v798_v17 = vadd.f32 1.0, %v4075_v15 }
 0x682   :  { %v691_v20 = vadd.f32 1.0, %v4077_v16 }
 0x683   :  { %4078 = vrcp.f32 %v798_v17 }
 0x684   :  { %4080 = vrcp.f32 %v691_v20 }
 0x68d   :  { %v4079_v21 = vpop.eup %4078 }
 0x68e   :  { %v4081_v25 = vpop.eup %4080  ;;  %v805_v29 = vmul.f32 %v4079_v21, %v803_v28 }
 0x68f   :  { %v698_v33 = vmul.f32 %v4081_v25, %v696_v30 }
 0x6f0   :  { %v808_v22 = vpop.permute.xlu0 %807 }
 0x6f1   :  { %v810_v24 = vmul.f32 %v4079_v21, %v808_v22 }
 0x6f2   :  { %v701_v26 = vpop.permute.xlu1 %700 }
 0x6f3   :  { %812 = vrot.lane.b32.xlu0 %v810_v24, %s4266_s18  ;;  %v703_v27 = vmul.f32 %v4081_v25, %v701_v26 }
 0x6f5   :  { %705 = vrot.lane.b32.xlu1 %v703_v27, %s4266_s18 }
 0x765   :  { %v813_v31 = vpop.permute.xlu0 %812 }
 0x766   :  { %v4515_v32 = vadd.f32 %v813_v31, %v805_v29 }
 0x767   :  { %v706_v34 = vpop.permute.xlu1 %705 }
 0x768   :  { %4082 = vtanh.f32 %v4515_v32  ;;  %v4518_v35 = vadd.f32 %v706_v34, %v698_v33  ;;  %v1024_v10 = vrot.slane %v4515_v32, 2  ;;  %v1157_v34 = vld [vmem:[#allocation2 + $0x8] sm:$0xc0] }
 0x76a   :  { %4084 = vtanh.f32 %v4518_v35  ;;  %v920_v15 = vrot.slane %v4518_v35, 6 }
 0x772   :  { %v4083_v36 = vpop.eup %4082 }
 0x773   :  { %818 = vrot.lane.b32.xlu0 %v4083_v36, %s4265_s2  ;;  %v1053_v36 = vld [vmem:[#allocation2 + $0x10] sm:$0x3] }
 0x774   :  { %v4085_v37 = vpop.eup %4084 }
 0x775   :  { %711 = vrot.lane.b32.xlu1 %v4085_v37, %s4265_s2 }
 0x7e5   :  { %v819_v38 = vpop.permute.xlu0 %818 }
 0x7e6   :  { %v4523_v39 = vmul.f32 %v4079_v21, %v819_v38 }
 0x7e7   :  { %v712_v41 = vpop.permute.xlu1 %711 }
 0x7e8   :  { %v940_v40 = vrot.slane %v4523_v39, 2  ;;  %v4526_v42 = vmul.f32 %v4081_v25, %v712_v41 }
 0x7ea   :  { %941 = vrot.lane.b32.xlu0 %v940_v40, %s4266_s18  ;;  %v833_v43 = vrot.slane %v4526_v42, 4 }
 0x7ec   :  { %834 = vrot.lane.b32.xlu1 %v833_v43, %s4266_s18 }
 0x85c   :  { %v942_v44 = vpop.permute.xlu0 %941 }
 0x85d   :  { %3598 = vmatmul.mubr.msk.f32.vlgmr.msra.gmra.mrb[10].mxu0 %vm175_vm3, %v942_v44 }
 0x85e   :  { %3902 = vmatpush3.bf16.msra.mxu0 %v4395_v18  ;;  %3619 = vmatprep.mubr.msk.f32.mxu0 %vm4264_vm1, %v4262_v5  ;;  %v835_v45 = vpop.permute.xlu1 %834 }
 0x85f   :  { %3903 = vmatprep.subr.bf16.mxu0 %v4263_v8  ;;  %3587 = vmatmul.mubr.msk.f32.vlgmr.msra.gmra.mrb[6].mxu1 %vm175_vm3, %v835_v45 }
 0x860   :  { %3896 = vmatpush3.bf16.msra.mxu1 %v4371_v11  ;;  %3608 = vmatprep.mubr.msk.f32.mxu1 %vm4264_vm1, %v4262_v5 }
 0x861   :  { %3897 = vmatprep.subr.bf16.mxu1 %v4263_v8 }
 0x862   :  { %3905 = vmatpush3.bf16.msra.mxu0 %v4414_v23 }
 0x863   :  { %3912 = vmatprep.subr.bf16.mxu0 %v4263_v8 }
 0x864   :  { %3899 = vmatpush3.bf16.msra.mxu1 %v4398_v19 }
 0x865   :  { %3906 = vmatprep.subr.bf16.mxu1 %v4263_v8 }
 0x930   :  { %v1011_v47 = vpop.f32.mrb[10].mxu0 }
 0x931   :  { %v1015_v48 = vadd.f32 %v1011_v47, %v939_v46  ;;  %v3599_v49 = vpop.f32.mrb[11].mxu0 }
 0x932   :  { %v904_v50 = vpop.f32.mrb[6].mxu1 }
 0x933   :  { %4086 = vtanh.f32 %v1015_v48  ;;  %v909_v51 = vrot.slane %v904_v50, 2  ;;  %v3588_v52 = vpop.f32.mrb[7].mxu1  ;;  %v3316_v59 = vmul.f32 -1.442695, %v1015_v48 }
 0x935   :  { %v911_v55 = vadd.f32 %v909_v51, %v832_v53 }
 0x937   :  { %4088 = vtanh.f32 %v911_v55  ;;  %v3314_v60 = vmul.f32 -1.442695, %v911_v55 }
 0x938   :  { %4090 = vpow2.f32 %v3316_v59 }
 0x939   :  { %4092 = vpow2.f32 %v3314_v60 }
 0x93d   :  { %v4087_v56 = vpop.eup %4086 }
 0x93e   :  { %1028 = vrot.lane.b32.xlu0 %v4087_v56, %s4265_s2 }
 0x941   :  { %v4089_v58 = vpop.eup %4088 }
 0x942   :  { %924 = vrot.lane.b32.xlu1 %v4089_v58, %s4265_s2  ;;  %v4091_v61 = vpop.eup %4090 }
 0x943   :  { %v1019_v62 = vadd.f32 1.0, %v4091_v61  ;;  %v4093_v63 = vpop.eup %4092 }
 0x944   :  { %v915_v0 = vadd.f32 1.0, %v4093_v63 }
 0x945   :  { %4094 = vrcp.f32 %v1019_v62 }
 0x946   :  { %4096 = vrcp.f32 %v915_v0 }
 0x94f   :  { %v4095_v1 = vpop.eup %4094 }
 0x950   :  { %v4097_v4 = vpop.eup %4096  ;;  %v1026_v12 = vmul.f32 %v4095_v1, %v1024_v10 }
 0x951   :  { %v922_v16 = vmul.f32 %v4097_v4, %v920_v15 }
 0x9b0   :  { %v1029_v2 = vpop.permute.xlu0 %1028 }
 0x9b1   :  { %v1031_v3 = vmul.f32 %v4095_v1, %v1029_v2 }
 0x9b3   :  { %1033 = vrot.lane.b32.xlu0 %v1031_v3, %s4266_s18 }
 0x9b4   :  { %v925_v6 = vpop.permute.xlu1 %924 }
 0x9b5   :  { %v927_v7 = vmul.f32 %v4097_v4, %v925_v6 }
 0x9b7   :  { %929 = vrot.lane.b32.xlu1 %v927_v7, %s4266_s18 }
 0xa25   :  { %v1034_v13 = vpop.permute.xlu0 %1033 }
 0xa26   :  { %v4550_v14 = vadd.f32 %v1034_v13, %v1026_v12 }
 0xa28   :  { %4098 = vtanh.f32 %v4550_v14  ;;  %v1242_v58 = vrot.slane %v4550_v14, 2 }
 0xa29   :  { %v930_v17 = vpop.permute.xlu1 %929 }
 0xa2a   :  { %v4554_v20 = vadd.f32 %v930_v17, %v922_v16 }
 0xa2c   :  { %4100 = vtanh.f32 %v4554_v20  ;;  %v1138_v62 = vrot.slane %v4554_v20, 6  ;;  %v1375_v20 = vld [vmem:[#allocation2 + $0x8] sm:$0x30] }
 0xa32   :  { %v4099_v21 = vpop.eup %4098 }
 0xa33   :  { %1039 = vrot.lane.b32.xlu0 %v4099_v21, %s4265_s2 }
 0xa36   :  { %v4101_v22 = vpop.eup %4100 }
 0xa37   :  { %935 = vrot.lane.b32.xlu1 %v4101_v22, %s4265_s2 }
 0xaa5   :  { %v1040_v24 = vpop.permute.xlu0 %1039 }
 0xaa6   :  { %v1042_v25 = vmul.f32 %v4095_v1, %v1040_v24 }
 0xaa8   :  { %1049 = vrot.lane.b32.xlu0 %v1042_v25, %s4266_s18 }
 0xaa9   :  { %v936_v26 = vpop.permute.xlu1 %935 }
 0xaaa   :  { %v4560_v27 = vmul.f32 %v4097_v4, %v936_v26  ;;  %v1271_v26 = vld [vmem:[#allocation2 + $0x10] sm:$0xc] }
 0xaac   :  { %v1054_v28 = vrot.slane %v4560_v27, 6 }
 0xaae   :  { %1055 = vrot.lane.b32.xlu1 %v1054_v28, %s4266_s18 }
 0xb1a   :  { %v1050_v29 = vpop.permute.xlu0 %1049 }
 0xb1b   :  { %1052 = vst.msk [vmem:[#allocation4 + $0x8] sm:$0x3] %vm377_vm4, %v1050_v29  ;;  %3620 = vmatmul.mubr.msk.f32.vlgmr.msra.gmra.mrb[12].mxu0 %vm175_vm3, %v1050_v29 }
 0xb1c   :  { %3914 = vmatpush3.bf16.msra.mxu0 %v4395_v18  ;;  %3641 = vmatprep.mubr.msk.f32.mxu0 %vm4264_vm1, %v4262_v5 }
 0xb1d   :  { %3915 = vmatprep.subr.bf16.mxu0 %v4263_v8 }
 0xb20   :  { %3917 = vmatpush3.bf16.msra.mxu0 %v4414_v23  ;;  %v1056_v30 = vpop.permute.xlu1 %1055 }
 0xb21   :  { %3924 = vmatprep.subr.bf16.mxu0 %v4263_v8  ;;  %3609 = vmatmul.mubr.msk.f32.vlgmr.msra.gmra.mrb[8].mxu1 %vm175_vm3, %v1056_v30 }
 0xb22   :  { %3908 = vmatpush3.bf16.msra.mxu1 %v4371_v11  ;;  %3630 = vmatprep.mubr.msk.f32.mxu1 %vm4264_vm1, %v4262_v5 }
 0xb23   :  { %3909 = vmatprep.subr.bf16.mxu1 %v4263_v8 }
 0xb26   :  { %3911 = vmatpush3.bf16.msra.mxu1 %v4398_v19 }
 0xb27   :  { %3918 = vmatprep.subr.bf16.mxu1 %v4263_v8 }
 0xbee   :  { %v1226_v31 = vpop.f32.mrb[12].mxu0 }
 0xbef   :  { %v1231_v32 = vrot.slane %v1226_v31, 2  ;;  %v3621_v33 = vpop.f32.mrb[13].mxu0 }
 0xbf1   :  { %v1233_v35 = vadd.f32 %v1231_v32, %v1157_v34 }
 0xbf3   :  { %4102 = vtanh.f32 %v1233_v35  ;;  %v3320_v44 = vmul.f32 -1.442695, %v1233_v35 }
 0xbf4   :  { %v1125_v37 = vpop.f32.mrb[8].mxu1 }
 0xbf5   :  { %v1129_v38 = vadd.f32 %v1125_v37, %v1053_v36  ;;  %v3610_v40 = vpop.f32.mrb[9].mxu1 }
 0xbf7   :  { %4104 = vtanh.f32 %v1129_v38  ;;  %v3318_v45 = vmul.f32 -1.442695, %v1129_v38 }
 0xbf8   :  { %4106 = vpow2.f32 %v3320_v44 }
 0xbf9   :  { %4108 = vpow2.f32 %v3318_v45 }
 0xbfd   :  { %v4103_v41 = vpop.eup %4102 }
 0xbfe   :  { %1246 = vrot.lane.b32.xlu0 %v4103_v41, %s4265_s2 }
 0xc01   :  { %v4105_v43 = vpop.eup %4104 }
 0xc02   :  { %1142 = vrot.lane.b32.xlu1 %v4105_v43, %s4265_s2  ;;  %v4107_v46 = vpop.eup %4106 }
 0xc03   :  { %v1237_v47 = vadd.f32 1.0, %v4107_v46  ;;  %v4109_v48 = vpop.eup %4108 }
 0xc04   :  { %v1133_v49 = vadd.f32 1.0, %v4109_v48 }
 0xc05   :  { %4110 = vrcp.f32 %v1237_v47 }
 0xc06   :  { %4112 = vrcp.f32 %v1133_v49 }
 0xc0f   :  { %v4111_v50 = vpop.eup %4110 }
 0xc10   :  { %v4113_v53 = vpop.eup %4112  ;;  %v1244_v59 = vmul.f32 %v4111_v50, %v1242_v58 }
 0xc11   :  { %v1140_v63 = vmul.f32 %v4113_v53, %v1138_v62 }
 0xc70   :  { %v1247_v51 = vpop.permute.xlu0 %1246 }
 0xc71   :  { %v1249_v52 = vmul.f32 %v4111_v50, %v1247_v51 }
 0xc73   :  { %1251 = vrot.lane.b32.xlu0 %v1249_v52, %s4266_s18 }
 0xc74   :  { %v1143_v55 = vpop.permute.xlu1 %1142 }
 0xc75   :  { %v1145_v56 = vmul.f32 %v4113_v53, %v1143_v55 }
 0xc77   :  { %1147 = vrot.lane.b32.xlu1 %v1145_v56, %s4266_s18 }
 0xce5   :  { %v1252_v60 = vpop.permute.xlu0 %1251 }
 0xce6   :  { %v4584_v61 = vadd.f32 %v1252_v60, %v1244_v59 }
 0xce8   :  { %4114 = vtanh.f32 %v4584_v61  ;;  %v1463_v45 = vrot.slane %v4584_v61, 2 }
 0xce9   :  { %v1148_v0 = vpop.permute.xlu1 %1147 }
 0xcea   :  { %v4588_v1 = vadd.f32 %v1148_v0, %v1140_v63 }
 0xcec   :  { %4116 = vtanh.f32 %v4588_v1  ;;  %v1356_v47 = vrot.slane %v4588_v1, 6 }
 0xcf2   :  { %v4115_v2 = vpop.eup %4114 }
 0xcf3   :  { %1257 = vrot.lane.b32.xlu0 %v4115_v2, %s4265_s2 }
 0xcf6   :  { %v4117_v3 = vpop.eup %4116 }
 0xcf7   :  { %1153 = vrot.lane.b32.xlu1 %v4117_v3, %s4265_s2  ;;  %v1599_v3 = vld [vmem:[#allocation2 + $0x8] sm:$0xc] }
 0xd65   :  { %v1258_v4 = vpop.permute.xlu0 %1257 }
 0xd66   :  { %v4593_v6 = vmul.f32 %v4111_v50, %v1258_v4 }
 0xd68   :  { %v1376_v7 = vrot.slane %v4593_v6, 6 }
 0xd69   :  { %v1154_v10 = vpop.permute.xlu1 %1153 }
 0xd6a   :  { %1377 = vrot.lane.b32.xlu0 %v1376_v7, %s4266_s18  ;;  %v1156_v12 = vmul.f32 %v4113_v53, %v1154_v10 }
 0xd6c   :  { %1262 = vrot.lane.b32.xlu1 %v1156_v12, %s4266_s18 }
 0xddc   :  { %v1378_v13 = vpop.permute.xlu0 %1377 }
 0xddd   :  { %3642 = vmatmul.mubr.msk.f32.vlgmr.msra.gmra.mrb[14].mxu0 %vm175_vm3, %v1378_v13 }
 0xdde   :  { %3926 = vmatpush3.bf16.msra.mxu0 %v4395_v18  ;;  %3663 = vmatprep.mubr.msk.f32.mxu0 %vm4264_vm1, %v4262_v5  ;;  %v1263_v14 = vpop.permute.xlu1 %1262 }
 0xddf   :  { %3927 = vmatprep.subr.bf16.mxu0 %v4263_v8  ;;  %1265 = vst.msk [vmem:[#allocation3 + $0x8] sm:$0x3] %vm377_vm4, %v1263_v14  ;;  %3631 = vmatmul.mubr.msk.f32.vlgmr.msra.gmra.mrb[10].mxu1 %vm175_vm3, %v1263_v14 }
 0xde0   :  { %3920 = vmatpush3.bf16.msra.mxu1 %v4371_v11  ;;  %3652 = vmatprep.mubr.msk.f32.mxu1 %vm4264_vm1, %v4262_v5 }
 0xde1   :  { %3921 = vmatprep.subr.bf16.mxu1 %v4263_v8 }
 0xde2   :  { %3929 = vmatpush3.bf16.msra.mxu0 %v4414_v23 }
 0xde3   :  { %3936 = vmatprep.subr.bf16.mxu0 %v4263_v8 }
 0xde4   :  { %3923 = vmatpush3.bf16.msra.mxu1 %v4398_v19 }
 0xde5   :  { %3930 = vmatprep.subr.bf16.mxu1 %v4263_v8 }
 0xeb0   :  { %v1447_v15 = vpop.f32.mrb[14].mxu0 }
 0xeb1   :  { %v1452_v16 = vrot.slane %v1447_v15, 4  ;;  %v3643_v17 = vpop.f32.mrb[15].mxu0 }
 0xeb2   :  { %v1340_v22 = vpop.f32.mrb[10].mxu1 }
 0xeb3   :  { %v1454_v21 = vadd.f32 %v1452_v16, %v1375_v20  ;;  %v1345_v24 = vrot.slane %v1340_v22, 6  ;;  %v3632_v25 = vpop.f32.mrb[11].mxu1 }
 0xeb5   :  { %4118 = vtanh.f32 %v1454_v21  ;;  %v1347_v28 = vadd.f32 %v1345_v24, %v1271_v26  ;;  %v3324_v31 = vmul.f32 -1.442695, %v1454_v21 }
 0xeb7   :  { %4120 = vtanh.f32 %v1347_v28  ;;  %v3322_v32 = vmul.f32 -1.442695, %v1347_v28 }
 0xeb8   :  { %4122 = vpow2.f32 %v3324_v31 }
 0xeb9   :  { %4124 = vpow2.f32 %v3322_v32 }
 0xebf   :  { %v4119_v29 = vpop.eup %4118 }
 0xec0   :  { %1467 = vrot.lane.b32.xlu0 %v4119_v29, %s4265_s2 }
 0xec1   :  { %v4121_v30 = vpop.eup %4120 }
 0xec2   :  { %1360 = vrot.lane.b32.xlu1 %v4121_v30, %s4265_s2  ;;  %v4123_v33 = vpop.eup %4122 }
 0xec3   :  { %v4125_v34 = vpop.eup %4124  ;;  %v1458_v35 = vadd.f32 1.0, %v4123_v33 }
 0xec4   :  { %v1351_v36 = vadd.f32 1.0, %v4125_v34 }
 0xec5   :  { %4126 = vrcp.f32 %v1458_v35 }
 0xec6   :  { %4128 = vrcp.f32 %v1351_v36 }
 0xecf   :  { %v4127_v37 = vpop.eup %4126 }
 0xed0   :  { %v4129_v41 = vpop.eup %4128  ;;  %v1465_v46 = vmul.f32 %v4127_v37, %v1463_v45 }
 0xed1   :  { %v1358_v50 = vmul.f32 %v4129_v41, %v1356_v47 }
 0xf32   :  { %v1468_v38 = vpop.permute.xlu0 %1467 }
 0xf33   :  { %v1470_v40 = vmul.f32 %v4127_v37, %v1468_v38 }
 0xf34   :  { %v1361_v43 = vpop.permute.xlu1 %1360 }
 0xf35   :  { %1472 = vrot.lane.b32.xlu0 %v1470_v40, %s4266_s18  ;;  %v1363_v44 = vmul.f32 %v4129_v41, %v1361_v43 }
 0xf37   :  { %1365 = vrot.lane.b32.xlu1 %v1363_v44, %s4266_s18 }
 0xfa7   :  { %v1473_v48 = vpop.permute.xlu0 %1472 }
 0xfa8   :  { %v4619_v49 = vadd.f32 %v1473_v48, %v1465_v46 }
 0xfa9   :  { %v1366_v51 = vpop.permute.xlu1 %1365 }
 0xfaa   :  { %4130 = vtanh.f32 %v4619_v49  ;;  %v4622_v52 = vadd.f32 %v1366_v51, %v1358_v50  ;;  %v1687_v30 = vrot.slane %v4619_v49, 2  ;;  %v1823_v50 = vld [vmem:[#allocation2 + $0x8] sm:$0x3] }
 0xfac   :  { %4132 = vtanh.f32 %v4622_v52  ;;  %v1580_v32 = vrot.slane %v4622_v52, 6 }
 0xfb4   :  { %v4131_v53 = vpop.eup %4130 }
 0xfb5   :  { %1478 = vrot.lane.b32.xlu0 %v4131_v53, %s4265_s2 }
 0xfb6   :  { %v4133_v55 = vpop.eup %4132 }
 0xfb7   :  { %1371 = vrot.lane.b32.xlu1 %v4133_v55, %s4265_s2 }
0x1027   :  { %v1479_v56 = vpop.permute.xlu0 %1478 }
0x1028   :  { %v4627_v58 = vmul.f32 %v4127_v37, %v1479_v56 }
0x1029   :  { %v1372_v60 = vpop.permute.xlu1 %1371 }
0x102a   :  { %v1600_v59 = vrot.slane %v4627_v58, 4  ;;  %v4630_v61 = vmul.f32 %v4129_v41, %v1372_v60  ;;  %v1716_v60 = vld [vmem:[#allocation2 + $0x10] sm:$0xc0] }
0x102c   :  { %1601 = vrot.lane.b32.xlu0 %v1600_v59, %s4266_s18  ;;  %v1493_v62 = vrot.slane %v4630_v61, 2 }
0x102e   :  { %1494 = vrot.lane.b32.xlu1 %v1493_v62, %s4266_s18 }
0x109e   :  { %v1602_v63 = vpop.permute.xlu0 %1601 }
0x109f   :  { %3664 = vmatmul.mubr.msk.f32.vlgmr.msra.gmra.mrb[16].mxu0 %vm175_vm3, %v1602_v63 }
0x10a0   :  { %3938 = vmatpush3.bf16.msra.mxu0 %v4395_v18  ;;  %3685 = vmatprep.mubr.msk.f32.mxu0 %vm4264_vm1, %v4262_v5  ;;  %v1495_v0 = vpop.permute.xlu1 %1494 }
0x10a1   :  { %3939 = vmatprep.subr.bf16.mxu0 %v4263_v8  ;;  %3653 = vmatmul.mubr.msk.f32.vlgmr.msra.gmra.mrb[12].mxu1 %vm175_vm3, %v1495_v0 }
0x10a2   :  { %3932 = vmatpush3.bf16.msra.mxu1 %v4371_v11  ;;  %3674 = vmatprep.mubr.msk.f32.mxu1 %vm4264_vm1, %v4262_v5  ;;  %v1492_v11 = vld [vmem:[#allocation2 + $0x10] sm:$0x30] }
0x10a3   :  { %3933 = vmatprep.subr.bf16.mxu1 %v4263_v8 }
0x10a4   :  { %3941 = vmatpush3.bf16.msra.mxu0 %v4414_v23 }
0x10a5   :  { %3958 = vmatprep.subr.bf16.mxu0 %v4263_v8 }
0x10a6   :  { %3935 = vmatpush3.bf16.msra.mxu1 %v4398_v19 }
0x1172   :  { %v1671_v18 = vpop.f32.mrb[16].mxu0 }
0x1173   :  { %v1676_v1 = vrot.slane %v1671_v18, 6  ;;  %v3665_v2 = vpop.f32.mrb[17].mxu0 }
0x1174   :  { %v1564_v7 = vpop.f32.mrb[12].mxu1 }
0x1175   :  { %v1678_v4 = vadd.f32 %v1676_v1, %v1599_v3  ;;  %v1569_v10 = vrot.slane %v1564_v7, 4  ;;  %v3654_v12 = vpop.f32.mrb[13].mxu1 }
0x1177   :  { %4134 = vtanh.f32 %v1678_v4  ;;  %v1571_v13 = vadd.f32 %v1569_v10, %v1492_v11  ;;  %v3328_v15 = vmul.f32 -1.442695, %v1678_v4 }
0x1179   :  { %4136 = vtanh.f32 %v1571_v13  ;;  %v3326_v19 = vmul.f32 -1.442695, %v1571_v13 }
0x117a   :  { %4138 = vpow2.f32 %v3328_v15 }
0x117b   :  { %4140 = vpow2.f32 %v3326_v19 }
0x1181   :  { %v4135_v14 = vpop.eup %4134 }
0x1182   :  { %1691 = vrot.lane.b32.xlu0 %v4135_v14, %s4265_s2 }
0x1183   :  { %v4137_v23 = vpop.eup %4136 }
0x1184   :  { %1584 = vrot.lane.b32.xlu1 %v4137_v23, %s4265_s2  ;;  %v4139_v16 = vpop.eup %4138 }
0x1185   :  { %v4141_v17 = vpop.eup %4140  ;;  %v1682_v20 = vadd.f32 1.0, %v4139_v16 }
0x1186   :  { %v1575_v21 = vadd.f32 1.0, %v4141_v17 }
0x1187   :  { %4142 = vrcp.f32 %v1682_v20 }
0x1188   :  { %4144 = vrcp.f32 %v1575_v21 }
0x1191   :  { %v4143_v22 = vpop.eup %4142 }
0x1192   :  { %v4145_v26 = vpop.eup %4144  ;;  %v1689_v31 = vmul.f32 %v4143_v22, %v1687_v30 }
0x1193   :  { %v1582_v35 = vmul.f32 %v4145_v26, %v1580_v32 }
0x11f4   :  { %v1692_v24 = vpop.permute.xlu0 %1691 }
0x11f5   :  { %v1694_v25 = vmul.f32 %v4143_v22, %v1692_v24 }
0x11f6   :  { %v1585_v28 = vpop.permute.xlu1 %1584 }
0x11f7   :  { %1696 = vrot.lane.b32.xlu0 %v1694_v25, %s4266_s18  ;;  %v1587_v29 = vmul.f32 %v4145_v26, %v1585_v28  ;;  %v1940_v28 = vld [vmem:[%s4934_s5 + $0x8] sm:$0xff] }
0x11f9   :  { %1589 = vrot.lane.b32.xlu1 %v1587_v29, %s4266_s18 }
0x1269   :  { %v1697_v33 = vpop.permute.xlu0 %1696 }
0x126a   :  { %v1699_v34 = vadd.f32 %v1697_v33, %v1689_v31 }
0x126b   :  { %v1590_v36 = vpop.permute.xlu1 %1589 }
0x126c   :  { %4146 = vtanh.f32 %v1699_v34  ;;  %v1592_v37 = vadd.f32 %v1590_v36, %v1582_v35  ;;  %v1908_v15 = vrot.slane %v1699_v34, 2 }
0x126e   :  { %4148 = vtanh.f32 %v1592_v37  ;;  %v1804_v20 = vrot.slane %v1592_v37, 6  ;;  %v2122_v37 = vld [vmem:[%s4936_s7] sm:$0xff] }
0x1276   :  { %v4147_v38 = vpop.eup %4146 }
0x1277   :  { %1702 = vrot.lane.b32.xlu0 %v4147_v38, %s4265_s2  ;;  %v2123_v38 = vld [vmem:[%s4936_s7 + $0x8] sm:$0xff] }
0x1278   :  { %v4149_v40 = vpop.eup %4148 }
0x1279   :  { %1595 = vrot.lane.b32.xlu1 %v4149_v40, %s4265_s2  ;;  %v4722_v40 = vpack.c.bf16 %v2123_v38, %v2122_v37 }
0x12e9   :  { %v1703_v41 = vpop.permute.xlu0 %1702 }
0x12ea   :  { %v1705_v43 = vmul.f32 %v4143_v22, %v1703_v41  ;;  %v2125_v41 = vld [vmem:[%s4936_s7 + $0x18] sm:$0xff] }
0x12eb   :  { %v1596_v45 = vpop.permute.xlu1 %1595 }
0x12ec   :  { %v1824_v44 = vrot.slane %v1705_v43, 2  ;;  %v4656_v46 = vmul.f32 %v4145_v26, %v1596_v45 }
0x12ee   :  { %1825 = vrot.lane.b32.xlu0 %v1824_v44, %s4266_s18  ;;  %v1717_v47 = vrot.slane %v4656_v46, 4 }
0x12f0   :  { %1718 = vrot.lane.b32.xlu1 %v1717_v47, %s4266_s18 }
0x1360   :  { %v1826_v48 = vpop.permute.xlu0 %1825 }
0x1361   :  { %3686 = vmatmul.mubr.msk.f32.vlgmr.msra.gmra.mrb[18].mxu0 %vm175_vm3, %v1826_v48 }
0x1362   :  { %3718 = vmatprep.mubr.msk.f32.mxu0 %vm4264_vm1, %v4262_v5  ;;  %v1719_v49 = vpop.permute.xlu1 %1718  ;;  %3960 = vmatpush3.bf16.msra.mxu0 %v4722_v40 }
0x1363   :  { %3675 = vmatmul.mubr.msk.f32.vlgmr.msra.gmra.mrb[14].mxu1 %vm175_vm3, %v1719_v49  ;;  %3961 = vmatprep.subr.bf16.mxu0 %v4263_v8 }
0x1434   :  { %v1895_v51 = vpop.f32.mrb[18].mxu0 }
0x1435   :  { %v1899_v52 = vadd.f32 %v1895_v51, %v1823_v50  ;;  %v3687_v53 = vpop.f32.mrb[19].mxu0  ;;  %v1941_v51 = vld [vmem:[%s4934_s5 + $0x10] sm:$0xff] }
0x1436   :  { %v1788_v55 = vpop.f32.mrb[14].mxu1 }
0x1437   :  { %4150 = vtanh.f32 %v1899_v52  ;;  %v1793_v56 = vrot.slane %v1788_v55, 2  ;;  %v3676_v59 = vpop.f32.mrb[15].mxu1  ;;  %v3332_v18 = vmul.f32 -1.442695, %v1899_v52  ;;  %v1942_v52 = vld [vmem:[%s4934_s5 + $0x18] sm:$0xff] }
0x1439   :  { %v1795_v62 = vadd.f32 %v1793_v56, %v1716_v60  ;;  %v3954_v56 = vpack.c.bf16 %v1942_v52, %v1941_v51 }
0x143b   :  { %4152 = vtanh.f32 %v1795_v62  ;;  %v3330_v1 = vmul.f32 -1.442695, %v1795_v62 }
0x143c   :  { %4154 = vpow2.f32 %v3332_v18 }
0x143d   :  { %4156 = vpow2.f32 %v3330_v1  ;;  %v3337_v1 = vld [vmem:[%s4937_s8] ss:$0 sm:$0xff] }
0x1441   :  { %v4151_v63 = vpop.eup %4150 }
0x1442   :  { %1912 = vrot.lane.b32.xlu0 %v4151_v63, %s4265_s2 }
0x1445   :  { %v4153_v0 = vpop.eup %4152 }
0x1446   :  { %1808 = vrot.lane.b32.xlu1 %v4153_v0, %s4265_s2  ;;  %v4155_v2 = vpop.eup %4154 }
0x1447   :  { %v1903_v3 = vadd.f32 1.0, %v4155_v2  ;;  %v4157_v4 = vpop.eup %4156 }
0x1448   :  { %v1799_v7 = vadd.f32 1.0, %v4157_v4 }
0x1449   :  { %4158 = vrcp.f32 %v1903_v3 }
0x144a   :  { %4160 = vrcp.f32 %v1799_v7 }
0x1453   :  { %v4159_v10 = vpop.eup %4158 }
0x1454   :  { %v4161_v13 = vpop.eup %4160  ;;  %v1910_v19 = vmul.f32 %v4159_v10, %v1908_v15 }
0x1455   :  { %v1806_v21 = vmul.f32 %v4161_v13, %v1804_v20 }
0x14b4   :  { %v1913_v12 = vpop.permute.xlu0 %1912 }
0x14b5   :  { %v1915_v11 = vmul.f32 %v4159_v10, %v1913_v12 }
0x14b7   :  { %1917 = vrot.lane.b32.xlu0 %v1915_v11, %s4266_s18 }
0x14b8   :  { %v1809_v14 = vpop.permute.xlu1 %1808 }
0x14b9   :  { %v1811_v23 = vmul.f32 %v4161_v13, %v1809_v14 }
0x14bb   :  { %1813 = vrot.lane.b32.xlu1 %v1811_v23, %s4266_s18 }
0x1529   :  { %v1918_v16 = vpop.permute.xlu0 %1917 }
0x152a   :  { %v1920_v17 = vadd.f32 %v1918_v16, %v1910_v19 }
0x152c   :  { %4162 = vtanh.f32 %v1920_v17 }
0x152d   :  { %v1814_v22 = vpop.permute.xlu1 %1813 }
0x152e   :  { %v1816_v24 = vadd.f32 %v1814_v22, %v1806_v21 }
0x1530   :  { %4164 = vtanh.f32 %v1816_v24 }
0x1536   :  { %v4163_v25 = vpop.eup %4162 }
0x1537   :  { %1923 = vrot.lane.b32.xlu0 %v4163_v25, %s4265_s2 }
0x153a   :  { %v4165_v26 = vpop.eup %4164 }
0x153b   :  { %1267 = vrot.lane.b32.xlu0 %v4593_v6, %s4266_s18  ;;  %1819 = vrot.lane.b32.xlu1 %v4165_v26, %s4265_s2  ;;  %v1945_v6 = vld [vmem:[%s4935_s6] sm:$0xff] }
0x153f   :  { %1712 = vrot.lane.b32.xlu0 %v1705_v43, %s4266_s18  ;;  %1488 = vrot.lane.b32.xlu1 %v4627_v58, %s4266_s18 }
0x1543   :  { %380 = vrot.lane.b32.xlu0 %v4453_v9, %s4266_s18  ;;  %603 = vrot.lane.b32.xlu1 %v4487_v54, %s4266_s18  ;;  %v1946_v9 = vld [vmem:[%s4935_s6 + $0x8] sm:$0xff]  ;;  %v1947_v54 = vld [vmem:[%s4935_s6 + $0x10] sm:$0xff] }
0x1544   :  { %v3942_v58 = vpack.c.bf16 %v1946_v9, %v1945_v6 }
0x1546   :  { %3943 = vmatprep.subr.bf16.mxu1 %v3942_v58 }
0x1547   :  { %828 = vrot.lane.b32.xlu0 %v4523_v39, %s4266_s18  ;;  %3945 = vmatpush3.bf16.msra.mxu1 %v3942_v58  ;;  %v1948_v39 = vld [vmem:[%s4935_s6 + $0x18] sm:$0xff] }
0x154b   :  { %823 = vrot.lane.b32.xlu0 %v4526_v42, %s4266_s18  ;;  %v3946_v42 = vpack.c.bf16 %v1948_v39, %v1947_v54 }
0x154d   :  { %3947 = vmatprep.subr.bf16.mxu1 %v3946_v42 }
0x154e   :  { %3949 = vmatpush3.bf16.msra.mxu1 %v3946_v42 }
0x154f   :  { %1483 = vrot.lane.b32.xlu0 %v4630_v61, %s4266_s18  ;;  %v1939_v61 = vld [vmem:[%s4934_s5] sm:$0xff] }
0x1550   :  { %v3950_v30 = vpack.c.bf16 %v1940_v28, %v1939_v61 }
0x1552   :  { %3951 = vmatprep.subr.bf16.mxu1 %v3950_v30 }
0x15a9   :  { %v1924_v29 = vpop.permute.xlu0 %1923 }
0x15aa   :  { %v1926_v31 = vmul.f32 %v4159_v10, %v1924_v29 }
0x15ac   :  { %1933 = vrot.lane.b32.xlu1 %v1926_v31, %s4266_s18 }
0x15ad   :  { %v1268_v32 = vpop.permute.xlu0 %1267  ;;  %v1820_v33 = vpop.permute.xlu1 %1819 }
0x15ae   :  { %1270 = vst.msk [vmem:[#allocation4] sm:$0xc0] %vm383_vm5, %v1268_v32  ;;  %v1822_v34 = vmul.f32 %v4161_v13, %v1820_v33 }
0x15b0   :  { %597 = vrot.lane.b32.xlu1 %v4490_v57, %s4266_s18  ;;  %1928 = vrot.lane.b32.xlu0 %v1822_v34, %s4266_s18  ;;  %v2124_v57 = vld [vmem:[%s4936_s7 + $0x10] sm:$0xff] }
0x15b1   :  { %v1713_v35 = vpop.permute.xlu0 %1712  ;;  %v1489_v36 = vpop.permute.xlu1 %1488  ;;  %v4729_v45 = vpack.c.bf16 %v2125_v41, %v2124_v57 }
0x15b2   :  { %1715 = vst.msk [vmem:[#allocation4] sm:$0xc] %vm600_vm6, %v1713_v35 }
0x15b3   :  { %1491 = vst.msk [vmem:[#allocation4] sm:$0x30] %vm606_vm7, %v1489_v36  ;;  %3963 = vmatpush3.bf16.msra.mxu0 %v4729_v45 }
0x15b4   :  { %1044 = vrot.lane.b32.xlu1 %v4560_v27, %s4266_s18  ;;  %3964 = vmatprep.subr.bf16.mxu0 %v4263_v8 }
0x15b5   :  { %v381_v43 = vpop.permute.xlu0 %380  ;;  %v604_v44 = vpop.permute.xlu1 %603 }
0x15b6   :  { %384 = vst.msk [vmem:[#allocation4 + $0x8] sm:$0xc0] %vm383_vm5, %v381_v43  ;;  %3719 = vmatmul.mubr.f32.vlgmr.msra.gmra.mrb[20].mxu0 %v4262_v5 }
0x15b7   :  { %607 = vst.msk [vmem:[#allocation4 + $0x8] sm:$0x30] %vm606_vm7, %v604_v44  ;;  %3966 = vmatpush3.bf16.msra.mxu0 %v4722_v40  ;;  %3729 = vmatprep.mubr.msk.f32.mxu0 %vm4264_vm1, %v4262_v5 }
0x15b8   :  { %1707 = vrot.lane.b32.xlu1 %v4656_v46, %s4266_s18  ;;  %3967 = vmatprep.subr.bf16.mxu0 %v4263_v8 }
0x15b9   :  { %v829_v27 = vpop.permute.xlu0 %828 }
0x15ba   :  { %831 = vst.msk [vmem:[#allocation4 + $0x8] sm:$0xc] %vm600_vm6, %v829_v27 }
0x15bb   :  { %3969 = vmatpush3.bf16.msra.mxu0 %v4729_v45 }
0x15bc   :  { %3976 = vmatprep.subr.bf16.mxu0 %v4263_v8 }
0x15bd   :  { %v824_v47 = vpop.permute.xlu0 %823 }
0x15be   :  { %826 = vst.msk [vmem:[#allocation3] sm:$0x30] %vm606_vm7, %v824_v47 }
0x15c1   :  { %v1484_v46 = vpop.permute.xlu0 %1483  ;;  %v1944_v59 = vld [vmem:[#allocation4 + $0x8] sm:$0xff] }
0x15c2   :  { %1486 = vst.msk [vmem:[#allocation3 + $0x8] sm:$0xc] %vm600_vm6, %v1484_v46 }
0x161e   :  { %v1934_v48 = vpop.permute.xlu1 %1933 }
0x161f   :  { %1936 = vst.msk [vmem:[#allocation4] sm:$0x3] %vm377_vm4, %v1934_v48 }
0x1622   :  { %v598_v49 = vpop.permute.xlu1 %597  ;;  %v1929_v50 = vpop.permute.xlu0 %1928 }
0x1623   :  { %601 = vst.msk [vmem:[#allocation3] sm:$0xc] %vm600_vm6, %v598_v49 }
0x1624   :  { %1931 = vst.msk [vmem:[#allocation3 + $0x8] sm:$0xc0] %vm383_vm5, %v1929_v50 }
0x1626   :  { %v1045_v53 = vpop.permute.xlu1 %1044  ;;  %v1943_v55 = vld [vmem:[#allocation4] sm:$0xff] }
0x1627   :  { %1047 = vst.msk [vmem:[#allocation3] sm:$0xc0] %vm383_vm5, %v1045_v53  ;;  %3696 = vmatprep.mubr.msk.f32.mxu1 %vm175_vm3, %v1943_v55 }
0x1628   :  { %3697 = vmatmul.mubr.msk.f32.vlgmr.msra.gmra.mrb[16].mxu1 %vm175_vm3, %v1944_v59 }
0x1629   :  { %3953 = vmatpush3.bf16.msra.mxu1 %v3950_v30 }
0x162a   :  { %v1708_v60 = vpop.permute.xlu1 %1707  ;;  %3955 = vmatprep.subr.bf16.mxu1 %v3954_v56 }
0x162b   :  { %1710 = vst.msk [vmem:[#allocation3 + $0x8] sm:$0x30] %vm606_vm7, %v1708_v60 }
0x162d   :  { %3957 = vmatpush3.bf16.msra.mxu1 %v3954_v56 }
0x162e   :  { %v1937_v62 = vld [vmem:[#allocation3] sm:$0xff]  ;;  %3970 = vmatprep.subr.bf16.mxu1 %v4263_v8 }
0x162f   :  { %3707 = vmatprep.mubr.msk.f32.mxu1 %vm175_vm3, %v1937_v62 }
0x1632   :  { %v1938_v63 = vld [vmem:[#allocation3 + $0x8] sm:$0xff] }
0x1633   :  { %3708 = vmatmul.mubr.msk.f32.vlgmr.msra.gmra.mrb[16].mxu1 %vm175_vm3, %v1938_v63 }
0x1634   :  { %3972 = vmatpush3.bf16.msra.mxu1 %v4722_v40  ;;  %3740 = vmatprep.mubr.msk.f32.mxu1 %vm4264_vm1, %v4262_v5 }
0x1635   :  { %3973 = vmatprep.subr.bf16.mxu1 %v4263_v8 }
0x1638   :  { %3975 = vmatpush3.bf16.msra.mxu1 %v4729_v45 }
0x1639   :  { %3982 = vmatprep.subr.bf16.mxu1 %v4263_v8 }
0x1689   :  { %v2193_v0 = vpop.f32.mrb[20].mxu0 }
0x168a   :  { %v3720_v18 = vpop.f32.mrb[21].mxu0 }
0x1706   :  { %v3709_v2 = vpop.f32.mrb[16].mxu1 }
0x1707   :  { %v2119_v3 = vadd.f32 %v3709_v2, %v3337_v1  ;;  %v2102_v4 = vpop.f32.mrb[17].mxu1 }
0x1708   :  { %v2118_v7 = vadd.f32 %v3337_v1, %v2102_v4 }
0x1709   :  { %2121 = vst [vmem:[#allocation5 + $0x8] sm:$0xff] %v2119_v3 }
0x170a   :  { %2120 = vst [vmem:[#allocation5] sm:$0xff] %v2118_v7 }
0x1711   :  { %v2126_v10 = vld [vmem:[#allocation5] sm:$0x3]  ;;  %v2222_v6 = vld [vmem:[#allocation5 + $0x2] sm:$0x3]  ;;  %v2323_v57 = vld [vmem:[#allocation5 + $0x4] sm:$0x3] }
0x1712   :  { %v2197_v12 = vadd.f32 %v2193_v0, %v2126_v10  ;;  %v2424_v63 = vld [vmem:[#allocation5 + $0x6] sm:$0x3] }
0x1714   :  { %4166 = vtanh.f32 %v2197_v12  ;;  %v3338_v13 = vmul.f32 -1.442695, %v2197_v12 }
0x1716   :  { %4168 = vpow2.f32 %v3338_v13 }
0x171e   :  { %v4167_v11 = vpop.eup %4166 }
0x171f   :  { %2207 = vrot.lane.b32.xlu1 %v4167_v11, %s4265_s2 }
0x1720   :  { %v4169_v14 = vpop.eup %4168 }
0x1721   :  { %v2201_v23 = vadd.f32 1.0, %v4169_v14 }
0x1723   :  { %4170 = vrcp.f32 %v2201_v23 }
0x172d   :  { %v4171_v15 = vpop.eup %4170 }
0x172e   :  { %v2205_v17 = vmul.f32 0.0, %v4171_v15 }
0x1791   :  { %v2208_v19 = vpop.permute.xlu1 %2207 }
0x1792   :  { %v2210_v16 = vmul.f32 %v4171_v15, %v2208_v19 }
0x1794   :  { %2212 = vrot.lane.b32.xlu0 %v2210_v16, %s4266_s18 }
0x1806   :  { %v2213_v20 = vpop.permute.xlu0 %2212 }
0x1807   :  { %v2215_v21 = vadd.f32 %v2213_v20, %v2205_v17  ;;  %v2525_v20 = vld [vmem:[#allocation5 + $0x8] sm:$0x3] }
0x1809   :  { %4172 = vtanh.f32 %v2215_v21 }
0x1813   :  { %v4173_v22 = vpop.eup %4172 }
0x1814   :  { %2218 = vrot.lane.b32.xlu1 %v4173_v22, %s4265_s2 }
0x1886   :  { %v2219_v24 = vpop.permute.xlu1 %2218 }
0x1887   :  { %v2221_v25 = vmul.f32 %v4171_v15, %v2219_v24 }
0x1889   :  { %2224 = vrot.lane.b32.xlu0 %v2221_v25, %s4266_s18 }
0x18fb   :  { %v2225_v26 = vpop.permute.xlu0 %2224 }
0x18fc   :  { %3730 = vmatmul.mubr.msk.f32.vlgmr.msra.gmra.mrb[22].mxu0 %vm175_vm3, %v2225_v26 }
0x18fd   :  { %3978 = vmatpush3.bf16.msra.mxu0 %v4722_v40  ;;  %3751 = vmatprep.mubr.msk.f32.mxu0 %vm4264_vm1, %v4262_v5 }
0x18fe   :  { %3979 = vmatprep.subr.bf16.mxu0 %v4263_v8 }
0x1901   :  { %3981 = vmatpush3.bf16.msra.mxu0 %v4729_v45 }
0x1902   :  { %3988 = vmatprep.subr.bf16.mxu0 %v4263_v8 }
0x19cf   :  { %v2294_v9 = vpop.f32.mrb[22].mxu0 }
0x19d0   :  { %v2298_v58 = vadd.f32 %v2294_v9, %v2222_v6  ;;  %v3731_v54 = vpop.f32.mrb[23].mxu0 }
0x19d2   :  { %4174 = vtanh.f32 %v2298_v58  ;;  %v3340_v42 = vmul.f32 -1.442695, %v2298_v58 }
0x19d4   :  { %4176 = vpow2.f32 %v3340_v42 }
0x19dc   :  { %v4175_v39 = vpop.eup %4174 }
0x19dd   :  { %2308 = vrot.lane.b32.xlu1 %v4175_v39, %s4265_s2 }
0x19de   :  { %v4177_v61 = vpop.eup %4176 }
0x19df   :  { %v2302_v28 = vadd.f32 1.0, %v4177_v61 }
0x19e1   :  { %4178 = vrcp.f32 %v2302_v28 }
0x19eb   :  { %v4179_v29 = vpop.eup %4178 }
0x19ec   :  { %v2306_v32 = vmul.f32 %v4179_v29, %v2215_v21 }
0x1a4f   :  { %v2309_v30 = vpop.permute.xlu1 %2308 }
0x1a50   :  { %v2311_v31 = vmul.f32 %v4179_v29, %v2309_v30 }
0x1a52   :  { %2313 = vrot.lane.b32.xlu0 %v2311_v31, %s4266_s18 }
0x1ac4   :  { %v2314_v33 = vpop.permute.xlu0 %2313 }
0x1ac5   :  { %v2316_v34 = vadd.f32 %v2314_v33, %v2306_v32  ;;  %v2626_v33 = vld [vmem:[#allocation5 + $0xa] sm:$0x3] }
0x1ac7   :  { %4180 = vtanh.f32 %v2316_v34 }
0x1ad1   :  { %v4181_v35 = vpop.eup %4180 }
0x1ad2   :  { %2319 = vrot.lane.b32.xlu1 %v4181_v35, %s4265_s2 }
0x1b44   :  { %v2320_v36 = vpop.permute.xlu1 %2319 }
0x1b45   :  { %v2322_v37 = vmul.f32 %v4179_v29, %v2320_v36 }
0x1b47   :  { %2325 = vrot.lane.b32.xlu0 %v2322_v37, %s4266_s18 }
0x1bb9   :  { %v2326_v38 = vpop.permute.xlu0 %2325 }
0x1bba   :  { %3741 = vmatmul.mubr.msk.f32.vlgmr.msra.gmra.mrb[18].mxu1 %vm175_vm3, %v2326_v38 }
0x1bbb   :  { %3984 = vmatpush3.bf16.msra.mxu1 %v4722_v40  ;;  %3762 = vmatprep.mubr.msk.f32.mxu1 %vm4264_vm1, %v4262_v5 }
0x1bbc   :  { %3985 = vmatprep.subr.bf16.mxu1 %v4263_v8 }
0x1bbf   :  { %3987 = vmatpush3.bf16.msra.mxu1 %v4729_v45 }
0x1bc0   :  { %3994 = vmatprep.subr.bf16.mxu1 %v4263_v8 }
0x1c8d   :  { %v2395_v41 = vpop.f32.mrb[18].mxu1 }
0x1c8e   :  { %v2399_v43 = vadd.f32 %v2395_v41, %v2323_v57  ;;  %v3742_v44 = vpop.f32.mrb[19].mxu1 }
0x1c90   :  { %4182 = vtanh.f32 %v2399_v43  ;;  %v3342_v47 = vmul.f32 -1.442695, %v2399_v43 }
0x1c92   :  { %4184 = vpow2.f32 %v3342_v47 }
0x1c9a   :  { %v4183_v27 = vpop.eup %4182 }
0x1c9b   :  { %2409 = vrot.lane.b32.xlu1 %v4183_v27, %s4265_s2 }
0x1c9c   :  { %v4185_v46 = vpop.eup %4184 }
0x1c9d   :  { %v2403_v48 = vadd.f32 1.0, %v4185_v46 }
0x1c9f   :  { %4186 = vrcp.f32 %v2403_v48 }
0x1ca9   :  { %v4187_v49 = vpop.eup %4186 }
0x1caa   :  { %v2407_v52 = vmul.f32 %v4187_v49, %v2316_v34 }
0x1d0d   :  { %v2410_v50 = vpop.permute.xlu1 %2409 }
0x1d0e   :  { %v2412_v51 = vmul.f32 %v4187_v49, %v2410_v50  ;;  %v2935_v50 = vld [vmem:[%s4939_s10] sm:$0xff] }
0x1d10   :  { %2414 = vrot.lane.b32.xlu0 %v2412_v51, %s4266_s18  ;;  %v2936_v51 = vld [vmem:[%s4939_s10 + $0x8] sm:$0xff] }
0x1d82   :  { %v2415_v53 = vpop.permute.xlu0 %2414 }
0x1d83   :  { %v2417_v55 = vadd.f32 %v2415_v53, %v2407_v52  ;;  %v4007_v52 = vpack.c.bf16 %v2936_v51, %v2935_v50  ;;  %v2937_v53 = vld [vmem:[%s4939_s10 + $0x10] sm:$0xff] }
0x1d85   :  { %4188 = vtanh.f32 %v2417_v55 }
0x1d8f   :  { %v4189_v56 = vpop.eup %4188 }
0x1d90   :  { %2420 = vrot.lane.b32.xlu1 %v4189_v56, %s4265_s2 }
0x1e02   :  { %v2421_v59 = vpop.permute.xlu1 %2420 }
0x1e03   :  { %v2423_v60 = vmul.f32 %v4187_v49, %v2421_v59 }
0x1e05   :  { %2426 = vrot.lane.b32.xlu0 %v2423_v60, %s4266_s18  ;;  %v2934_v60 = vld [vmem:[#allocation4 + $0xe] sm:$0x3] }
0x1e77   :  { %v2427_v62 = vpop.permute.xlu0 %2426 }
0x1e78   :  { %3752 = vmatmul.mubr.msk.f32.vlgmr.msra.gmra.mrb[24].mxu0 %vm175_vm3, %v2427_v62  ;;  %v2727_v62 = vld [vmem:[#allocation5 + $0xc] sm:$0x3] }
0x1e79   :  { %3990 = vmatpush3.bf16.msra.mxu0 %v4722_v40  ;;  %3773 = vmatprep.mubr.msk.f32.mxu0 %vm4264_vm1, %v4262_v5 }
0x1e7a   :  { %3991 = vmatprep.subr.bf16.mxu0 %v4263_v8 }
0x1e7d   :  { %3993 = vmatpush3.bf16.msra.mxu0 %v4729_v45 }
0x1e7e   :  { %4000 = vmatprep.subr.bf16.mxu0 %v4263_v8 }
0x1f4b   :  { %v2496_v0 = vpop.f32.mrb[24].mxu0 }
0x1f4c   :  { %v2500_v18 = vadd.f32 %v2496_v0, %v2424_v63  ;;  %v3753_v1 = vpop.f32.mrb[25].mxu0 }
0x1f4e   :  { %4190 = vtanh.f32 %v2500_v18  ;;  %v3344_v3 = vmul.f32 -1.442695, %v2500_v18 }
0x1f50   :  { %4192 = vpow2.f32 %v3344_v3 }
0x1f58   :  { %v4191_v2 = vpop.eup %4190 }
0x1f59   :  { %2510 = vrot.lane.b32.xlu1 %v4191_v2, %s4265_s2 }
0x1f5a   :  { %v4193_v4 = vpop.eup %4192 }
0x1f5b   :  { %v2504_v7 = vadd.f32 1.0, %v4193_v4 }
0x1f5d   :  { %4194 = vrcp.f32 %v2504_v7 }
0x1f67   :  { %v4195_v10 = vpop.eup %4194 }
0x1f68   :  { %v2508_v13 = vmul.f32 %v4195_v10, %v2417_v55  ;;  %v2938_v55 = vld [vmem:[%s4939_s10 + $0x18] sm:$0xff]  ;;  %s4267_s10 = smov [#allocation6]  }
0x1f69   :  { %v4010_v59 = vpack.c.bf16 %v2938_v55, %v2937_v53  ;;  %v3118_v53 = vld [vmem:[%s4941_s12 + $0x8] sm:$0xff]  ;;  %v3119_v55 = vld [vmem:[%s4941_s12 + $0x10] sm:$0xff]  ;;  %s3291_s6 = sshll.u32 %s4267_s10, 4  ;;  %s3292_s6 = int_to_ptr.vmem [resolvable:$true] %s3291_s6 }
0x1f6a   :  { %p4243_p1 = scmp.lt.s32.totalorder %s3292_s6, %s3292_s6 }
0x1fcb   :  { %v2511_v12 = vpop.permute.xlu1 %2510 }
0x1fcc   :  { %v2513_v11 = vmul.f32 %v4195_v10, %v2511_v12 }
0x1fce   :  { %2515 = vrot.lane.b32.xlu0 %v2513_v11, %s4266_s18 }
0x2040   :  { %v2516_v14 = vpop.permute.xlu0 %2515 }
0x2041   :  { %v2518_v23 = vadd.f32 %v2516_v14, %v2508_v13 }
0x2043   :  { %4196 = vtanh.f32 %v2518_v23 }
0x204d   :  { %v4197_v15 = vpop.eup %4196 }
0x204e   :  { %2521 = vrot.lane.b32.xlu1 %v4197_v15, %s4265_s2 }
0x20c0   :  { %v2522_v19 = vpop.permute.xlu1 %2521 }
0x20c1   :  { %v2524_v16 = vmul.f32 %v4195_v10, %v2522_v19 }
0x20c3   :  { %2527 = vrot.lane.b32.xlu0 %v2524_v16, %s4266_s18 }
0x2135   :  { %v2528_v17 = vpop.permute.xlu0 %2527 }
0x2136   :  { %3763 = vmatmul.mubr.msk.f32.vlgmr.msra.gmra.mrb[20].mxu1 %vm175_vm3, %v2528_v17 }
0x2137   :  { %3996 = vmatpush3.bf16.msra.mxu1 %v4722_v40  ;;  %3784 = vmatprep.mubr.msk.f32.mxu1 %vm4264_vm1, %v4262_v5 }
0x2138   :  { %3997 = vmatprep.subr.bf16.mxu1 %v4263_v8 }
0x213b   :  { %3999 = vmatpush3.bf16.msra.mxu1 %v4729_v45 }
0x213c   :  { %4006 = vmatprep.subr.bf16.mxu1 %v4263_v8 }
0x2209   :  { %v2597_v21 = vpop.f32.mrb[20].mxu1 }
0x220a   :  { %v2601_v22 = vadd.f32 %v2597_v21, %v2525_v20  ;;  %v3764_v24 = vpop.f32.mrb[21].mxu1  ;;  %v2930_v20 = vld [vmem:[%s4938_s9] sm:$0xff]  ;;  %v2931_v21 = vld [vmem:[%s4938_s9 + $0x8] sm:$0xff] }
0x220b   :  { %v2932_v24 = vld [vmem:[%s4938_s9 + $0x10] sm:$0xff] }
0x220c   :  { %4198 = vtanh.f32 %v2601_v22  ;;  %v3346_v26 = vmul.f32 -1.442695, %v2601_v22  ;;  %v4013_v22 = vpack.c.bf16 %v2931_v21, %v2930_v20 }
0x220e   :  { %4200 = vpow2.f32 %v3346_v26 }
0x2216   :  { %v4199_v25 = vpop.eup %4198 }
0x2217   :  { %2611 = vrot.lane.b32.xlu1 %v4199_v25, %s4265_s2  ;;  %v2933_v25 = vld [vmem:[%s4938_s9 + $0x18] sm:$0xff] }
0x2218   :  { %v4201_v6 = vpop.eup %4200 }
0x2219   :  { %v2605_v9 = vadd.f32 1.0, %v4201_v6  ;;  %v4016_v6 = vpack.c.bf16 %v2933_v25, %v2932_v24 }
0x221b   :  { %4202 = vrcp.f32 %v2605_v9  ;;  %v2929_v9 = vld [vmem:[#allocation3 + $0xe] sm:$0x3] }
0x2225   :  { %v4203_v58 = vpop.eup %4202 }
0x2226   :  { %v2609_v42 = vmul.f32 %v4203_v58, %v2518_v23 }
0x2289   :  { %v2612_v54 = vpop.permute.xlu1 %2611 }
0x228a   :  { %v2614_v39 = vmul.f32 %v4203_v58, %v2612_v54 }
0x228c   :  { %2616 = vrot.lane.b32.xlu0 %v2614_v39, %s4266_s18 }
0x22fe   :  { %v2617_v61 = vpop.permute.xlu0 %2616 }
0x22ff   :  { %v2619_v28 = vadd.f32 %v2617_v61, %v2609_v42 }
0x2301   :  { %4204 = vtanh.f32 %v2619_v28 }
0x230b   :  { %v4205_v29 = vpop.eup %4204 }
0x230c   :  { %2622 = vrot.lane.b32.xlu1 %v4205_v29, %s4265_s2 }
0x237e   :  { %v2623_v30 = vpop.permute.xlu1 %2622 }
0x237f   :  { %v2625_v31 = vmul.f32 %v4203_v58, %v2623_v30  ;;  %v2828_v58 = vld [vmem:[#allocation5 + $0xe] sm:$0x3] }
0x2381   :  { %2628 = vrot.lane.b32.xlu0 %v2625_v31, %s4266_s18 }
0x23f3   :  { %v2629_v32 = vpop.permute.xlu0 %2628 }
0x23f4   :  { %3774 = vmatmul.mubr.msk.f32.vlgmr.msra.gmra.mrb[26].mxu0 %vm175_vm3, %v2629_v32 }
0x23f5   :  { %4002 = vmatpush3.bf16.msra.mxu0 %v4722_v40  ;;  %3795 = vmatprep.mubr.msk.f32.mxu0 %vm4264_vm1, %v4262_v5 }
0x23f6   :  { %4003 = vmatprep.subr.bf16.mxu0 %v4263_v8 }
0x23f9   :  { %4005 = vmatpush3.bf16.msra.mxu0 %v4729_v45 }
0x23fa   :  { %4012 = vmatprep.subr.bf16.mxu0 %v4263_v8 }
0x24c7   :  { %v2698_v34 = vpop.f32.mrb[26].mxu0 }
0x24c8   :  { %v2702_v35 = vadd.f32 %v2698_v34, %v2626_v33  ;;  %v3775_v36 = vpop.f32.mrb[27].mxu0 }
0x24ca   :  { %4206 = vtanh.f32 %v2702_v35  ;;  %v3348_v38 = vmul.f32 -1.442695, %v2702_v35 }
0x24cc   :  { %4208 = vpow2.f32 %v3348_v38 }
0x24d4   :  { %v4207_v37 = vpop.eup %4206 }
0x24d5   :  { %2712 = vrot.lane.b32.xlu1 %v4207_v37, %s4265_s2 }
0x24d6   :  { %v4209_v40 = vpop.eup %4208 }
0x24d7   :  { %v2706_v57 = vadd.f32 1.0, %v4209_v40 }
0x24d9   :  { %4210 = vrcp.f32 %v2706_v57 }
0x24e3   :  { %v4211_v41 = vpop.eup %4210 }
0x24e4   :  { %v2710_v45 = vmul.f32 %v4211_v41, %v2619_v28  ;;  %v3355_v28 = vld [vmem:[%s4940_s11] ss:$0 sm:$0xff] }
0x2547   :  { %v2713_v43 = vpop.permute.xlu1 %2712 }
0x2548   :  { %v2715_v44 = vmul.f32 %v4211_v41, %v2713_v43 }
0x254a   :  { %2717 = vrot.lane.b32.xlu0 %v2715_v44, %s4266_s18 }
0x25bc   :  { %v2718_v27 = vpop.permute.xlu0 %2717 }
0x25bd   :  { %v2720_v47 = vadd.f32 %v2718_v27, %v2710_v45 }
0x25bf   :  { %4212 = vtanh.f32 %v2720_v47 }
0x25c9   :  { %v4213_v46 = vpop.eup %4212 }
0x25ca   :  { %2723 = vrot.lane.b32.xlu1 %v4213_v46, %s4265_s2 }
0x263c   :  { %v2724_v48 = vpop.permute.xlu1 %2723 }
0x263d   :  { %v2726_v49 = vmul.f32 %v4211_v41, %v2724_v48 }
0x263f   :  { %2729 = vrot.lane.b32.xlu0 %v2726_v49, %s4266_s18 }
0x26b1   :  { %v2730_v56 = vpop.permute.xlu0 %2729 }
0x26b2   :  { %3785 = vmatmul.mubr.msk.f32.vlgmr.msra.gmra.mrb[22].mxu1 %vm175_vm3, %v2730_v56 }
0x26b3   :  { %4008 = vmatpush3.bf16.msra.mxu1 %v4007_v52  ;;  %3806 = vmatprep.mubr.msk.f32.mxu1 %vm4264_vm1, %v4262_v5  ;;  %v3117_v52 = vld [vmem:[%s4941_s12] sm:$0xff] }
0x26b4   :  { %4009 = vmatprep.subr.bf16.mxu1 %v4263_v8  ;;  %v4025_v56 = vpack.c.bf16 %v3118_v53, %v3117_v52 }
0x26b7   :  { %4011 = vmatpush3.bf16.msra.mxu1 %v4010_v59  ;;  %v3120_v59 = vld [vmem:[%s4941_s12 + $0x18] sm:$0xff] }
0x26b8   :  { %4018 = vmatprep.subr.bf16.mxu1 %v4263_v8 }
0x26ba   :  { %3807 = vmatmul.mubr.msk.f32.vlgmr.msra.gmra.mrb[24].mxu1 %vm175_vm3, %v2934_v60  ;;  %v4028_v60 = vpack.c.bf16 %v3120_v59, %v3119_v55 }
0x26bb   :  { %3828 = vmatprep.mubr.msk.f32.mxu1 %vm4264_vm1, %v4262_v5 }
0x2785   :  { %v2799_v63 = vpop.f32.mrb[22].mxu1 }
0x2786   :  { %v2803_v0 = vadd.f32 %v2799_v63, %v2727_v62  ;;  %v3786_v18 = vpop.f32.mrb[23].mxu1  ;;  %v3121_v63 = vld [vmem:[%s4942_s13] sm:$0xff] }
0x2787   :  { %v3123_v18 = vld [vmem:[%s4942_s13 + $0x10] sm:$0xff] }
0x2788   :  { %4214 = vtanh.f32 %v2803_v0  ;;  %v3350_v4 = vmul.f32 -1.442695, %v2803_v0  ;;  %v3122_v0 = vld [vmem:[%s4942_s13 + $0x8] sm:$0xff] }
0x278a   :  { %4216 = vpow2.f32 %v3350_v4 }
0x278d   :  { %v3008_v1 = vpop.f32.mrb[24].mxu1 }
0x278e   :  { %v3808_v2 = vpop.f32.mrb[25].mxu1 }
0x278f   :  { %v3124_v2 = vld [vmem:[%s4942_s13 + $0x18] sm:$0xff] }
0x2792   :  { %v4215_v3 = vpop.eup %4214 }
0x2793   :  { %2813 = vrot.lane.b32.xlu1 %v4215_v3, %s4265_s2  ;;  %v4022_v3 = vpack.c.bf16 %v3124_v2, %v3123_v18 }
0x2794   :  { %v4217_v7 = vpop.eup %4216 }
0x2795   :  { %v2807_v10 = vadd.f32 1.0, %v4217_v7 }
0x2797   :  { %4218 = vrcp.f32 %v2807_v10 }
0x27a1   :  { %v4219_v12 = vpop.eup %4218 }
0x27a2   :  { %v2811_v14 = vmul.f32 %v4219_v12, %v2720_v47 }
0x2805   :  { %v2814_v11 = vpop.permute.xlu1 %2813 }
0x2806   :  { %v2816_v13 = vmul.f32 %v4219_v12, %v2814_v11 }
0x2808   :  { %2818 = vrot.lane.b32.xlu0 %v2816_v13, %s4266_s18 }
0x287a   :  { %v2819_v23 = vpop.permute.xlu0 %2818 }
0x287b   :  { %v2821_v15 = vadd.f32 %v2819_v23, %v2811_v14 }
0x287d   :  { %4220 = vtanh.f32 %v2821_v15 }
0x2887   :  { %v4221_v19 = vpop.eup %4220 }
0x2888   :  { %2824 = vrot.lane.b32.xlu1 %v4221_v19, %s4265_s2 }
0x28fa   :  { %v2825_v16 = vpop.permute.xlu1 %2824 }
0x28fb   :  { %v2827_v17 = vmul.f32 %v4219_v12, %v2825_v16 }
0x28fd   :  { %2830 = vrot.lane.b32.xlu0 %v2827_v17, %s4266_s18 }
0x296f   :  { %v2831_v26 = vpop.permute.xlu0 %2830 }
0x2970   :  { %3796 = vmatmul.mubr.msk.f32.vlgmr.msra.gmra.mrb[28].mxu0 %vm175_vm3, %v2831_v26 }
0x2971   :  { %4014 = vmatpush3.bf16.msra.mxu0 %v4013_v22  ;;  %3817 = vmatprep.mubr.msk.f32.mxu0 %vm4264_vm1, %v4262_v5 }
0x2972   :  { %4015 = vmatprep.subr.bf16.mxu0 %v4263_v8 }
0x2975   :  { %4017 = vmatpush3.bf16.msra.mxu0 %v4016_v6 }
0x2976   :  { %4024 = vmatprep.subr.bf16.mxu0 %v4263_v8 }
0x2978   :  { %3818 = vmatmul.mubr.msk.f32.vlgmr.msra.gmra.mrb[30].mxu0 %vm175_vm3, %v2929_v9 }
0x2979   :  { %3839 = vmatprep.mubr.msk.f32.mxu0 %vm4264_vm1, %v4262_v5  ;;  %4026 = vmatpush3.bf16.msra.mxu0 %v4025_v56 }
0x297a   :  { %4027 = vmatprep.subr.bf16.mxu0 %v4263_v8 }
0x297d   :  { %4029 = vmatpush3.bf16.msra.mxu0 %v4028_v60 }
0x2a43   :  { %v2900_v54 = vpop.f32.mrb[28].mxu0 }
0x2a44   :  { %v2904_v39 = vadd.f32 %v2900_v54, %v2828_v58  ;;  %v3797_v42 = vpop.f32.mrb[29].mxu0 }
0x2a46   :  { %4222 = vtanh.f32 %v2904_v39  ;;  %v3352_v5 = vmul.f32 -1.442695, %v2904_v39 }
0x2a4b   :  { %v3081_v61 = vpop.f32.mrb[30].mxu0 }
0x2a4c   :  { %v3082_v29 = vadd.f32 %v3081_v61, %v3008_v1  ;;  %v3819_v30 = vpop.f32.mrb[31].mxu0  ;;  %v4019_v1 = vpack.c.bf16 %v3122_v0, %v3121_v63 }
0x2a4e   :  { %v3092_v31 = vadd.f32 %v3355_v28, %v3082_v29  ;;  %4020 = vmatpush3.bf16.msra.mxu1 %v4019_v1 }
0x2a4f   :  { %4021 = vmatprep.subr.bf16.mxu1 %v4263_v8  ;;  %v3359_v8 = vld [vmem:[%s4943_s14] ss:$0 sm:$0xff] }
0x2a50   :  { %v4223_v32 = vpop.eup %4222  ;;  %4224 = vtanh.f32 %v3092_v31  ;;  %v3356_v34 = vmul.f32 -1.442695, %v3092_v31 }
0x2a51   :  { %2914 = vrot.lane.b32.xlu1 %v4223_v32, %s4265_s2  ;;  %4226 = vpow2.f32 %v3352_v5 }
0x2a52   :  { %4228 = vpow2.f32 %v3356_v34  ;;  %4023 = vmatpush3.bf16.msra.mxu1 %v4022_v3 }
0x2a5a   :  { %v4225_v33 = vpop.eup %4224 }
0x2a5b   :  { %3102 = vrot.lane.b32.xlu0 %v4225_v33, %s4265_s2  ;;  %v4227_v35 = vpop.eup %4226 }
0x2a5c   :  { %v2908_v36 = vadd.f32 1.0, %v4227_v35  ;;  %v4229_v37 = vpop.eup %4228 }
0x2a5d   :  { %v3096_v38 = vadd.f32 1.0, %v4229_v37 }
0x2a5e   :  { %4230 = vrcp.f32 %v2908_v36 }
0x2a5f   :  { %4232 = vrcp.f32 %v3096_v38 }
0x2a68   :  { %v4231_v40 = vpop.eup %4230 }
0x2a69   :  { %v4233_v43 = vpop.eup %4232  ;;  %v2912_v27 = vmul.f32 %v4231_v40, %v2821_v15 }
0x2a6a   :  { %v3100_v48 = vmul.f32 0.0, %v4233_v43 }
0x2ac3   :  { %v2915_v57 = vpop.permute.xlu1 %2914 }
0x2ac4   :  { %v2917_v41 = vmul.f32 %v4231_v40, %v2915_v57 }
0x2ac6   :  { %2919 = vrot.lane.b32.xlu1 %v2917_v41, %s4266_s18 }
0x2acd   :  { %v3103_v44 = vpop.permute.xlu0 %3102 }
0x2ace   :  { %v3105_v45 = vmul.f32 %v4233_v43, %v3103_v44 }
0x2ad0   :  { %3107 = vrot.lane.b32.xlu0 %v3105_v45, %s4266_s18 }
0x2b38   :  { %v2920_v47 = vpop.permute.xlu1 %2919 }
0x2b39   :  { %v2922_v46 = vadd.f32 %v2920_v47, %v2912_v27 }
0x2b3b   :  { %4234 = vtanh.f32 %v2922_v46 }
0x2b42   :  { %v3108_v49 = vpop.permute.xlu0 %3107 }
0x2b43   :  { %v3110_v50 = vadd.f32 %v3108_v49, %v3100_v48 }
0x2b45   :  { %v4235_v51 = vpop.eup %4234  ;;  %4236 = vtanh.f32 %v3110_v50 }
0x2b46   :  { %2925 = vrot.lane.b32.xlu1 %v4235_v51, %s4265_s2 }
0x2b4f   :  { %v4237_v62 = vpop.eup %4236 }
0x2b50   :  { %3113 = vrot.lane.b32.xlu0 %v4237_v62, %s4265_s2 }
0x2bb8   :  { %v2926_v4 = vpop.permute.xlu1 %2925 }
0x2bb9   :  { %v2928_v7 = vmul.f32 %v4231_v40, %v2926_v4 }
0x2bbb   :  { %3201 = vrot.lane.b32.xlu0 %v2928_v7, %s4266_s18 }
0x2bc2   :  { %v3114_v10 = vpop.permute.xlu0 %3113 }
0x2bc3   :  { %v3116_v12 = vmul.f32 %v4233_v43, %v3114_v10 }
0x2bc5   :  { %3126 = vrot.lane.b32.xlu1 %v3116_v12, %s4266_s18  ;;  %s4238_s18 = scalar_lea.vmem %s3292_s6, 32 }
0x2bc6   :  { %p4239_p0 = scmp.ne.s32.totalorder %s3292_s6, %s4238_s18  ;;  %p4244_p2 = scmp.lt.s32.totalorder %s4238_s18, %s4238_s18 }
0x2bc8   :  { %p4245_p3 = por %p4244_p2, %p4243_p1 }
0x2bca   :  { %p4246_p4 = pnand %p4245_p3, %p4239_p0 }
0x2c2d   :  { %v3202_v11 = vpop.permute.xlu0 %3201 }
0x2c2e   :  { %3840 = vmatmul.mubr.msk.f32.vlgmr.msra.gmra.mrb[32].mxu0 %vm175_vm3, %v3202_v11 }
0x2c37   :  { %v3127_v13 = vpop.permute.xlu1 %3126 }
0x2c38   :  { %3829 = vmatmul.mubr.msk.f32.vlgmr.msra.gmra.mrb[26].mxu1 %vm175_vm3, %v3127_v13 }
0x2d01   :  { %v3271_v14 = vpop.f32.mrb[32].mxu0 }
0x2d02   :  { %v3841_v23 = vpop.f32.mrb[33].mxu0 }
0x2d0b   :  { %v3196_v15 = vpop.f32.mrb[26].mxu1 }
0x2d0c   :  { %v3272_v19 = vadd.f32 %v3271_v14, %v3196_v15  ;;  %v3830_v16 = vpop.f32.mrb[27].mxu1 }
0x2d0e   :  { %v3282_v17 = vadd.f32 %v3359_v8, %v3272_v19 }
0x2d10   :  { %3284 = vst.msk [vmem:[#allocation6] sm:$0x3] %vm3283_vm8, %v3282_v17 }
0x2d11   :  { %4249 = shalt.err (!%p4246_p4)
}
0x2d12   :  { %s4250_s16 = scalar_lea.hbm %s4944_s15, 32 }
0x2d13   :  { %p4251_p5 = scmp.ne.s32.totalorder %s4944_s15, %s4250_s16  ;;  %p4254_p6 = scmp.lt.u32.totalorder %s4250_s16, %s4944_s15 }
0x2d15   :  { %p4256_p7 = pnand %p4254_p6, %p4251_p5 }
0x2d17   :  { %4259 = shalt.err (!%p4256_p7)
}
0x2d18   :  { %3294 = dma.vmem_to_hbm [thread:$0]  %s3292_s6, 32, %s4944_s15, [#allocation7]  }
0x2d19   :  { %4260 = dma.done.wait [#allocation7], 32  }
0x2d1a   :  { %4261 = vsyncadd [#allocation7], 4294967264 }
0x2d1b   :  { %3298 = vsyncpa [#allocation7], 1 }

</bundles_post_ra>
